<compile_context>
chip_gen: v5e
topology: v5e:2x2
jax: 0.10.0
libtpu: 0.0.40
codegen_flags: <defaults>
</compile_context>

<pallas_src>
import functools

import jax
import jax.numpy as jnp
from jax.experimental import pallas as pl
from jax.experimental.pallas import tpu as pltpu


def _kan_kernel(x_ref, w_ref, b_ref, o_ref, f_ref, *, inputdim, gridsize,
                reseed_every):
    # x_ref : (I, TB)        f32   transposed input tile (lanes = batch)
    # w_ref : (O_pad, 2*I*G) bf16  stacked [cos | sin] weights, transposed
    # b_ref : (O_pad, 1)     f32   bias column (zero-padded)
    # o_ref : (O_pad, TB)    f32   transposed output tile
    # f_ref : (2*I*G, TB)    f32   feature scratch (cos half, then sin half)
    I = inputdim
    G = gridsize
    IG = I * G

    xt = x_ref[...]                                   # (I, TB) f32
    c1 = jnp.cos(xt)                                  # EUP: once per (b, i)
    s1 = jnp.sin(xt)

    # Harmonic k = 1.
    f_ref[pl.ds(0, I), :] = c1
    f_ref[pl.ds(IG, I), :] = s1

    c_k, s_k = c1, s1
    # Harmonics k = 2..G via angle addition (VPU mul/add), re-seeded
    # periodically to bound recurrence error for large G.
    for k in range(1, G):
        if reseed_every and (k % reseed_every == 0):
            ang = xt * jnp.float32(k + 1)
            c_n = jnp.cos(ang)
            s_n = jnp.sin(ang)
        else:
            c_n = c_k * c1 - s_k * s1
            s_n = s_k * c1 + c_k * s1
        f_ref[pl.ds(k * I, I), :] = c_n
        f_ref[pl.ds(IG + k * I, I), :] = s_n
        c_k, s_k = c_n, s_n

    # One fused MXU matmul: (O_pad, 2IG) @ (2IG, TB) -> (O_pad, TB).
    feats = f_ref[...].astype(jnp.bfloat16)
    acc = jnp.dot(w_ref[...], feats, preferred_element_type=jnp.float32)
    acc = acc + b_ref[...]                            # (O_pad, 1) lane-broadcast
    o_ref[...] = acc.astype(o_ref.dtype)


def kan_layer_forward(x, fouriercoeffs, bias, *, tile_b=128, reseed_every=16):
    """Pallas implementation of KANLayer.forward.

    x              : (..., inputdim) float32
    fouriercoeffs  : (2, outdim, inputdim, gridsize) float32
    bias           : (1, outdim) float32 or None
    returns        : (..., outdim) float32
    """
    _, outdim, inputdim, gridsize = fouriercoeffs.shape
    xshp = x.shape
    outshape = xshp[:-1] + (outdim,)

    x2d = x.reshape(-1, inputdim).astype(jnp.float32)
    b_total = x2d.shape[0]

    # Tile sizes: lane-dense batch tile (multiple of 128), padded batch.
    tile_b = max(128, (int(tile_b) // 128) * 128)
    b_pad = ((b_total + tile_b - 1) // tile_b) * tile_b
    if b_pad != b_total:
        x2d = jnp.pad(x2d, ((0, b_pad - b_total), (0, 0)))
    x_t = x2d.T                                        # (I, b_pad)

    # Pad outdim to a multiple of 128 so the MXU N dim / output stores are dense.
    o_pad = ((outdim + 127) // 128) * 128
    ig = inputdim * gridsize

    # W[d, j, i, k] -> rows r = (d, k, i), cols j ; then transpose to (O, 2*I*G)
    # so the in-kernel matmul is  y^T = W^T @ F  with F[(d,k,i), b] = trig((k+1)x[b,i]).
    wc = jnp.transpose(fouriercoeffs[0], (2, 1, 0)).reshape(ig, outdim)
    ws = jnp.transpose(fouriercoeffs[1], (2, 1, 0)).reshape(ig, outdim)
    w_t = jnp.concatenate([wc, ws], axis=0).T          # (O, 2*I*G)
    w_t = jnp.pad(w_t, ((0, o_pad - outdim), (0, 0))).astype(jnp.bfloat16)

    if bias is None:
        bias_col = jnp.zeros((o_pad, 1), jnp.float32)
    else:
        bias_col = jnp.pad(
            bias.astype(jnp.float32).reshape(outdim), (0, o_pad - outdim)
        ).reshape(o_pad, 1)

    grid = (b_pad // tile_b,)

    # Explicit VMEM budget (with headroom), capped below v7x's 64 MiB.
    need = (
        inputdim * tile_b * 4 * 2          # x tiles (double-buffered)
        + o_pad * 2 * ig * 2 * 2           # bf16 weight block
        + o_pad * 4 * 2                    # bias
        + o_pad * tile_b * 4 * 2           # output tiles
        + 2 * ig * tile_b * 4              # feature scratch
    )
    vmem_limit = int(min(max(2 * need, 32 * 1024 * 1024), 64 * 1024 * 1024))

    kernel = functools.partial(
        _kan_kernel,
        inputdim=inputdim,
        gridsize=gridsize,
        reseed_every=reseed_every,
    )

    y_t = pl.pallas_call(
        kernel,
        out_shape=jax.ShapeDtypeStruct((o_pad, b_pad), jnp.float32),
        grid_spec=pltpu.PrefetchScalarGridSpec(
            num_scalar_prefetch=0,
            grid=grid,
            in_specs=[
                pl.BlockSpec((inputdim, tile_b), lambda i: (0, i)),
                pl.BlockSpec((o_pad, 2 * ig), lambda i: (0, 0)),
                pl.BlockSpec((o_pad, 1), lambda i: (0, 0)),
            ],
            out_specs=pl.BlockSpec((o_pad, tile_b), lambda i: (0, i)),
            scratch_shapes=[pltpu.VMEM((2 * ig, tile_b), jnp.float32)],
        ),
        compiler_params=pltpu.CompilerParams(
            dimension_semantics=("parallel",),
            vmem_limit_bytes=vmem_limit,
        ),
    )(x_t, w_t, bias_col)

    y2d = y_t[:outdim, :b_total].T                     # (B, outdim)
    return y2d.reshape(outshape)


def kan_layer_reference(x, fouriercoeffs, bias):
    """Pure-JAX f32 reference mirroring the PyTorch forward exactly."""
    _, outdim, inputdim, gridsize = fouriercoeffs.shape
    xshp = x.shape
    outshape = xshp[:-1] + (outdim,)
    x2d = x.reshape(-1, inputdim)
    k = jnp.arange(1, gridsize + 1, dtype=jnp.float32).reshape(1, 1, 1, gridsize)
    xr = x2d.reshape(x2d.shape[0], 1, x2d.shape[1], 1)
    c = jnp.cos(k * xr).reshape(1, x2d.shape[0], inputdim, gridsize)
    s = jnp.sin(k * xr).reshape(1, x2d.shape[0], inputdim, gridsize)
    feats = jnp.concatenate([c, s], axis=0)            # (2, B, I, G)
    y = jnp.einsum("dbik,djik->bj", feats, fouriercoeffs)
    if bias is not None:
        y = y + bias
    return y.reshape(outshape)


if __name__ == "__main__":
    # Module config (small, consistent with KANLayer(inputdim, outdim, gridsize)).
    inputdim = 8
    outdim = 16
    gridsize = 64
    addbias = True

    key = jax.random.PRNGKey(0)
    kx, kw = jax.random.split(key)

    # Leading batch dims (4, 64) -> flattened B = 256 -> 2 grid steps at tile_b=128.
    x = jax.random.normal(kx, (4, 64, inputdim), dtype=jnp.float32)

    fouriercoeffs = jax.random.normal(
        kw, (2, outdim, inputdim, gridsize), dtype=jnp.float32
    ) / (jnp.sqrt(jnp.float32(inputdim)) * jnp.sqrt(jnp.float32(gridsize)))
    bias = jnp.zeros((1, outdim), jnp.float32) if addbias else None

    y = kan_layer_forward(x, fouriercoeffs, bias)
    y = jax.block_until_ready(y)

    y_ref = kan_layer_reference(x, fouriercoeffs, bias)
    assert y.shape == (4, 64, outdim)
    # bf16 MXU operands + sin/cos recurrence: tolerance relaxed vs pure-f32 ref.
    assert jnp.allclose(y, y_ref, atol=3e-2, rtol=3e-2), "mismatch vs reference"

    print("KERNEL_OK")
</pallas_src>

<mosaic_0001>
module attributes {stable_mosaic.version = 11 : i64} {
  func.func @_kan_kernel(%arg0: i32, %arg1: memref<8x128xf32, #tpu.memory_space<vmem>>, %arg2: memref<128x1024xbf16, #tpu.memory_space<vmem>>, %arg3: memref<128x1xf32, #tpu.memory_space<vmem>>, %arg4: memref<128x128xf32, #tpu.memory_space<vmem>>, %arg5: memref<1024x128xf32, #tpu.memory_space<vmem>>) attributes {dimension_semantics = [#tpu.dimension_semantics<parallel>], iteration_bounds = array<i64: 2>, scalar_prefetch = 0 : i64, scratch_operands = 1 : i64, tpu.core_type = #tpu.core_type<tc>, window_params = [{transform_indices = @transform_0, window_bounds = array<i64: 8, 128>}, {pipeline_mode = #tpu.pipeline_mode<synchronous>, transform_indices = @transform_1, window_bounds = array<i64: 128, 1024>}, {pipeline_mode = #tpu.pipeline_mode<synchronous>, transform_indices = @transform_2, window_bounds = array<i64: 128, 1>}, {transform_indices = @transform_3, window_bounds = array<i64: 128, 128>}]} {
    %c0 = arith.constant 0 : index
    %c0_0 = arith.constant 0 : index
    %0 = vector.load %arg1[%c0, %c0_0] : memref<8x128xf32, #tpu.memory_space<vmem>>, vector<8x128xf32>
    %1 = math.cos %0 : vector<8x128xf32>
    %2 = math.sin %0 : vector<8x128xf32>
    %c0_1 = arith.constant 0 : index
    %c0_2 = arith.constant 0 : index
    %3 = vector.load %arg5[%c0_1, %c0_2] : memref<1024x128xf32, #tpu.memory_space<vmem>>, vector<8x128xf32>
    tpu.vector_store %arg5[%c0_1, %c0_2], %1 {strides = array<i32>} : memref<1024x128xf32, #tpu.memory_space<vmem>>, vector<8x128xf32>,
    %c512 = arith.constant 512 : index
    %c0_3 = arith.constant 0 : index
    %4 = vector.load %arg5[%c512, %c0_3] : memref<1024x128xf32, #tpu.memory_space<vmem>>, vector<8x128xf32>
    tpu.vector_store %arg5[%c512, %c0_3], %2 {strides = array<i32>} : memref<1024x128xf32, #tpu.memory_space<vmem>>, vector<8x128xf32>,
    %5 = arith.mulf %1, %1 : vector<8x128xf32>
    %6 = arith.mulf %2, %2 : vector<8x128xf32>
    %7 = arith.subf %5, %6 : vector<8x128xf32>
    %8 = arith.mulf %2, %1 : vector<8x128xf32>
    %9 = arith.mulf %1, %2 : vector<8x128xf32>
    %10 = arith.addf %8, %9 : vector<8x128xf32>
    %c8 = arith.constant 8 : index
    %c0_4 = arith.constant 0 : index
    %11 = vector.load %arg5[%c8, %c0_4] : memref<1024x128xf32, #tpu.memory_space<vmem>>, vector<8x128xf32>
    tpu.vector_store %arg5[%c8, %c0_4], %7 {strides = array<i32>} : memref<1024x128xf32, #tpu.memory_space<vmem>>, vector<8x128xf32>,
    %c520 = arith.constant 520 : index
    %c0_5 = arith.constant 0 : index
    %12 = vector.load %arg5[%c520, %c0_5] : memref<1024x128xf32, #tpu.memory_space<vmem>>, vector<8x128xf32>
    tpu.vector_store %arg5[%c520, %c0_5], %10 {strides = array<i32>} : memref<1024x128xf32, #tpu.memory_space<vmem>>, vector<8x128xf32>,
    %13 = arith.mulf %7, %1 : vector<8x128xf32>
    %14 = arith.mulf %10, %2 : vector<8x128xf32>
    %15 = arith.subf %13, %14 : vector<8x128xf32>
    %16 = arith.mulf %10, %1 : vector<8x128xf32>
    %17 = arith.mulf %7, %2 : vector<8x128xf32>
    %18 = arith.addf %16, %17 : vector<8x128xf32>
    %c16 = arith.constant 16 : index
    %c0_6 = arith.constant 0 : index
    %19 = vector.load %arg5[%c16, %c0_6] : memref<1024x128xf32, #tpu.memory_space<vmem>>, vector<8x128xf32>
    tpu.vector_store %arg5[%c16, %c0_6], %15 {strides = array<i32>} : memref<1024x128xf32, #tpu.memory_space<vmem>>, vector<8x128xf32>,
    %c528 = arith.constant 528 : index
    %c0_7 = arith.constant 0 : index
    %20 = vector.load %arg5[%c528, %c0_7] : memref<1024x128xf32, #tpu.memory_space<vmem>>, vector<8x128xf32>
    tpu.vector_store %arg5[%c528, %c0_7], %18 {strides = array<i32>} : memref<1024x128xf32, #tpu.memory_space<vmem>>, vector<8x128xf32>,
    %21 = arith.mulf %15, %1 : vector<8x128xf32>
    %22 = arith.mulf %18, %2 : vector<8x128xf32>
    %23 = arith.subf %21, %22 : vector<8x128xf32>
    %24 = arith.mulf %18, %1 : vector<8x128xf32>
    %25 = arith.mulf %15, %2 : vector<8x128xf32>
    %26 = arith.addf %24, %25 : vector<8x128xf32>
    %c24 = arith.constant 24 : index
    %c0_8 = arith.constant 0 : index
    %27 = vector.load %arg5[%c24, %c0_8] : memref<1024x128xf32, #tpu.memory_space<vmem>>, vector<8x128xf32>
    tpu.vector_store %arg5[%c24, %c0_8], %23 {strides = array<i32>} : memref<1024x128xf32, #tpu.memory_space<vmem>>, vector<8x128xf32>,
    %c536 = arith.constant 536 : index
    %c0_9 = arith.constant 0 : index
    %28 = vector.load %arg5[%c536, %c0_9] : memref<1024x128xf32, #tpu.memory_space<vmem>>, vector<8x128xf32>
    tpu.vector_store %arg5[%c536, %c0_9], %26 {strides = array<i32>} : memref<1024x128xf32, #tpu.memory_space<vmem>>, vector<8x128xf32>,
    %29 = arith.mulf %23, %1 : vector<8x128xf32>
    %30 = arith.mulf %26, %2 : vector<8x128xf32>
    %31 = arith.subf %29, %30 : vector<8x128xf32>
    %32 = arith.mulf %26, %1 : vector<8x128xf32>
    %33 = arith.mulf %23, %2 : vector<8x128xf32>
    %34 = arith.addf %32, %33 : vector<8x128xf32>
    %c32 = arith.constant 32 : index
    %c0_10 = arith.constant 0 : index
    %35 = vector.load %arg5[%c32, %c0_10] : memref<1024x128xf32, #tpu.memory_space<vmem>>, vector<8x128xf32>
    tpu.vector_store %arg5[%c32, %c0_10], %31 {strides = array<i32>} : memref<1024x128xf32, #tpu.memory_space<vmem>>, vector<8x128xf32>,
    %c544 = arith.constant 544 : index
    %c0_11 = arith.constant 0 : index
    %36 = vector.load %arg5[%c544, %c0_11] : memref<1024x128xf32, #tpu.memory_space<vmem>>, vector<8x128xf32>
    tpu.vector_store %arg5[%c544, %c0_11], %34 {strides = array<i32>} : memref<1024x128xf32, #tpu.memory_space<vmem>>, vector<8x128xf32>,
    %37 = arith.mulf %31, %1 : vector<8x128xf32>
    %38 = arith.mulf %34, %2 : vector<8x128xf32>
    %39 = arith.subf %37, %38 : vector<8x128xf32>
    %40 = arith.mulf %34, %1 : vector<8x128xf32>
    %41 = arith.mulf %31, %2 : vector<8x128xf32>
    %42 = arith.addf %40, %41 : vector<8x128xf32>
    %c40 = arith.constant 40 : index
    %c0_12 = arith.constant 0 : index
    %43 = vector.load %arg5[%c40, %c0_12] : memref<1024x128xf32, #tpu.memory_space<vmem>>, vector<8x128xf32>
    tpu.vector_store %arg5[%c40, %c0_12], %39 {strides = array<i32>} : memref<1024x128xf32, #tpu.memory_space<vmem>>, vector<8x128xf32>,
    %c552 = arith.constant 552 : index
    %c0_13 = arith.constant 0 : index
    %44 = vector.load %arg5[%c552, %c0_13] : memref<1024x128xf32, #tpu.memory_space<vmem>>, vector<8x128xf32>
    tpu.vector_store %arg5[%c552, %c0_13], %42 {strides = array<i32>} : memref<1024x128xf32, #tpu.memory_space<vmem>>, vector<8x128xf32>,
    %45 = arith.mulf %39, %1 : vector<8x128xf32>
    %46 = arith.mulf %42, %2 : vector<8x128xf32>
    %47 = arith.subf %45, %46 : vector<8x128xf32>
    %48 = arith.mulf %42, %1 : vector<8x128xf32>
    %49 = arith.mulf %39, %2 : vector<8x128xf32>
    %50 = arith.addf %48, %49 : vector<8x128xf32>
    %c48 = arith.constant 48 : index
    %c0_14 = arith.constant 0 : index
    %51 = vector.load %arg5[%c48, %c0_14] : memref<1024x128xf32, #tpu.memory_space<vmem>>, vector<8x128xf32>
    tpu.vector_store %arg5[%c48, %c0_14], %47 {strides = array<i32>} : memref<1024x128xf32, #tpu.memory_space<vmem>>, vector<8x128xf32>,
    %c560 = arith.constant 560 : index
    %c0_15 = arith.constant 0 : index
    %52 = vector.load %arg5[%c560, %c0_15] : memref<1024x128xf32, #tpu.memory_space<vmem>>, vector<8x128xf32>
    tpu.vector_store %arg5[%c560, %c0_15], %50 {strides = array<i32>} : memref<1024x128xf32, #tpu.memory_space<vmem>>, vector<8x128xf32>,
    %53 = arith.mulf %47, %1 : vector<8x128xf32>
    %54 = arith.mulf %50, %2 : vector<8x128xf32>
    %55 = arith.subf %53, %54 : vector<8x128xf32>
    %56 = arith.mulf %50, %1 : vector<8x128xf32>
    %57 = arith.mulf %47, %2 : vector<8x128xf32>
    %58 = arith.addf %56, %57 : vector<8x128xf32>
    %c56 = arith.constant 56 : index
    %c0_16 = arith.constant 0 : index
    %59 = vector.load %arg5[%c56, %c0_16] : memref<1024x128xf32, #tpu.memory_space<vmem>>, vector<8x128xf32>
    tpu.vector_store %arg5[%c56, %c0_16], %55 {strides = array<i32>} : memref<1024x128xf32, #tpu.memory_space<vmem>>, vector<8x128xf32>,
    %c568 = arith.constant 568 : index
    %c0_17 = arith.constant 0 : index
    %60 = vector.load %arg5[%c568, %c0_17] : memref<1024x128xf32, #tpu.memory_space<vmem>>, vector<8x128xf32>
    tpu.vector_store %arg5[%c568, %c0_17], %58 {strides = array<i32>} : memref<1024x128xf32, #tpu.memory_space<vmem>>, vector<8x128xf32>,
    %61 = arith.mulf %55, %1 : vector<8x128xf32>
    %62 = arith.mulf %58, %2 : vector<8x128xf32>
    %63 = arith.subf %61, %62 : vector<8x128xf32>
    %64 = arith.mulf %58, %1 : vector<8x128xf32>
    %65 = arith.mulf %55, %2 : vector<8x128xf32>
    %66 = arith.addf %64, %65 : vector<8x128xf32>
    %c64 = arith.constant 64 : index
    %c0_18 = arith.constant 0 : index
    %67 = vector.load %arg5[%c64, %c0_18] : memref<1024x128xf32, #tpu.memory_space<vmem>>, vector<8x128xf32>
    tpu.vector_store %arg5[%c64, %c0_18], %63 {strides = array<i32>} : memref<1024x128xf32, #tpu.memory_space<vmem>>, vector<8x128xf32>,
    %c576 = arith.constant 576 : index
    %c0_19 = arith.constant 0 : index
    %68 = vector.load %arg5[%c576, %c0_19] : memref<1024x128xf32, #tpu.memory_space<vmem>>, vector<8x128xf32>
    tpu.vector_store %arg5[%c576, %c0_19], %66 {strides = array<i32>} : memref<1024x128xf32, #tpu.memory_space<vmem>>, vector<8x128xf32>,
    %69 = arith.mulf %63, %1 : vector<8x128xf32>
    %70 = arith.mulf %66, %2 : vector<8x128xf32>
    %71 = arith.subf %69, %70 : vector<8x128xf32>
    %72 = arith.mulf %66, %1 : vector<8x128xf32>
    %73 = arith.mulf %63, %2 : vector<8x128xf32>
    %74 = arith.addf %72, %73 : vector<8x128xf32>
    %c72 = arith.constant 72 : index
    %c0_20 = arith.constant 0 : index
    %75 = vector.load %arg5[%c72, %c0_20] : memref<1024x128xf32, #tpu.memory_space<vmem>>, vector<8x128xf32>
    tpu.vector_store %arg5[%c72, %c0_20], %71 {strides = array<i32>} : memref<1024x128xf32, #tpu.memory_space<vmem>>, vector<8x128xf32>,
    %c584 = arith.constant 584 : index
    %c0_21 = arith.constant 0 : index
    %76 = vector.load %arg5[%c584, %c0_21] : memref<1024x128xf32, #tpu.memory_space<vmem>>, vector<8x128xf32>
    tpu.vector_store %arg5[%c584, %c0_21], %74 {strides = array<i32>} : memref<1024x128xf32, #tpu.memory_space<vmem>>, vector<8x128xf32>,
    %77 = arith.mulf %71, %1 : vector<8x128xf32>
    %78 = arith.mulf %74, %2 : vector<8x128xf32>
    %79 = arith.subf %77, %78 : vector<8x128xf32>
    %80 = arith.mulf %74, %1 : vector<8x128xf32>
    %81 = arith.mulf %71, %2 : vector<8x128xf32>
    %82 = arith.addf %80, %81 : vector<8x128xf32>
    %c80 = arith.constant 80 : index
    %c0_22 = arith.constant 0 : index
    %83 = vector.load %arg5[%c80, %c0_22] : memref<1024x128xf32, #tpu.memory_space<vmem>>, vector<8x128xf32>
    tpu.vector_store %arg5[%c80, %c0_22], %79 {strides = array<i32>} : memref<1024x128xf32, #tpu.memory_space<vmem>>, vector<8x128xf32>,
    %c592 = arith.constant 592 : index
    %c0_23 = arith.constant 0 : index
    %84 = vector.load %arg5[%c592, %c0_23] : memref<1024x128xf32, #tpu.memory_space<vmem>>, vector<8x128xf32>
    tpu.vector_store %arg5[%c592, %c0_23], %82 {strides = array<i32>} : memref<1024x128xf32, #tpu.memory_space<vmem>>, vector<8x128xf32>,
    %85 = arith.mulf %79, %1 : vector<8x128xf32>
    %86 = arith.mulf %82, %2 : vector<8x128xf32>
    %87 = arith.subf %85, %86 : vector<8x128xf32>
    %88 = arith.mulf %82, %1 : vector<8x128xf32>
    %89 = arith.mulf %79, %2 : vector<8x128xf32>
    %90 = arith.addf %88, %89 : vector<8x128xf32>
    %c88 = arith.constant 88 : index
    %c0_24 = arith.constant 0 : index
    %91 = vector.load %arg5[%c88, %c0_24] : memref<1024x128xf32, #tpu.memory_space<vmem>>, vector<8x128xf32>
    tpu.vector_store %arg5[%c88, %c0_24], %87 {strides = array<i32>} : memref<1024x128xf32, #tpu.memory_space<vmem>>, vector<8x128xf32>,
    %c600 = arith.constant 600 : index
    %c0_25 = arith.constant 0 : index
    %92 = vector.load %arg5[%c600, %c0_25] : memref<1024x128xf32, #tpu.memory_space<vmem>>, vector<8x128xf32>
    tpu.vector_store %arg5[%c600, %c0_25], %90 {strides = array<i32>} : memref<1024x128xf32, #tpu.memory_space<vmem>>, vector<8x128xf32>,
    %93 = arith.mulf %87, %1 : vector<8x128xf32>
    %94 = arith.mulf %90, %2 : vector<8x128xf32>
    %95 = arith.subf %93, %94 : vector<8x128xf32>
    %96 = arith.mulf %90, %1 : vector<8x128xf32>
    %97 = arith.mulf %87, %2 : vector<8x128xf32>
    %98 = arith.addf %96, %97 : vector<8x128xf32>
    %c96 = arith.constant 96 : index
    %c0_26 = arith.constant 0 : index
    %99 = vector.load %arg5[%c96, %c0_26] : memref<1024x128xf32, #tpu.memory_space<vmem>>, vector<8x128xf32>
    tpu.vector_store %arg5[%c96, %c0_26], %95 {strides = array<i32>} : memref<1024x128xf32, #tpu.memory_space<vmem>>, vector<8x128xf32>,
    %c608 = arith.constant 608 : index
    %c0_27 = arith.constant 0 : index
    %100 = vector.load %arg5[%c608, %c0_27] : memref<1024x128xf32, #tpu.memory_space<vmem>>, vector<8x128xf32>
    tpu.vector_store %arg5[%c608, %c0_27], %98 {strides = array<i32>} : memref<1024x128xf32, #tpu.memory_space<vmem>>, vector<8x128xf32>,
    %101 = arith.mulf %95, %1 : vector<8x128xf32>
    %102 = arith.mulf %98, %2 : vector<8x128xf32>
    %103 = arith.subf %101, %102 : vector<8x128xf32>
    %104 = arith.mulf %98, %1 : vector<8x128xf32>
    %105 = arith.mulf %95, %2 : vector<8x128xf32>
    %106 = arith.addf %104, %105 : vector<8x128xf32>
    %c104 = arith.constant 104 : index
    %c0_28 = arith.constant 0 : index
    %107 = vector.load %arg5[%c104, %c0_28] : memref<1024x128xf32, #tpu.memory_space<vmem>>, vector<8x128xf32>
    tpu.vector_store %arg5[%c104, %c0_28], %103 {strides = array<i32>} : memref<1024x128xf32, #tpu.memory_space<vmem>>, vector<8x128xf32>,
    %c616 = arith.constant 616 : index
    %c0_29 = arith.constant 0 : index
    %108 = vector.load %arg5[%c616, %c0_29] : memref<1024x128xf32, #tpu.memory_space<vmem>>, vector<8x128xf32>
    tpu.vector_store %arg5[%c616, %c0_29], %106 {strides = array<i32>} : memref<1024x128xf32, #tpu.memory_space<vmem>>, vector<8x128xf32>,
    %109 = arith.mulf %103, %1 : vector<8x128xf32>
    %110 = arith.mulf %106, %2 : vector<8x128xf32>
    %111 = arith.subf %109, %110 : vector<8x128xf32>
    %112 = arith.mulf %106, %1 : vector<8x128xf32>
    %113 = arith.mulf %103, %2 : vector<8x128xf32>
    %114 = arith.addf %112, %113 : vector<8x128xf32>
    %c112 = arith.constant 112 : index
    %c0_30 = arith.constant 0 : index
    %115 = vector.load %arg5[%c112, %c0_30] : memref<1024x128xf32, #tpu.memory_space<vmem>>, vector<8x128xf32>
    tpu.vector_store %arg5[%c112, %c0_30], %111 {strides = array<i32>} : memref<1024x128xf32, #tpu.memory_space<vmem>>, vector<8x128xf32>,
    %c624 = arith.constant 624 : index
    %c0_31 = arith.constant 0 : index
    %116 = vector.load %arg5[%c624, %c0_31] : memref<1024x128xf32, #tpu.memory_space<vmem>>, vector<8x128xf32>
    tpu.vector_store %arg5[%c624, %c0_31], %114 {strides = array<i32>} : memref<1024x128xf32, #tpu.memory_space<vmem>>, vector<8x128xf32>,
    %117 = arith.mulf %111, %1 : vector<8x128xf32>
    %118 = arith.mulf %114, %2 : vector<8x128xf32>
    %119 = arith.subf %117, %118 : vector<8x128xf32>
    %120 = arith.mulf %114, %1 : vector<8x128xf32>
    %121 = arith.mulf %111, %2 : vector<8x128xf32>
    %122 = arith.addf %120, %121 : vector<8x128xf32>
    %c120 = arith.constant 120 : index
    %c0_32 = arith.constant 0 : index
    %123 = vector.load %arg5[%c120, %c0_32] : memref<1024x128xf32, #tpu.memory_space<vmem>>, vector<8x128xf32>
    tpu.vector_store %arg5[%c120, %c0_32], %119 {strides = array<i32>} : memref<1024x128xf32, #tpu.memory_space<vmem>>, vector<8x128xf32>,
    %c632 = arith.constant 632 : index
    %c0_33 = arith.constant 0 : index
    %124 = vector.load %arg5[%c632, %c0_33] : memref<1024x128xf32, #tpu.memory_space<vmem>>, vector<8x128xf32>
    tpu.vector_store %arg5[%c632, %c0_33], %122 {strides = array<i32>} : memref<1024x128xf32, #tpu.memory_space<vmem>>, vector<8x128xf32>,
    %cst = arith.constant 1.700000e+01 : f32
    %125 = vector.broadcast %cst : f32 to vector<8x128xf32>
    %126 = arith.mulf %0, %125 : vector<8x128xf32>
    %127 = math.cos %126 : vector<8x128xf32>
    %128 = math.sin %126 : vector<8x128xf32>
    %c128 = arith.constant 128 : index
    %c0_34 = arith.constant 0 : index
    %129 = vector.load %arg5[%c128, %c0_34] : memref<1024x128xf32, #tpu.memory_space<vmem>>, vector<8x128xf32>
    tpu.vector_store %arg5[%c128, %c0_34], %127 {strides = array<i32>} : memref<1024x128xf32, #tpu.memory_space<vmem>>, vector<8x128xf32>,
    %c640 = arith.constant 640 : index
    %c0_35 = arith.constant 0 : index
    %130 = vector.load %arg5[%c640, %c0_35] : memref<1024x128xf32, #tpu.memory_space<vmem>>, vector<8x128xf32>
    tpu.vector_store %arg5[%c640, %c0_35], %128 {strides = array<i32>} : memref<1024x128xf32, #tpu.memory_space<vmem>>, vector<8x128xf32>,
    %131 = arith.mulf %127, %1 : vector<8x128xf32>
    %132 = arith.mulf %128, %2 : vector<8x128xf32>
    %133 = arith.subf %131, %132 : vector<8x128xf32>
    %134 = arith.mulf %128, %1 : vector<8x128xf32>
    %135 = arith.mulf %127, %2 : vector<8x128xf32>
    %136 = arith.addf %134, %135 : vector<8x128xf32>
    %c136 = arith.constant 136 : index
    %c0_36 = arith.constant 0 : index
    %137 = vector.load %arg5[%c136, %c0_36] : memref<1024x128xf32, #tpu.memory_space<vmem>>, vector<8x128xf32>
    tpu.vector_store %arg5[%c136, %c0_36], %133 {strides = array<i32>} : memref<1024x128xf32, #tpu.memory_space<vmem>>, vector<8x128xf32>,
    %c648 = arith.constant 648 : index
    %c0_37 = arith.constant 0 : index
    %138 = vector.load %arg5[%c648, %c0_37] : memref<1024x128xf32, #tpu.memory_space<vmem>>, vector<8x128xf32>
    tpu.vector_store %arg5[%c648, %c0_37], %136 {strides = array<i32>} : memref<1024x128xf32, #tpu.memory_space<vmem>>, vector<8x128xf32>,
    %139 = arith.mulf %133, %1 : vector<8x128xf32>
    %140 = arith.mulf %136, %2 : vector<8x128xf32>
    %141 = arith.subf %139, %140 : vector<8x128xf32>
    %142 = arith.mulf %136, %1 : vector<8x128xf32>
    %143 = arith.mulf %133, %2 : vector<8x128xf32>
    %144 = arith.addf %142, %143 : vector<8x128xf32>
    %c144 = arith.constant 144 : index
    %c0_38 = arith.constant 0 : index
    %145 = vector.load %arg5[%c144, %c0_38] : memref<1024x128xf32, #tpu.memory_space<vmem>>, vector<8x128xf32>
    tpu.vector_store %arg5[%c144, %c0_38], %141 {strides = array<i32>} : memref<1024x128xf32, #tpu.memory_space<vmem>>, vector<8x128xf32>,
    %c656 = arith.constant 656 : index
    %c0_39 = arith.constant 0 : index
    %146 = vector.load %arg5[%c656, %c0_39] : memref<1024x128xf32, #tpu.memory_space<vmem>>, vector<8x128xf32>
    tpu.vector_store %arg5[%c656, %c0_39], %144 {strides = array<i32>} : memref<1024x128xf32, #tpu.memory_space<vmem>>, vector<8x128xf32>,
    %147 = arith.mulf %141, %1 : vector<8x128xf32>
    %148 = arith.mulf %144, %2 : vector<8x128xf32>
    %149 = arith.subf %147, %148 : vector<8x128xf32>
    %150 = arith.mulf %144, %1 : vector<8x128xf32>
    %151 = arith.mulf %141, %2 : vector<8x128xf32>
    %152 = arith.addf %150, %151 : vector<8x128xf32>
    %c152 = arith.constant 152 : index
    %c0_40 = arith.constant 0 : index
    %153 = vector.load %arg5[%c152, %c0_40] : memref<1024x128xf32, #tpu.memory_space<vmem>>, vector<8x128xf32>
    tpu.vector_store %arg5[%c152, %c0_40], %149 {strides = array<i32>} : memref<1024x128xf32, #tpu.memory_space<vmem>>, vector<8x128xf32>,
    %c664 = arith.constant 664 : index
    %c0_41 = arith.constant 0 : index
    %154 = vector.load %arg5[%c664, %c0_41] : memref<1024x128xf32, #tpu.memory_space<vmem>>, vector<8x128xf32>
    tpu.vector_store %arg5[%c664, %c0_41], %152 {strides = array<i32>} : memref<1024x128xf32, #tpu.memory_space<vmem>>, vector<8x128xf32>,
    %155 = arith.mulf %149, %1 : vector<8x128xf32>
    %156 = arith.mulf %152, %2 : vector<8x128xf32>
    %157 = arith.subf %155, %156 : vector<8x128xf32>
    %158 = arith.mulf %152, %1 : vector<8x128xf32>
    %159 = arith.mulf %149, %2 : vector<8x128xf32>
    %160 = arith.addf %158, %159 : vector<8x128xf32>
    %c160 = arith.constant 160 : index
    %c0_42 = arith.constant 0 : index
    %161 = vector.load %arg5[%c160, %c0_42] : memref<1024x128xf32, #tpu.memory_space<vmem>>, vector<8x128xf32>
    tpu.vector_store %arg5[%c160, %c0_42], %157 {strides = array<i32>} : memref<1024x128xf32, #tpu.memory_space<vmem>>, vector<8x128xf32>,
    %c672 = arith.constant 672 : index
    %c0_43 = arith.constant 0 : index
    %162 = vector.load %arg5[%c672, %c0_43] : memref<1024x128xf32, #tpu.memory_space<vmem>>, vector<8x128xf32>
    tpu.vector_store %arg5[%c672, %c0_43], %160 {strides = array<i32>} : memref<1024x128xf32, #tpu.memory_space<vmem>>, vector<8x128xf32>,
    %163 = arith.mulf %157, %1 : vector<8x128xf32>
    %164 = arith.mulf %160, %2 : vector<8x128xf32>
    %165 = arith.subf %163, %164 : vector<8x128xf32>
    %166 = arith.mulf %160, %1 : vector<8x128xf32>
    %167 = arith.mulf %157, %2 : vector<8x128xf32>
    %168 = arith.addf %166, %167 : vector<8x128xf32>
    %c168 = arith.constant 168 : index
    %c0_44 = arith.constant 0 : index
    %169 = vector.load %arg5[%c168, %c0_44] : memref<1024x128xf32, #tpu.memory_space<vmem>>, vector<8x128xf32>
    tpu.vector_store %arg5[%c168, %c0_44], %165 {strides = array<i32>} : memref<1024x128xf32, #tpu.memory_space<vmem>>, vector<8x128xf32>,
    %c680 = arith.constant 680 : index
    %c0_45 = arith.constant 0 : index
    %170 = vector.load %arg5[%c680, %c0_45] : memref<1024x128xf32, #tpu.memory_space<vmem>>, vector<8x128xf32>
    tpu.vector_store %arg5[%c680, %c0_45], %168 {strides = array<i32>} : memref<1024x128xf32, #tpu.memory_space<vmem>>, vector<8x128xf32>,
    %171 = arith.mulf %165, %1 : vector<8x128xf32>
    %172 = arith.mulf %168, %2 : vector<8x128xf32>
    %173 = arith.subf %171, %172 : vector<8x128xf32>
    %174 = arith.mulf %168, %1 : vector<8x128xf32>
    %175 = arith.mulf %165, %2 : vector<8x128xf32>
    %176 = arith.addf %174, %175 : vector<8x128xf32>
    %c176 = arith.constant 176 : index
    %c0_46 = arith.constant 0 : index
    %177 = vector.load %arg5[%c176, %c0_46] : memref<1024x128xf32, #tpu.memory_space<vmem>>, vector<8x128xf32>
    tpu.vector_store %arg5[%c176, %c0_46], %173 {strides = array<i32>} : memref<1024x128xf32, #tpu.memory_space<vmem>>, vector<8x128xf32>,
    %c688 = arith.constant 688 : index
    %c0_47 = arith.constant 0 : index
    %178 = vector.load %arg5[%c688, %c0_47] : memref<1024x128xf32, #tpu.memory_space<vmem>>, vector<8x128xf32>
    tpu.vector_store %arg5[%c688, %c0_47], %176 {strides = array<i32>} : memref<1024x128xf32, #tpu.memory_space<vmem>>, vector<8x128xf32>,
    %179 = arith.mulf %173, %1 : vector<8x128xf32>
    %180 = arith.mulf %176, %2 : vector<8x128xf32>
    %181 = arith.subf %179, %180 : vector<8x128xf32>
    %182 = arith.mulf %176, %1 : vector<8x128xf32>
    %183 = arith.mulf %173, %2 : vector<8x128xf32>
    %184 = arith.addf %182, %183 : vector<8x128xf32>
    %c184 = arith.constant 184 : index
    %c0_48 = arith.constant 0 : index
    %185 = vector.load %arg5[%c184, %c0_48] : memref<1024x128xf32, #tpu.memory_space<vmem>>, vector<8x128xf32>
    tpu.vector_store %arg5[%c184, %c0_48], %181 {strides = array<i32>} : memref<1024x128xf32, #tpu.memory_space<vmem>>, vector<8x128xf32>,
    %c696 = arith.constant 696 : index
    %c0_49 = arith.constant 0 : index
    %186 = vector.load %arg5[%c696, %c0_49] : memref<1024x128xf32, #tpu.memory_space<vmem>>, vector<8x128xf32>
    tpu.vector_store %arg5[%c696, %c0_49], %184 {strides = array<i32>} : memref<1024x128xf32, #tpu.memory_space<vmem>>, vector<8x128xf32>,
    %187 = arith.mulf %181, %1 : vector<8x128xf32>
    %188 = arith.mulf %184, %2 : vector<8x128xf32>
    %189 = arith.subf %187, %188 : vector<8x128xf32>
    %190 = arith.mulf %184, %1 : vector<8x128xf32>
    %191 = arith.mulf %181, %2 : vector<8x128xf32>
    %192 = arith.addf %190, %191 : vector<8x128xf32>
    %c192 = arith.constant 192 : index
    %c0_50 = arith.constant 0 : index
    %193 = vector.load %arg5[%c192, %c0_50] : memref<1024x128xf32, #tpu.memory_space<vmem>>, vector<8x128xf32>
    tpu.vector_store %arg5[%c192, %c0_50], %189 {strides = array<i32>} : memref<1024x128xf32, #tpu.memory_space<vmem>>, vector<8x128xf32>,
    %c704 = arith.constant 704 : index
    %c0_51 = arith.constant 0 : index
    %194 = vector.load %arg5[%c704, %c0_51] : memref<1024x128xf32, #tpu.memory_space<vmem>>, vector<8x128xf32>
    tpu.vector_store %arg5[%c704, %c0_51], %192 {strides = array<i32>} : memref<1024x128xf32, #tpu.memory_space<vmem>>, vector<8x128xf32>,
    %195 = arith.mulf %189, %1 : vector<8x128xf32>
    %196 = arith.mulf %192, %2 : vector<8x128xf32>
    %197 = arith.subf %195, %196 : vector<8x128xf32>
    %198 = arith.mulf %192, %1 : vector<8x128xf32>
    %199 = arith.mulf %189, %2 : vector<8x128xf32>
    %200 = arith.addf %198, %199 : vector<8x128xf32>
    %c200 = arith.constant 200 : index
    %c0_52 = arith.constant 0 : index
    %201 = vector.load %arg5[%c200, %c0_52] : memref<1024x128xf32, #tpu.memory_space<vmem>>, vector<8x128xf32>
    tpu.vector_store %arg5[%c200, %c0_52], %197 {strides = array<i32>} : memref<1024x128xf32, #tpu.memory_space<vmem>>, vector<8x128xf32>,
    %c712 = arith.constant 712 : index
    %c0_53 = arith.constant 0 : index
    %202 = vector.load %arg5[%c712, %c0_53] : memref<1024x128xf32, #tpu.memory_space<vmem>>, vector<8x128xf32>
    tpu.vector_store %arg5[%c712, %c0_53], %200 {strides = array<i32>} : memref<1024x128xf32, #tpu.memory_space<vmem>>, vector<8x128xf32>,
    %203 = arith.mulf %197, %1 : vector<8x128xf32>
    %204 = arith.mulf %200, %2 : vector<8x128xf32>
    %205 = arith.subf %203, %204 : vector<8x128xf32>
    %206 = arith.mulf %200, %1 : vector<8x128xf32>
    %207 = arith.mulf %197, %2 : vector<8x128xf32>
    %208 = arith.addf %206, %207 : vector<8x128xf32>
    %c208 = arith.constant 208 : index
    %c0_54 = arith.constant 0 : index
    %209 = vector.load %arg5[%c208, %c0_54] : memref<1024x128xf32, #tpu.memory_space<vmem>>, vector<8x128xf32>
    tpu.vector_store %arg5[%c208, %c0_54], %205 {strides = array<i32>} : memref<1024x128xf32, #tpu.memory_space<vmem>>, vector<8x128xf32>,
    %c720 = arith.constant 720 : index
    %c0_55 = arith.constant 0 : index
    %210 = vector.load %arg5[%c720, %c0_55] : memref<1024x128xf32, #tpu.memory_space<vmem>>, vector<8x128xf32>
    tpu.vector_store %arg5[%c720, %c0_55], %208 {strides = array<i32>} : memref<1024x128xf32, #tpu.memory_space<vmem>>, vector<8x128xf32>,
    %211 = arith.mulf %205, %1 : vector<8x128xf32>
    %212 = arith.mulf %208, %2 : vector<8x128xf32>
    %213 = arith.subf %211, %212 : vector<8x128xf32>
    %214 = arith.mulf %208, %1 : vector<8x128xf32>
    %215 = arith.mulf %205, %2 : vector<8x128xf32>
    %216 = arith.addf %214, %215 : vector<8x128xf32>
    %c216 = arith.constant 216 : index
    %c0_56 = arith.constant 0 : index
    %217 = vector.load %arg5[%c216, %c0_56] : memref<1024x128xf32, #tpu.memory_space<vmem>>, vector<8x128xf32>
    tpu.vector_store %arg5[%c216, %c0_56], %213 {strides = array<i32>} : memref<1024x128xf32, #tpu.memory_space<vmem>>, vector<8x128xf32>,
    %c728 = arith.constant 728 : index
    %c0_57 = arith.constant 0 : index
    %218 = vector.load %arg5[%c728, %c0_57] : memref<1024x128xf32, #tpu.memory_space<vmem>>, vector<8x128xf32>
    tpu.vector_store %arg5[%c728, %c0_57], %216 {strides = array<i32>} : memref<1024x128xf32, #tpu.memory_space<vmem>>, vector<8x128xf32>,
    %219 = arith.mulf %213, %1 : vector<8x128xf32>
    %220 = arith.mulf %216, %2 : vector<8x128xf32>
    %221 = arith.subf %219, %220 : vector<8x128xf32>
    %222 = arith.mulf %216, %1 : vector<8x128xf32>
    %223 = arith.mulf %213, %2 : vector<8x128xf32>
    %224 = arith.addf %222, %223 : vector<8x128xf32>
    %c224 = arith.constant 224 : index
    %c0_58 = arith.constant 0 : index
    %225 = vector.load %arg5[%c224, %c0_58] : memref<1024x128xf32, #tpu.memory_space<vmem>>, vector<8x128xf32>
    tpu.vector_store %arg5[%c224, %c0_58], %221 {strides = array<i32>} : memref<1024x128xf32, #tpu.memory_space<vmem>>, vector<8x128xf32>,
    %c736 = arith.constant 736 : index
    %c0_59 = arith.constant 0 : index
    %226 = vector.load %arg5[%c736, %c0_59] : memref<1024x128xf32, #tpu.memory_space<vmem>>, vector<8x128xf32>
    tpu.vector_store %arg5[%c736, %c0_59], %224 {strides = array<i32>} : memref<1024x128xf32, #tpu.memory_space<vmem>>, vector<8x128xf32>,
    %227 = arith.mulf %221, %1 : vector<8x128xf32>
    %228 = arith.mulf %224, %2 : vector<8x128xf32>
    %229 = arith.subf %227, %228 : vector<8x128xf32>
    %230 = arith.mulf %224, %1 : vector<8x128xf32>
    %231 = arith.mulf %221, %2 : vector<8x128xf32>
    %232 = arith.addf %230, %231 : vector<8x128xf32>
    %c232 = arith.constant 232 : index
    %c0_60 = arith.constant 0 : index
    %233 = vector.load %arg5[%c232, %c0_60] : memref<1024x128xf32, #tpu.memory_space<vmem>>, vector<8x128xf32>
    tpu.vector_store %arg5[%c232, %c0_60], %229 {strides = array<i32>} : memref<1024x128xf32, #tpu.memory_space<vmem>>, vector<8x128xf32>,
    %c744 = arith.constant 744 : index
    %c0_61 = arith.constant 0 : index
    %234 = vector.load %arg5[%c744, %c0_61] : memref<1024x128xf32, #tpu.memory_space<vmem>>, vector<8x128xf32>
    tpu.vector_store %arg5[%c744, %c0_61], %232 {strides = array<i32>} : memref<1024x128xf32, #tpu.memory_space<vmem>>, vector<8x128xf32>,
    %235 = arith.mulf %229, %1 : vector<8x128xf32>
    %236 = arith.mulf %232, %2 : vector<8x128xf32>
    %237 = arith.subf %235, %236 : vector<8x128xf32>
    %238 = arith.mulf %232, %1 : vector<8x128xf32>
    %239 = arith.mulf %229, %2 : vector<8x128xf32>
    %240 = arith.addf %238, %239 : vector<8x128xf32>
    %c240 = arith.constant 240 : index
    %c0_62 = arith.constant 0 : index
    %241 = vector.load %arg5[%c240, %c0_62] : memref<1024x128xf32, #tpu.memory_space<vmem>>, vector<8x128xf32>
    tpu.vector_store %arg5[%c240, %c0_62], %237 {strides = array<i32>} : memref<1024x128xf32, #tpu.memory_space<vmem>>, vector<8x128xf32>,
    %c752 = arith.constant 752 : index
    %c0_63 = arith.constant 0 : index
    %242 = vector.load %arg5[%c752, %c0_63] : memref<1024x128xf32, #tpu.memory_space<vmem>>, vector<8x128xf32>
    tpu.vector_store %arg5[%c752, %c0_63], %240 {strides = array<i32>} : memref<1024x128xf32, #tpu.memory_space<vmem>>, vector<8x128xf32>,
    %243 = arith.mulf %237, %1 : vector<8x128xf32>
    %244 = arith.mulf %240, %2 : vector<8x128xf32>
    %245 = arith.subf %243, %244 : vector<8x128xf32>
    %246 = arith.mulf %240, %1 : vector<8x128xf32>
    %247 = arith.mulf %237, %2 : vector<8x128xf32>
    %248 = arith.addf %246, %247 : vector<8x128xf32>
    %c248 = arith.constant 248 : index
    %c0_64 = arith.constant 0 : index
    %249 = vector.load %arg5[%c248, %c0_64] : memref<1024x128xf32, #tpu.memory_space<vmem>>, vector<8x128xf32>
    tpu.vector_store %arg5[%c248, %c0_64], %245 {strides = array<i32>} : memref<1024x128xf32, #tpu.memory_space<vmem>>, vector<8x128xf32>,
    %c760 = arith.constant 760 : index
    %c0_65 = arith.constant 0 : index
    %250 = vector.load %arg5[%c760, %c0_65] : memref<1024x128xf32, #tpu.memory_space<vmem>>, vector<8x128xf32>
    tpu.vector_store %arg5[%c760, %c0_65], %248 {strides = array<i32>} : memref<1024x128xf32, #tpu.memory_space<vmem>>, vector<8x128xf32>,
    %cst_66 = arith.constant 3.300000e+01 : f32
    %251 = vector.broadcast %cst_66 : f32 to vector<8x128xf32>
    %252 = arith.mulf %0, %251 : vector<8x128xf32>
    %253 = math.cos %252 : vector<8x128xf32>
    %254 = math.sin %252 : vector<8x128xf32>
    %c256 = arith.constant 256 : index
    %c0_67 = arith.constant 0 : index
    %255 = vector.load %arg5[%c256, %c0_67] : memref<1024x128xf32, #tpu.memory_space<vmem>>, vector<8x128xf32>
    tpu.vector_store %arg5[%c256, %c0_67], %253 {strides = array<i32>} : memref<1024x128xf32, #tpu.memory_space<vmem>>, vector<8x128xf32>,
    %c768 = arith.constant 768 : index
    %c0_68 = arith.constant 0 : index
    %256 = vector.load %arg5[%c768, %c0_68] : memref<1024x128xf32, #tpu.memory_space<vmem>>, vector<8x128xf32>
    tpu.vector_store %arg5[%c768, %c0_68], %254 {strides = array<i32>} : memref<1024x128xf32, #tpu.memory_space<vmem>>, vector<8x128xf32>,
    %257 = arith.mulf %253, %1 : vector<8x128xf32>
    %258 = arith.mulf %254, %2 : vector<8x128xf32>
    %259 = arith.subf %257, %258 : vector<8x128xf32>
    %260 = arith.mulf %254, %1 : vector<8x128xf32>
    %261 = arith.mulf %253, %2 : vector<8x128xf32>
    %262 = arith.addf %260, %261 : vector<8x128xf32>
    %c264 = arith.constant 264 : index
    %c0_69 = arith.constant 0 : index
    %263 = vector.load %arg5[%c264, %c0_69] : memref<1024x128xf32, #tpu.memory_space<vmem>>, vector<8x128xf32>
    tpu.vector_store %arg5[%c264, %c0_69], %259 {strides = array<i32>} : memref<1024x128xf32, #tpu.memory_space<vmem>>, vector<8x128xf32>,
    %c776 = arith.constant 776 : index
    %c0_70 = arith.constant 0 : index
    %264 = vector.load %arg5[%c776, %c0_70] : memref<1024x128xf32, #tpu.memory_space<vmem>>, vector<8x128xf32>
    tpu.vector_store %arg5[%c776, %c0_70], %262 {strides = array<i32>} : memref<1024x128xf32, #tpu.memory_space<vmem>>, vector<8x128xf32>,
    %265 = arith.mulf %259, %1 : vector<8x128xf32>
    %266 = arith.mulf %262, %2 : vector<8x128xf32>
    %267 = arith.subf %265, %266 : vector<8x128xf32>
    %268 = arith.mulf %262, %1 : vector<8x128xf32>
    %269 = arith.mulf %259, %2 : vector<8x128xf32>
    %270 = arith.addf %268, %269 : vector<8x128xf32>
    %c272 = arith.constant 272 : index
    %c0_71 = arith.constant 0 : index
    %271 = vector.load %arg5[%c272, %c0_71] : memref<1024x128xf32, #tpu.memory_space<vmem>>, vector<8x128xf32>
    tpu.vector_store %arg5[%c272, %c0_71], %267 {strides = array<i32>} : memref<1024x128xf32, #tpu.memory_space<vmem>>, vector<8x128xf32>,
    %c784 = arith.constant 784 : index
    %c0_72 = arith.constant 0 : index
    %272 = vector.load %arg5[%c784, %c0_72] : memref<1024x128xf32, #tpu.memory_space<vmem>>, vector<8x128xf32>
    tpu.vector_store %arg5[%c784, %c0_72], %270 {strides = array<i32>} : memref<1024x128xf32, #tpu.memory_space<vmem>>, vector<8x128xf32>,
    %273 = arith.mulf %267, %1 : vector<8x128xf32>
    %274 = arith.mulf %270, %2 : vector<8x128xf32>
    %275 = arith.subf %273, %274 : vector<8x128xf32>
    %276 = arith.mulf %270, %1 : vector<8x128xf32>
    %277 = arith.mulf %267, %2 : vector<8x128xf32>
    %278 = arith.addf %276, %277 : vector<8x128xf32>
    %c280 = arith.constant 280 : index
    %c0_73 = arith.constant 0 : index
    %279 = vector.load %arg5[%c280, %c0_73] : memref<1024x128xf32, #tpu.memory_space<vmem>>, vector<8x128xf32>
    tpu.vector_store %arg5[%c280, %c0_73], %275 {strides = array<i32>} : memref<1024x128xf32, #tpu.memory_space<vmem>>, vector<8x128xf32>,
    %c792 = arith.constant 792 : index
    %c0_74 = arith.constant 0 : index
    %280 = vector.load %arg5[%c792, %c0_74] : memref<1024x128xf32, #tpu.memory_space<vmem>>, vector<8x128xf32>
    tpu.vector_store %arg5[%c792, %c0_74], %278 {strides = array<i32>} : memref<1024x128xf32, #tpu.memory_space<vmem>>, vector<8x128xf32>,
    %281 = arith.mulf %275, %1 : vector<8x128xf32>
    %282 = arith.mulf %278, %2 : vector<8x128xf32>
    %283 = arith.subf %281, %282 : vector<8x128xf32>
    %284 = arith.mulf %278, %1 : vector<8x128xf32>
    %285 = arith.mulf %275, %2 : vector<8x128xf32>
    %286 = arith.addf %284, %285 : vector<8x128xf32>
    %c288 = arith.constant 288 : index
    %c0_75 = arith.constant 0 : index
    %287 = vector.load %arg5[%c288, %c0_75] : memref<1024x128xf32, #tpu.memory_space<vmem>>, vector<8x128xf32>
    tpu.vector_store %arg5[%c288, %c0_75], %283 {strides = array<i32>} : memref<1024x128xf32, #tpu.memory_space<vmem>>, vector<8x128xf32>,
    %c800 = arith.constant 800 : index
    %c0_76 = arith.constant 0 : index
    %288 = vector.load %arg5[%c800, %c0_76] : memref<1024x128xf32, #tpu.memory_space<vmem>>, vector<8x128xf32>
    tpu.vector_store %arg5[%c800, %c0_76], %286 {strides = array<i32>} : memref<1024x128xf32, #tpu.memory_space<vmem>>, vector<8x128xf32>,
    %289 = arith.mulf %283, %1 : vector<8x128xf32>
    %290 = arith.mulf %286, %2 : vector<8x128xf32>
    %291 = arith.subf %289, %290 : vector<8x128xf32>
    %292 = arith.mulf %286, %1 : vector<8x128xf32>
    %293 = arith.mulf %283, %2 : vector<8x128xf32>
    %294 = arith.addf %292, %293 : vector<8x128xf32>
    %c296 = arith.constant 296 : index
    %c0_77 = arith.constant 0 : index
    %295 = vector.load %arg5[%c296, %c0_77] : memref<1024x128xf32, #tpu.memory_space<vmem>>, vector<8x128xf32>
    tpu.vector_store %arg5[%c296, %c0_77], %291 {strides = array<i32>} : memref<1024x128xf32, #tpu.memory_space<vmem>>, vector<8x128xf32>,
    %c808 = arith.constant 808 : index
    %c0_78 = arith.constant 0 : index
    %296 = vector.load %arg5[%c808, %c0_78] : memref<1024x128xf32, #tpu.memory_space<vmem>>, vector<8x128xf32>
    tpu.vector_store %arg5[%c808, %c0_78], %294 {strides = array<i32>} : memref<1024x128xf32, #tpu.memory_space<vmem>>, vector<8x128xf32>,
    %297 = arith.mulf %291, %1 : vector<8x128xf32>
    %298 = arith.mulf %294, %2 : vector<8x128xf32>
    %299 = arith.subf %297, %298 : vector<8x128xf32>
    %300 = arith.mulf %294, %1 : vector<8x128xf32>
    %301 = arith.mulf %291, %2 : vector<8x128xf32>
    %302 = arith.addf %300, %301 : vector<8x128xf32>
    %c304 = arith.constant 304 : index
    %c0_79 = arith.constant 0 : index
    %303 = vector.load %arg5[%c304, %c0_79] : memref<1024x128xf32, #tpu.memory_space<vmem>>, vector<8x128xf32>
    tpu.vector_store %arg5[%c304, %c0_79], %299 {strides = array<i32>} : memref<1024x128xf32, #tpu.memory_space<vmem>>, vector<8x128xf32>,
    %c816 = arith.constant 816 : index
    %c0_80 = arith.constant 0 : index
    %304 = vector.load %arg5[%c816, %c0_80] : memref<1024x128xf32, #tpu.memory_space<vmem>>, vector<8x128xf32>
    tpu.vector_store %arg5[%c816, %c0_80], %302 {strides = array<i32>} : memref<1024x128xf32, #tpu.memory_space<vmem>>, vector<8x128xf32>,
    %305 = arith.mulf %299, %1 : vector<8x128xf32>
    %306 = arith.mulf %302, %2 : vector<8x128xf32>
    %307 = arith.subf %305, %306 : vector<8x128xf32>
    %308 = arith.mulf %302, %1 : vector<8x128xf32>
    %309 = arith.mulf %299, %2 : vector<8x128xf32>
    %310 = arith.addf %308, %309 : vector<8x128xf32>
    %c312 = arith.constant 312 : index
    %c0_81 = arith.constant 0 : index
    %311 = vector.load %arg5[%c312, %c0_81] : memref<1024x128xf32, #tpu.memory_space<vmem>>, vector<8x128xf32>
    tpu.vector_store %arg5[%c312, %c0_81], %307 {strides = array<i32>} : memref<1024x128xf32, #tpu.memory_space<vmem>>, vector<8x128xf32>,
    %c824 = arith.constant 824 : index
    %c0_82 = arith.constant 0 : index
    %312 = vector.load %arg5[%c824, %c0_82] : memref<1024x128xf32, #tpu.memory_space<vmem>>, vector<8x128xf32>
    tpu.vector_store %arg5[%c824, %c0_82], %310 {strides = array<i32>} : memref<1024x128xf32, #tpu.memory_space<vmem>>, vector<8x128xf32>,
    %313 = arith.mulf %307, %1 : vector<8x128xf32>
    %314 = arith.mulf %310, %2 : vector<8x128xf32>
    %315 = arith.subf %313, %314 : vector<8x128xf32>
    %316 = arith.mulf %310, %1 : vector<8x128xf32>
    %317 = arith.mulf %307, %2 : vector<8x128xf32>
    %318 = arith.addf %316, %317 : vector<8x128xf32>
    %c320 = arith.constant 320 : index
    %c0_83 = arith.constant 0 : index
    %319 = vector.load %arg5[%c320, %c0_83] : memref<1024x128xf32, #tpu.memory_space<vmem>>, vector<8x128xf32>
    tpu.vector_store %arg5[%c320, %c0_83], %315 {strides = array<i32>} : memref<1024x128xf32, #tpu.memory_space<vmem>>, vector<8x128xf32>,
    %c832 = arith.constant 832 : index
    %c0_84 = arith.constant 0 : index
    %320 = vector.load %arg5[%c832, %c0_84] : memref<1024x128xf32, #tpu.memory_space<vmem>>, vector<8x128xf32>
    tpu.vector_store %arg5[%c832, %c0_84], %318 {strides = array<i32>} : memref<1024x128xf32, #tpu.memory_space<vmem>>, vector<8x128xf32>,
    %321 = arith.mulf %315, %1 : vector<8x128xf32>
    %322 = arith.mulf %318, %2 : vector<8x128xf32>
    %323 = arith.subf %321, %322 : vector<8x128xf32>
    %324 = arith.mulf %318, %1 : vector<8x128xf32>
    %325 = arith.mulf %315, %2 : vector<8x128xf32>
    %326 = arith.addf %324, %325 : vector<8x128xf32>
    %c328 = arith.constant 328 : index
    %c0_85 = arith.constant 0 : index
    %327 = vector.load %arg5[%c328, %c0_85] : memref<1024x128xf32, #tpu.memory_space<vmem>>, vector<8x128xf32>
    tpu.vector_store %arg5[%c328, %c0_85], %323 {strides = array<i32>} : memref<1024x128xf32, #tpu.memory_space<vmem>>, vector<8x128xf32>,
    %c840 = arith.constant 840 : index
    %c0_86 = arith.constant 0 : index
    %328 = vector.load %arg5[%c840, %c0_86] : memref<1024x128xf32, #tpu.memory_space<vmem>>, vector<8x128xf32>
    tpu.vector_store %arg5[%c840, %c0_86], %326 {strides = array<i32>} : memref<1024x128xf32, #tpu.memory_space<vmem>>, vector<8x128xf32>,
    %329 = arith.mulf %323, %1 : vector<8x128xf32>
    %330 = arith.mulf %326, %2 : vector<8x128xf32>
    %331 = arith.subf %329, %330 : vector<8x128xf32>
    %332 = arith.mulf %326, %1 : vector<8x128xf32>
    %333 = arith.mulf %323, %2 : vector<8x128xf32>
    %334 = arith.addf %332, %333 : vector<8x128xf32>
    %c336 = arith.constant 336 : index
    %c0_87 = arith.constant 0 : index
    %335 = vector.load %arg5[%c336, %c0_87] : memref<1024x128xf32, #tpu.memory_space<vmem>>, vector<8x128xf32>
    tpu.vector_store %arg5[%c336, %c0_87], %331 {strides = array<i32>} : memref<1024x128xf32, #tpu.memory_space<vmem>>, vector<8x128xf32>,
    %c848 = arith.constant 848 : index
    %c0_88 = arith.constant 0 : index
    %336 = vector.load %arg5[%c848, %c0_88] : memref<1024x128xf32, #tpu.memory_space<vmem>>, vector<8x128xf32>
    tpu.vector_store %arg5[%c848, %c0_88], %334 {strides = array<i32>} : memref<1024x128xf32, #tpu.memory_space<vmem>>, vector<8x128xf32>,
    %337 = arith.mulf %331, %1 : vector<8x128xf32>
    %338 = arith.mulf %334, %2 : vector<8x128xf32>
    %339 = arith.subf %337, %338 : vector<8x128xf32>
    %340 = arith.mulf %334, %1 : vector<8x128xf32>
    %341 = arith.mulf %331, %2 : vector<8x128xf32>
    %342 = arith.addf %340, %341 : vector<8x128xf32>
    %c344 = arith.constant 344 : index
    %c0_89 = arith.constant 0 : index
    %343 = vector.load %arg5[%c344, %c0_89] : memref<1024x128xf32, #tpu.memory_space<vmem>>, vector<8x128xf32>
    tpu.vector_store %arg5[%c344, %c0_89], %339 {strides = array<i32>} : memref<1024x128xf32, #tpu.memory_space<vmem>>, vector<8x128xf32>,
    %c856 = arith.constant 856 : index
    %c0_90 = arith.constant 0 : index
    %344 = vector.load %arg5[%c856, %c0_90] : memref<1024x128xf32, #tpu.memory_space<vmem>>, vector<8x128xf32>
    tpu.vector_store %arg5[%c856, %c0_90], %342 {strides = array<i32>} : memref<1024x128xf32, #tpu.memory_space<vmem>>, vector<8x128xf32>,
    %345 = arith.mulf %339, %1 : vector<8x128xf32>
    %346 = arith.mulf %342, %2 : vector<8x128xf32>
    %347 = arith.subf %345, %346 : vector<8x128xf32>
    %348 = arith.mulf %342, %1 : vector<8x128xf32>
    %349 = arith.mulf %339, %2 : vector<8x128xf32>
    %350 = arith.addf %348, %349 : vector<8x128xf32>
    %c352 = arith.constant 352 : index
    %c0_91 = arith.constant 0 : index
    %351 = vector.load %arg5[%c352, %c0_91] : memref<1024x128xf32, #tpu.memory_space<vmem>>, vector<8x128xf32>
    tpu.vector_store %arg5[%c352, %c0_91], %347 {strides = array<i32>} : memref<1024x128xf32, #tpu.memory_space<vmem>>, vector<8x128xf32>,
    %c864 = arith.constant 864 : index
    %c0_92 = arith.constant 0 : index
    %352 = vector.load %arg5[%c864, %c0_92] : memref<1024x128xf32, #tpu.memory_space<vmem>>, vector<8x128xf32>
    tpu.vector_store %arg5[%c864, %c0_92], %350 {strides = array<i32>} : memref<1024x128xf32, #tpu.memory_space<vmem>>, vector<8x128xf32>,
    %353 = arith.mulf %347, %1 : vector<8x128xf32>
    %354 = arith.mulf %350, %2 : vector<8x128xf32>
    %355 = arith.subf %353, %354 : vector<8x128xf32>
    %356 = arith.mulf %350, %1 : vector<8x128xf32>
    %357 = arith.mulf %347, %2 : vector<8x128xf32>
    %358 = arith.addf %356, %357 : vector<8x128xf32>
    %c360 = arith.constant 360 : index
    %c0_93 = arith.constant 0 : index
    %359 = vector.load %arg5[%c360, %c0_93] : memref<1024x128xf32, #tpu.memory_space<vmem>>, vector<8x128xf32>
    tpu.vector_store %arg5[%c360, %c0_93], %355 {strides = array<i32>} : memref<1024x128xf32, #tpu.memory_space<vmem>>, vector<8x128xf32>,
    %c872 = arith.constant 872 : index
    %c0_94 = arith.constant 0 : index
    %360 = vector.load %arg5[%c872, %c0_94] : memref<1024x128xf32, #tpu.memory_space<vmem>>, vector<8x128xf32>
    tpu.vector_store %arg5[%c872, %c0_94], %358 {strides = array<i32>} : memref<1024x128xf32, #tpu.memory_space<vmem>>, vector<8x128xf32>,
    %361 = arith.mulf %355, %1 : vector<8x128xf32>
    %362 = arith.mulf %358, %2 : vector<8x128xf32>
    %363 = arith.subf %361, %362 : vector<8x128xf32>
    %364 = arith.mulf %358, %1 : vector<8x128xf32>
    %365 = arith.mulf %355, %2 : vector<8x128xf32>
    %366 = arith.addf %364, %365 : vector<8x128xf32>
    %c368 = arith.constant 368 : index
    %c0_95 = arith.constant 0 : index
    %367 = vector.load %arg5[%c368, %c0_95] : memref<1024x128xf32, #tpu.memory_space<vmem>>, vector<8x128xf32>
    tpu.vector_store %arg5[%c368, %c0_95], %363 {strides = array<i32>} : memref<1024x128xf32, #tpu.memory_space<vmem>>, vector<8x128xf32>,
    %c880 = arith.constant 880 : index
    %c0_96 = arith.constant 0 : index
    %368 = vector.load %arg5[%c880, %c0_96] : memref<1024x128xf32, #tpu.memory_space<vmem>>, vector<8x128xf32>
    tpu.vector_store %arg5[%c880, %c0_96], %366 {strides = array<i32>} : memref<1024x128xf32, #tpu.memory_space<vmem>>, vector<8x128xf32>,
    %369 = arith.mulf %363, %1 : vector<8x128xf32>
    %370 = arith.mulf %366, %2 : vector<8x128xf32>
    %371 = arith.subf %369, %370 : vector<8x128xf32>
    %372 = arith.mulf %366, %1 : vector<8x128xf32>
    %373 = arith.mulf %363, %2 : vector<8x128xf32>
    %374 = arith.addf %372, %373 : vector<8x128xf32>
    %c376 = arith.constant 376 : index
    %c0_97 = arith.constant 0 : index
    %375 = vector.load %arg5[%c376, %c0_97] : memref<1024x128xf32, #tpu.memory_space<vmem>>, vector<8x128xf32>
    tpu.vector_store %arg5[%c376, %c0_97], %371 {strides = array<i32>} : memref<1024x128xf32, #tpu.memory_space<vmem>>, vector<8x128xf32>,
    %c888 = arith.constant 888 : index
    %c0_98 = arith.constant 0 : index
    %376 = vector.load %arg5[%c888, %c0_98] : memref<1024x128xf32, #tpu.memory_space<vmem>>, vector<8x128xf32>
    tpu.vector_store %arg5[%c888, %c0_98], %374 {strides = array<i32>} : memref<1024x128xf32, #tpu.memory_space<vmem>>, vector<8x128xf32>,
    %cst_99 = arith.constant 4.900000e+01 : f32
    %377 = vector.broadcast %cst_99 : f32 to vector<8x128xf32>
    %378 = arith.mulf %0, %377 : vector<8x128xf32>
    %379 = math.cos %378 : vector<8x128xf32>
    %380 = math.sin %378 : vector<8x128xf32>
    %c384 = arith.constant 384 : index
    %c0_100 = arith.constant 0 : index
    %381 = vector.load %arg5[%c384, %c0_100] : memref<1024x128xf32, #tpu.memory_space<vmem>>, vector<8x128xf32>
    tpu.vector_store %arg5[%c384, %c0_100], %379 {strides = array<i32>} : memref<1024x128xf32, #tpu.memory_space<vmem>>, vector<8x128xf32>,
    %c896 = arith.constant 896 : index
    %c0_101 = arith.constant 0 : index
    %382 = vector.load %arg5[%c896, %c0_101] : memref<1024x128xf32, #tpu.memory_space<vmem>>, vector<8x128xf32>
    tpu.vector_store %arg5[%c896, %c0_101], %380 {strides = array<i32>} : memref<1024x128xf32, #tpu.memory_space<vmem>>, vector<8x128xf32>,
    %383 = arith.mulf %379, %1 : vector<8x128xf32>
    %384 = arith.mulf %380, %2 : vector<8x128xf32>
    %385 = arith.subf %383, %384 : vector<8x128xf32>
    %386 = arith.mulf %380, %1 : vector<8x128xf32>
    %387 = arith.mulf %379, %2 : vector<8x128xf32>
    %388 = arith.addf %386, %387 : vector<8x128xf32>
    %c392 = arith.constant 392 : index
    %c0_102 = arith.constant 0 : index
    %389 = vector.load %arg5[%c392, %c0_102] : memref<1024x128xf32, #tpu.memory_space<vmem>>, vector<8x128xf32>
    tpu.vector_store %arg5[%c392, %c0_102], %385 {strides = array<i32>} : memref<1024x128xf32, #tpu.memory_space<vmem>>, vector<8x128xf32>,
    %c904 = arith.constant 904 : index
    %c0_103 = arith.constant 0 : index
    %390 = vector.load %arg5[%c904, %c0_103] : memref<1024x128xf32, #tpu.memory_space<vmem>>, vector<8x128xf32>
    tpu.vector_store %arg5[%c904, %c0_103], %388 {strides = array<i32>} : memref<1024x128xf32, #tpu.memory_space<vmem>>, vector<8x128xf32>,
    %391 = arith.mulf %385, %1 : vector<8x128xf32>
    %392 = arith.mulf %388, %2 : vector<8x128xf32>
    %393 = arith.subf %391, %392 : vector<8x128xf32>
    %394 = arith.mulf %388, %1 : vector<8x128xf32>
    %395 = arith.mulf %385, %2 : vector<8x128xf32>
    %396 = arith.addf %394, %395 : vector<8x128xf32>
    %c400 = arith.constant 400 : index
    %c0_104 = arith.constant 0 : index
    %397 = vector.load %arg5[%c400, %c0_104] : memref<1024x128xf32, #tpu.memory_space<vmem>>, vector<8x128xf32>
    tpu.vector_store %arg5[%c400, %c0_104], %393 {strides = array<i32>} : memref<1024x128xf32, #tpu.memory_space<vmem>>, vector<8x128xf32>,
    %c912 = arith.constant 912 : index
    %c0_105 = arith.constant 0 : index
    %398 = vector.load %arg5[%c912, %c0_105] : memref<1024x128xf32, #tpu.memory_space<vmem>>, vector<8x128xf32>
    tpu.vector_store %arg5[%c912, %c0_105], %396 {strides = array<i32>} : memref<1024x128xf32, #tpu.memory_space<vmem>>, vector<8x128xf32>,
    %399 = arith.mulf %393, %1 : vector<8x128xf32>
    %400 = arith.mulf %396, %2 : vector<8x128xf32>
    %401 = arith.subf %399, %400 : vector<8x128xf32>
    %402 = arith.mulf %396, %1 : vector<8x128xf32>
    %403 = arith.mulf %393, %2 : vector<8x128xf32>
    %404 = arith.addf %402, %403 : vector<8x128xf32>
    %c408 = arith.constant 408 : index
    %c0_106 = arith.constant 0 : index
    %405 = vector.load %arg5[%c408, %c0_106] : memref<1024x128xf32, #tpu.memory_space<vmem>>, vector<8x128xf32>
    tpu.vector_store %arg5[%c408, %c0_106], %401 {strides = array<i32>} : memref<1024x128xf32, #tpu.memory_space<vmem>>, vector<8x128xf32>,
    %c920 = arith.constant 920 : index
    %c0_107 = arith.constant 0 : index
    %406 = vector.load %arg5[%c920, %c0_107] : memref<1024x128xf32, #tpu.memory_space<vmem>>, vector<8x128xf32>
    tpu.vector_store %arg5[%c920, %c0_107], %404 {strides = array<i32>} : memref<1024x128xf32, #tpu.memory_space<vmem>>, vector<8x128xf32>,
    %407 = arith.mulf %401, %1 : vector<8x128xf32>
    %408 = arith.mulf %404, %2 : vector<8x128xf32>
    %409 = arith.subf %407, %408 : vector<8x128xf32>
    %410 = arith.mulf %404, %1 : vector<8x128xf32>
    %411 = arith.mulf %401, %2 : vector<8x128xf32>
    %412 = arith.addf %410, %411 : vector<8x128xf32>
    %c416 = arith.constant 416 : index
    %c0_108 = arith.constant 0 : index
    %413 = vector.load %arg5[%c416, %c0_108] : memref<1024x128xf32, #tpu.memory_space<vmem>>, vector<8x128xf32>
    tpu.vector_store %arg5[%c416, %c0_108], %409 {strides = array<i32>} : memref<1024x128xf32, #tpu.memory_space<vmem>>, vector<8x128xf32>,
    %c928 = arith.constant 928 : index
    %c0_109 = arith.constant 0 : index
    %414 = vector.load %arg5[%c928, %c0_109] : memref<1024x128xf32, #tpu.memory_space<vmem>>, vector<8x128xf32>
    tpu.vector_store %arg5[%c928, %c0_109], %412 {strides = array<i32>} : memref<1024x128xf32, #tpu.memory_space<vmem>>, vector<8x128xf32>,
    %415 = arith.mulf %409, %1 : vector<8x128xf32>
    %416 = arith.mulf %412, %2 : vector<8x128xf32>
    %417 = arith.subf %415, %416 : vector<8x128xf32>
    %418 = arith.mulf %412, %1 : vector<8x128xf32>
    %419 = arith.mulf %409, %2 : vector<8x128xf32>
    %420 = arith.addf %418, %419 : vector<8x128xf32>
    %c424 = arith.constant 424 : index
    %c0_110 = arith.constant 0 : index
    %421 = vector.load %arg5[%c424, %c0_110] : memref<1024x128xf32, #tpu.memory_space<vmem>>, vector<8x128xf32>
    tpu.vector_store %arg5[%c424, %c0_110], %417 {strides = array<i32>} : memref<1024x128xf32, #tpu.memory_space<vmem>>, vector<8x128xf32>,
    %c936 = arith.constant 936 : index
    %c0_111 = arith.constant 0 : index
    %422 = vector.load %arg5[%c936, %c0_111] : memref<1024x128xf32, #tpu.memory_space<vmem>>, vector<8x128xf32>
    tpu.vector_store %arg5[%c936, %c0_111], %420 {strides = array<i32>} : memref<1024x128xf32, #tpu.memory_space<vmem>>, vector<8x128xf32>,
    %423 = arith.mulf %417, %1 : vector<8x128xf32>
    %424 = arith.mulf %420, %2 : vector<8x128xf32>
    %425 = arith.subf %423, %424 : vector<8x128xf32>
    %426 = arith.mulf %420, %1 : vector<8x128xf32>
    %427 = arith.mulf %417, %2 : vector<8x128xf32>
    %428 = arith.addf %426, %427 : vector<8x128xf32>
    %c432 = arith.constant 432 : index
    %c0_112 = arith.constant 0 : index
    %429 = vector.load %arg5[%c432, %c0_112] : memref<1024x128xf32, #tpu.memory_space<vmem>>, vector<8x128xf32>
    tpu.vector_store %arg5[%c432, %c0_112], %425 {strides = array<i32>} : memref<1024x128xf32, #tpu.memory_space<vmem>>, vector<8x128xf32>,
    %c944 = arith.constant 944 : index
    %c0_113 = arith.constant 0 : index
    %430 = vector.load %arg5[%c944, %c0_113] : memref<1024x128xf32, #tpu.memory_space<vmem>>, vector<8x128xf32>
    tpu.vector_store %arg5[%c944, %c0_113], %428 {strides = array<i32>} : memref<1024x128xf32, #tpu.memory_space<vmem>>, vector<8x128xf32>,
    %431 = arith.mulf %425, %1 : vector<8x128xf32>
    %432 = arith.mulf %428, %2 : vector<8x128xf32>
    %433 = arith.subf %431, %432 : vector<8x128xf32>
    %434 = arith.mulf %428, %1 : vector<8x128xf32>
    %435 = arith.mulf %425, %2 : vector<8x128xf32>
    %436 = arith.addf %434, %435 : vector<8x128xf32>
    %c440 = arith.constant 440 : index
    %c0_114 = arith.constant 0 : index
    %437 = vector.load %arg5[%c440, %c0_114] : memref<1024x128xf32, #tpu.memory_space<vmem>>, vector<8x128xf32>
    tpu.vector_store %arg5[%c440, %c0_114], %433 {strides = array<i32>} : memref<1024x128xf32, #tpu.memory_space<vmem>>, vector<8x128xf32>,
    %c952 = arith.constant 952 : index
    %c0_115 = arith.constant 0 : index
    %438 = vector.load %arg5[%c952, %c0_115] : memref<1024x128xf32, #tpu.memory_space<vmem>>, vector<8x128xf32>
    tpu.vector_store %arg5[%c952, %c0_115], %436 {strides = array<i32>} : memref<1024x128xf32, #tpu.memory_space<vmem>>, vector<8x128xf32>,
    %439 = arith.mulf %433, %1 : vector<8x128xf32>
    %440 = arith.mulf %436, %2 : vector<8x128xf32>
    %441 = arith.subf %439, %440 : vector<8x128xf32>
    %442 = arith.mulf %436, %1 : vector<8x128xf32>
    %443 = arith.mulf %433, %2 : vector<8x128xf32>
    %444 = arith.addf %442, %443 : vector<8x128xf32>
    %c448 = arith.constant 448 : index
    %c0_116 = arith.constant 0 : index
    %445 = vector.load %arg5[%c448, %c0_116] : memref<1024x128xf32, #tpu.memory_space<vmem>>, vector<8x128xf32>
    tpu.vector_store %arg5[%c448, %c0_116], %441 {strides = array<i32>} : memref<1024x128xf32, #tpu.memory_space<vmem>>, vector<8x128xf32>,
    %c960 = arith.constant 960 : index
    %c0_117 = arith.constant 0 : index
    %446 = vector.load %arg5[%c960, %c0_117] : memref<1024x128xf32, #tpu.memory_space<vmem>>, vector<8x128xf32>
    tpu.vector_store %arg5[%c960, %c0_117], %444 {strides = array<i32>} : memref<1024x128xf32, #tpu.memory_space<vmem>>, vector<8x128xf32>,
    %447 = arith.mulf %441, %1 : vector<8x128xf32>
    %448 = arith.mulf %444, %2 : vector<8x128xf32>
    %449 = arith.subf %447, %448 : vector<8x128xf32>
    %450 = arith.mulf %444, %1 : vector<8x128xf32>
    %451 = arith.mulf %441, %2 : vector<8x128xf32>
    %452 = arith.addf %450, %451 : vector<8x128xf32>
    %c456 = arith.constant 456 : index
    %c0_118 = arith.constant 0 : index
    %453 = vector.load %arg5[%c456, %c0_118] : memref<1024x128xf32, #tpu.memory_space<vmem>>, vector<8x128xf32>
    tpu.vector_store %arg5[%c456, %c0_118], %449 {strides = array<i32>} : memref<1024x128xf32, #tpu.memory_space<vmem>>, vector<8x128xf32>,
    %c968 = arith.constant 968 : index
    %c0_119 = arith.constant 0 : index
    %454 = vector.load %arg5[%c968, %c0_119] : memref<1024x128xf32, #tpu.memory_space<vmem>>, vector<8x128xf32>
    tpu.vector_store %arg5[%c968, %c0_119], %452 {strides = array<i32>} : memref<1024x128xf32, #tpu.memory_space<vmem>>, vector<8x128xf32>,
    %455 = arith.mulf %449, %1 : vector<8x128xf32>
    %456 = arith.mulf %452, %2 : vector<8x128xf32>
    %457 = arith.subf %455, %456 : vector<8x128xf32>
    %458 = arith.mulf %452, %1 : vector<8x128xf32>
    %459 = arith.mulf %449, %2 : vector<8x128xf32>
    %460 = arith.addf %458, %459 : vector<8x128xf32>
    %c464 = arith.constant 464 : index
    %c0_120 = arith.constant 0 : index
    %461 = vector.load %arg5[%c464, %c0_120] : memref<1024x128xf32, #tpu.memory_space<vmem>>, vector<8x128xf32>
    tpu.vector_store %arg5[%c464, %c0_120], %457 {strides = array<i32>} : memref<1024x128xf32, #tpu.memory_space<vmem>>, vector<8x128xf32>,
    %c976 = arith.constant 976 : index
    %c0_121 = arith.constant 0 : index
    %462 = vector.load %arg5[%c976, %c0_121] : memref<1024x128xf32, #tpu.memory_space<vmem>>, vector<8x128xf32>
    tpu.vector_store %arg5[%c976, %c0_121], %460 {strides = array<i32>} : memref<1024x128xf32, #tpu.memory_space<vmem>>, vector<8x128xf32>,
    %463 = arith.mulf %457, %1 : vector<8x128xf32>
    %464 = arith.mulf %460, %2 : vector<8x128xf32>
    %465 = arith.subf %463, %464 : vector<8x128xf32>
    %466 = arith.mulf %460, %1 : vector<8x128xf32>
    %467 = arith.mulf %457, %2 : vector<8x128xf32>
    %468 = arith.addf %466, %467 : vector<8x128xf32>
    %c472 = arith.constant 472 : index
    %c0_122 = arith.constant 0 : index
    %469 = vector.load %arg5[%c472, %c0_122] : memref<1024x128xf32, #tpu.memory_space<vmem>>, vector<8x128xf32>
    tpu.vector_store %arg5[%c472, %c0_122], %465 {strides = array<i32>} : memref<1024x128xf32, #tpu.memory_space<vmem>>, vector<8x128xf32>,
    %c984 = arith.constant 984 : index
    %c0_123 = arith.constant 0 : index
    %470 = vector.load %arg5[%c984, %c0_123] : memref<1024x128xf32, #tpu.memory_space<vmem>>, vector<8x128xf32>
    tpu.vector_store %arg5[%c984, %c0_123], %468 {strides = array<i32>} : memref<1024x128xf32, #tpu.memory_space<vmem>>, vector<8x128xf32>,
    %471 = arith.mulf %465, %1 : vector<8x128xf32>
    %472 = arith.mulf %468, %2 : vector<8x128xf32>
    %473 = arith.subf %471, %472 : vector<8x128xf32>
    %474 = arith.mulf %468, %1 : vector<8x128xf32>
    %475 = arith.mulf %465, %2 : vector<8x128xf32>
    %476 = arith.addf %474, %475 : vector<8x128xf32>
    %c480 = arith.constant 480 : index
    %c0_124 = arith.constant 0 : index
    %477 = vector.load %arg5[%c480, %c0_124] : memref<1024x128xf32, #tpu.memory_space<vmem>>, vector<8x128xf32>
    tpu.vector_store %arg5[%c480, %c0_124], %473 {strides = array<i32>} : memref<1024x128xf32, #tpu.memory_space<vmem>>, vector<8x128xf32>,
    %c992 = arith.constant 992 : index
    %c0_125 = arith.constant 0 : index
    %478 = vector.load %arg5[%c992, %c0_125] : memref<1024x128xf32, #tpu.memory_space<vmem>>, vector<8x128xf32>
    tpu.vector_store %arg5[%c992, %c0_125], %476 {strides = array<i32>} : memref<1024x128xf32, #tpu.memory_space<vmem>>, vector<8x128xf32>,
    %479 = arith.mulf %473, %1 : vector<8x128xf32>
    %480 = arith.mulf %476, %2 : vector<8x128xf32>
    %481 = arith.subf %479, %480 : vector<8x128xf32>
    %482 = arith.mulf %476, %1 : vector<8x128xf32>
    %483 = arith.mulf %473, %2 : vector<8x128xf32>
    %484 = arith.addf %482, %483 : vector<8x128xf32>
    %c488 = arith.constant 488 : index
    %c0_126 = arith.constant 0 : index
    %485 = vector.load %arg5[%c488, %c0_126] : memref<1024x128xf32, #tpu.memory_space<vmem>>, vector<8x128xf32>
    tpu.vector_store %arg5[%c488, %c0_126], %481 {strides = array<i32>} : memref<1024x128xf32, #tpu.memory_space<vmem>>, vector<8x128xf32>,
    %c1000 = arith.constant 1000 : index
    %c0_127 = arith.constant 0 : index
    %486 = vector.load %arg5[%c1000, %c0_127] : memref<1024x128xf32, #tpu.memory_space<vmem>>, vector<8x128xf32>
    tpu.vector_store %arg5[%c1000, %c0_127], %484 {strides = array<i32>} : memref<1024x128xf32, #tpu.memory_space<vmem>>, vector<8x128xf32>,
    %487 = arith.mulf %481, %1 : vector<8x128xf32>
    %488 = arith.mulf %484, %2 : vector<8x128xf32>
    %489 = arith.subf %487, %488 : vector<8x128xf32>
    %490 = arith.mulf %484, %1 : vector<8x128xf32>
    %491 = arith.mulf %481, %2 : vector<8x128xf32>
    %492 = arith.addf %490, %491 : vector<8x128xf32>
    %c496 = arith.constant 496 : index
    %c0_128 = arith.constant 0 : index
    %493 = vector.load %arg5[%c496, %c0_128] : memref<1024x128xf32, #tpu.memory_space<vmem>>, vector<8x128xf32>
    tpu.vector_store %arg5[%c496, %c0_128], %489 {strides = array<i32>} : memref<1024x128xf32, #tpu.memory_space<vmem>>, vector<8x128xf32>,
    %c1008 = arith.constant 1008 : index
    %c0_129 = arith.constant 0 : index
    %494 = vector.load %arg5[%c1008, %c0_129] : memref<1024x128xf32, #tpu.memory_space<vmem>>, vector<8x128xf32>
    tpu.vector_store %arg5[%c1008, %c0_129], %492 {strides = array<i32>} : memref<1024x128xf32, #tpu.memory_space<vmem>>, vector<8x128xf32>,
    %495 = arith.mulf %489, %1 : vector<8x128xf32>
    %496 = arith.mulf %492, %2 : vector<8x128xf32>
    %497 = arith.subf %495, %496 : vector<8x128xf32>
    %498 = arith.mulf %492, %1 : vector<8x128xf32>
    %499 = arith.mulf %489, %2 : vector<8x128xf32>
    %500 = arith.addf %498, %499 : vector<8x128xf32>
    %c504 = arith.constant 504 : index
    %c0_130 = arith.constant 0 : index
    %501 = vector.load %arg5[%c504, %c0_130] : memref<1024x128xf32, #tpu.memory_space<vmem>>, vector<8x128xf32>
    tpu.vector_store %arg5[%c504, %c0_130], %497 {strides = array<i32>} : memref<1024x128xf32, #tpu.memory_space<vmem>>, vector<8x128xf32>,
    %c1016 = arith.constant 1016 : index
    %c0_131 = arith.constant 0 : index
    %502 = vector.load %arg5[%c1016, %c0_131] : memref<1024x128xf32, #tpu.memory_space<vmem>>, vector<8x128xf32>
    tpu.vector_store %arg5[%c1016, %c0_131], %500 {strides = array<i32>} : memref<1024x128xf32, #tpu.memory_space<vmem>>, vector<8x128xf32>,
    %c0_132 = arith.constant 0 : index
    %c0_133 = arith.constant 0 : index
    %503 = vector.load %arg5[%c0_132, %c0_133] : memref<1024x128xf32, #tpu.memory_space<vmem>>, vector<1024x128xf32>
    %504 = arith.truncf %503 : vector<1024x128xf32> to vector<1024x128xbf16>
    %c0_134 = arith.constant 0 : index
    %c0_135 = arith.constant 0 : index
    %505 = vector.load %arg2[%c0_134, %c0_135] : memref<128x1024xbf16, #tpu.memory_space<vmem>>, vector<128x1024xbf16>
    %cst_136 = arith.constant dense<0.000000e+00> : vector<128x128xf32>
    %506 = tpu.matmul %505, %504, %cst_136 {dimension_numbers = #tpu.dot_dimension_numbers<[1], [0], [0], [1], [0, 0, 1, 1], [], []>} : vector<128x1024xbf16>, vector<1024x128xbf16>, vector<128x128xf32> -> vector<128x128xf32>
    %c0_137 = arith.constant 0 : index
    %c0_138 = arith.constant 0 : index
    %507 = vector.load %arg3[%c0_137, %c0_138] : memref<128x1xf32, #tpu.memory_space<vmem>>, vector<128x1xf32>
    %508 = vector.broadcast %507 : vector<128x1xf32> to vector<128x128xf32>
    %509 = arith.addf %506, %508 : vector<128x128xf32>
    %c0_139 = arith.constant 0 : index
    %c0_140 = arith.constant 0 : index
    %510 = vector.load %arg4[%c0_139, %c0_140] : memref<128x128xf32, #tpu.memory_space<vmem>>, vector<128x128xf32>
    tpu.vector_store %arg4[%c0_139, %c0_140], %509 {strides = array<i32>} : memref<128x128xf32, #tpu.memory_space<vmem>>, vector<128x128xf32>,
    return
  }
  func.func @transform_0(%arg0: i32) -> (i32, i32) {
    %c0_i32 = arith.constant 0 : i32
    %c0_i32_0 = arith.constant 0 : i32
    return %c0_i32, %arg0 : i32, i32
  }
  func.func @transform_1(%arg0: i32) -> (i32, i32) {
    %c0_i32 = arith.constant 0 : i32
    %c0_i32_0 = arith.constant 0 : i32
    %c0_i32_1 = arith.constant 0 : i32
    return %c0_i32, %c0_i32_0 : i32, i32
  }
  func.func @transform_2(%arg0: i32) -> (i32, i32) {
    %c0_i32 = arith.constant 0 : i32
    %c0_i32_0 = arith.constant 0 : i32
    %c0_i32_1 = arith.constant 0 : i32
    return %c0_i32, %c0_i32_0 : i32, i32
  }
  func.func @transform_3(%arg0: i32) -> (i32, i32) {
    %c0_i32 = arith.constant 0 : i32
    %c0_i32_0 = arith.constant 0 : i32
    return %c0_i32, %arg0 : i32, i32
  }
}

</mosaic_0001>

<bundles_post_ra>
// kernel: tpu_custom_call.1
= control target key start
LH: loop header
LB: loop body
LE: loop exit
PB: predicated region body
PF: predicated region fallthrough
CT: control target
= control target key end

     0   :  { %8 = vsyncpa [#allocation4], 0  ;;  %s5208_s0 = inlined_call_operand.vmem [shape: f32[8,256], index: 0, kind: input, shape index: {}]   ;;  %s5209_s1 = inlined_call_operand.hbm [shape: bf16[128,1024], index: 1, kind: input, shape index: {}]   ;;  %s5210_s2 = inlined_call_operand.vmem [shape: f32[128,1], index: 2, kind: input, shape index: {}]   ;;  %s5211_s3 = inlined_call_operand.hbm [shape: f32[128,256], index: 3, kind: output, shape index: {}]  }
   0x1   :  { %9 = vsyncpa [#allocation5], 0 }
   0x2   :  { %11 = vsyncpa [#allocation5 + $0x1], 0  ;;  %s3631_s12 = smov 0   ;;  %s3633_s13 = smov 0  }
   0x3   :  { %s3635_s14 = smov 0   ;;  %s3637_s15 = smov 0  }
   0x4 LB: > { %s3652_s16 = sadd.s32 4294967295, %s3596_s15   ;;  %s3079_s17 = sadd.s32 4294967294, %s3596_s15   ;;  %s3596_s15 = sphi %s3637_s15, %s5403_s15   ;;  %s3592_s14 = sphi %s3635_s14, %s5402_s14   ;;  %s3588_s13 = sphi %s3633_s13, %s5401_s13   ;;  %s3584_s12 = sphi %s3631_s12, %s5400_s12  }
   0x5   : > { %s3656_s18 = sadd.s32 1, %s3596_s15   ;;  %s92_s19 = sadd.s32 1, %s3592_s14 }
   0x6   : > { %s89_s20 = ssub.s32 %s3596_s15, %s3656_s18  ;;  %p102_p0 = scmp.ne.s32.totalorder %s3592_s14, %s3588_s13 }
   0x7   : > { %p90_p1 = scmp.eq.s32.totalorder %s89_s20, 0  ;;  %p103_p2 = scmp.eq.s32.totalorder %s3652_s16, 1 }
   0x8   : > { %p108_p3 = scmp.ne.s32.totalorder %s3588_s13, %s3584_s12  ;;  %p109_p4 = scmp.eq.s32.totalorder %s3079_s17, 1 }
   0x9   : > { %s3667_s21 = scalar_select %p90_p1, %s3592_s14, %s92_s19  }
   0xa   : > { %p3669_p5 = por %p103_p2, %p102_p0  ;;  %p3673_p6 = por %p109_p4, %p108_p3 }
   0xb   : > { %p3080_p7 = scmp.ge.s32.totalorder %s3596_s15, 1  ;;  %p116_p8 = scmp.lt.s32.totalorder %s3596_s15, 3 }
   0xc   : > { %p3449_p9 = scmp.eq.s32.totalorder %s3652_s16, 0  ;;  %s127_s26 = sshll.u32 %s5209_s1, 4  ;;  %s128_s26 = int_to_ptr.hbm [resolvable:$true] %s127_s26 }
   0xd   : > { %p117_p10 = pnand %p3080_p7, %p116_p8  ;;  %s3598_s27 = smov [#allocation3]  }
   0xe   : > { %s129_s28 = sshll.u32 %s3598_s27, 4  ;;  %s3599_s29 = smov 512   ;;  %s130_s28 = int_to_ptr.vmem [resolvable:$true] %s129_s28 }
   0xf   : > { %p3441_p11 = pneg %p117_p10  ;;  %s3600_s30 = smov 32  }
  0x10   : > { %155 = sbr.rel (%p117_p10) target bundleno = 771 (0x303), region = 32 }
  0x11   : > { %p3442_p12 = pnand %p3449_p9, %p3441_p11 }
  0x13   : > { %3444 = dma.hbm_to_vmem [thread:$0]  (!%p3442_p12), %s128_s26, 8192, %s130_s28, [#allocation4], %s3599_s29, %s3599_s29, %s3600_s30  }
  0x15   : > { %3575 = dma.done.wait (%p3449_p9), [#allocation4], 8192  }
  0x16   : > { %3577 = vsyncadd (%p3449_p9), [#allocation4], 4294959104  ;;  %p179_p13 = scmp.lt.s32.totalorder %s3652_s16, 1  ;;  %v5214_v0 = vmov 0   ;;  %v5213_v24 = vmov 683565275  }
  0x17   : > { %3497 = vset.pattern.permute.xlu0 %v5214_v0  ;;  %3498 = vset.pattern.permute.xlu1 %v5214_v0  ;;  %v3603_v26 = vmov 2475754826   ;;  %v3604_v28 = vmov 2131351028   ;;  %v5219_v30 = vmov 2102212464  }
  0x18   : > { %s180_s4 = scalar_select %p179_p13, %s3652_s16, 1  ;;  %3499 = vset.pattern.permute.xlu2 %v5214_v0  ;;  %v5217_v32 = vmov 920167782   ;;  %v5216_v41 = vmov 1326507024  }
  0x19   : > { %s3550_s27 = scalar_lea.hbm %s5211_s3, 256 }
  0x1a   : > { %s3086_s5 = sshll.u32 %s180_s4, 3 }
  0x1b   : > { %s182_s8 = scalar_lea.vmem %s5208_s0, %s3086_s5  ;;  %s176_s5 = sand.u32 1, %s3588_s13  }
  0x1c   : > { %v3697_v1 = vld [vmem:[%s182_s8] sm:$0xff]  ;;  %s3085_s6 = sshll.u32 %s176_s5, 7  ;;  %s3368_s8 = sshll.u32 %s3652_s16, 3 }
  0x1d   : > { %v184_v2 = vand.u32 2147483647, %v3697_v1  ;;  %v187_v3 = vand.u32 2139095040, %v3697_v1  ;;  %v3702_v4 = vmul.f32 17.0, %v3697_v1  ;;  %v3711_v15 = vmul.f32 33.0, %v3697_v1  ;;  %s5142_s7 = scalar_lea.vmem [#allocation6], %s3085_s6  ;;  %s3001_s11 = scalar_lea.hbm %s5211_s3, %s3368_s8 }
  0x1e   : > { %s3002_s17 = sshll.u32 %s5142_s7, 4  ;;  %s3004_s19 = sshll.u32 %s3001_s11, 4  ;;  %s3003_s17 = int_to_ptr.vmem [resolvable:$true] %s3002_s17  ;;  %s3005_s19 = int_to_ptr.hbm [resolvable:$true] %s3004_s19 }
  0x1f   : > { %v188_v5 = vshrl.u32 %v187_v3, 23  ;;  %v191_v6 = vand.u32 8388607, %v184_v2  ;;  %v618_v7 = vand.u32 2139095040, %v3702_v4  ;;  %v615_v8 = vand.u32 2147483647, %v3702_v4 }
  0x20   : > { %v1050_v22 = vand.u32 2139095040, %v3711_v15  ;;  %s2991_s16 = scalar_lea.sflag [#allocation5], %s176_s5  ;;  %s3544_s20 = sshra.s32 %s3005_s19, 4  ;;  %s3545_s20 = int_to_ptr.hbm [resolvable:$true] %s3544_s20 }
  0x21   : > { %v3087_v9 = vadd.s32 4294967169, %v188_v5  ;;  %v619_v10 = vshrl.u32 %v618_v7, 23  ;;  %v192_v11 = vor.u32 8388608, %v191_v6  ;;  %v622_v14 = vand.u32 8388607, %v615_v8  ;;  %s3546_s24 = scalar_lea.hbm %s3545_s20, 128  ;;  %p3551_p3 = scmp.lt.s32.totalorder %s3545_s20, %s5211_s3 }
  0x22   : > { %p3547_p0 = scmp.ne.s32.totalorder %s3545_s20, %s3546_s24  ;;  %p3552_p4 = scmp.lt.s32.totalorder %s3550_s27, %s3546_s24 }
  0x23   : > { %v194_v12 = vadd.s32 1, %v3087_v9  ;;  %v3093_v13 = vadd.s32 4294967169, %v619_v10  ;;  %v3713_v18 = vshll.u32 %v192_v11, 8  ;;  %v623_v21 = vor.u32 8388608, %v622_v14 }
  0x24   : > { %p3548_p1 = pnand %p3547_p0, %p3669_p5  ;;  %p3553_p7 = por %p3552_p4, %p3551_p3 }
  0x25   : > { %vm195_vm0 = vcmp.gt.s32.totalorder %v194_v12, 0  ;;  %v625_v16 = vadd.s32 1, %v3093_v13  ;;  %v233_v34 = vand.u32 65535, %v3713_v18  ;;  %v234_v59 = vshrl.u32 %v3713_v18, 16 }
  0x26   : > { %v196_v17 = vsel %vm195_vm0, %v194_v12, 0  ;;  %v3732_v60 = vshll.u32 %v623_v21, 8  ;;  %p3549_p2 = pneg %p3548_p1 }
  0x27   : > { %v198_v19 = vand.u32 31, %v196_v17  ;;  %vm626_vm1 = vcmp.gt.s32.totalorder %v625_v16, 0  ;;  %v197_v20 = vshrl.u32 %v196_v17, 5 }
  0x28   : > { %v627_v35 = vsel %vm626_vm1, %v625_v16, 0  ;;  %p3554_p8 = pnand %p3553_p7, %p3549_p2 }
  0x29   : > { %v199_v23 = vsub.s32 32, %v198_v19  ;;  %v201_v25 = vshll.u32 %v5213_v24, %v198_v19  ;;  %v204_v27 = vshll.u32 %v3603_v26, %v198_v19  ;;  %v207_v29 = vshll.u32 %v3604_v28, %v198_v19 }
  0x2a   : > { %v210_v31 = vshll.u32 %v5219_v30, %v198_v19  ;;  %v213_v33 = vshll.u32 %v5217_v32, %v198_v19  ;;  %vm216_vm2 = vcmp.lt.s32.totalorder %v197_v20, 1  ;;  %vm217_vm3 = vcmp.lt.s32.totalorder %v197_v20, 2 }
  0x2b   : > { %v200_v36 = vshrl.u32 %v5213_v24, %v199_v23  ;;  %v202_v37 = vshrl.u32 %v3603_v26, %v199_v23  ;;  %v205_v38 = vshrl.u32 %v3604_v28, %v199_v23  ;;  %v208_v39 = vshrl.u32 %v5219_v30, %v199_v23 }
  0x2c   : > { %v211_v40 = vshrl.u32 %v5217_v32, %v199_v23  ;;  %v214_v42 = vshrl.u32 %v5216_v41, %v199_v23  ;;  %vm219_vm4 = vcmp.lt.s32.totalorder %v197_v20, 4  ;;  %vm218_vm5 = vcmp.lt.s32.totalorder %v197_v20, 3 }
  0x2d   : > { %v203_v43 = vor.u32 %v202_v37, %v201_v25  ;;  %v206_v44 = vor.u32 %v205_v38, %v204_v27  ;;  %v209_v45 = vor.u32 %v208_v39, %v207_v29  ;;  %v629_v48 = vand.u32 31, %v627_v35 }
  0x2e   : > { %v212_v46 = vor.u32 %v211_v40, %v210_v31  ;;  %v215_v47 = vor.u32 %v214_v42, %v213_v33  ;;  %v3739_v3 = vshrl.u32 %v627_v35, 5 }
  0x2f   : > { %v220_v49 = vsel %vm216_vm2, %v200_v36, %v203_v43  ;;  %v221_v50 = vsel %vm219_vm4, %v209_v45, 2102212464  ;;  %v224_v51 = vsel %vm216_vm2, %v203_v43, %v206_v44  ;;  %v228_v52 = vsel %vm216_vm2, %v206_v44, %v209_v45 }
  0x30   : > { %v222_v53 = vsel %vm218_vm5, %v206_v44, %v221_v50  ;;  %v225_v54 = vsel %vm219_vm4, %v212_v46, 920167782  ;;  %v229_v55 = vsel %vm219_vm4, %v215_v47, 1326507024  ;;  %v3729_v56 = vsub.s32 32, %v629_v48 }
  0x31   : > { %v226_v57 = vsel %vm218_vm5, %v209_v45, %v225_v54  ;;  %v230_v58 = vsel %vm218_vm5, %v212_v46, %v229_v55  ;;  %v3735_v61 = vsel %vm217_vm3, %v220_v49, %v222_v53  ;;  %v632_v10 = vshll.u32 %v5213_v24, %v629_v48 }
  0x32   : > { %v227_v62 = vsel %vm217_vm3, %v224_v51, %v226_v57  ;;  %v231_v63 = vsel %vm217_vm3, %v228_v52, %v230_v58  ;;  %v633_v11 = vshrl.u32 %v3603_v26, %v3729_v56  ;;  %v635_v12 = vshll.u32 %v3603_v26, %v629_v48 }
  0x33   : > { %v235_v5 = vand.u32 65535, %v231_v63  ;;  %v236_v6 = vshrl.u32 %v231_v63, 16  ;;  %v257_v7 = vand.u32 65535, %v227_v62  ;;  %v258_v9 = vshrl.u32 %v227_v62, 16 }
  0x34   : > { %v636_v13 = vshrl.u32 %v3604_v28, %v3729_v56  ;;  %v638_v19 = vshll.u32 %v3604_v28, %v629_v48  ;;  %v3748_v42 = vor.u32 %v633_v11, %v632_v10  ;;  %v641_v47 = vshll.u32 %v5219_v30, %v629_v48 }
  0x35   : > { %v237_v14 = vmul.u32 %v235_v5, %v233_v34  ;;  %v238_v16 = vmul.u32 %v236_v6, %v233_v34  ;;  %v239_v17 = vmul.u32 %v235_v5, %v234_v59  ;;  %v240_v20 = vmul.u32 %v236_v6, %v234_v59 }
  0x36   : > { %v259_v21 = vmul.u32 %v257_v7, %v233_v34  ;;  %v260_v23 = vmul.u32 %v258_v9, %v233_v34  ;;  %v261_v25 = vmul.u32 %v257_v7, %v234_v59  ;;  %v262_v33 = vmul.u32 %v258_v9, %v234_v59 }
  0x37   : > { %v241_v27 = vshll.u32 %v238_v16, 16  ;;  %v242_v29 = vshrl.u32 %v238_v16, 16  ;;  %v243_v31 = vshll.u32 %v239_v17, 16  ;;  %v244_v35 = vshrl.u32 %v239_v17, 16 }
  0x38   : > { %v263_v36 = vshll.u32 %v260_v23, 16  ;;  %v264_v37 = vshrl.u32 %v260_v23, 16  ;;  %v265_v38 = vshll.u32 %v261_v25, 16  ;;  %v266_v40 = vshrl.u32 %v261_v25, 16 }
  0x39   : > { %vm245_vm6 = vc.u32 %v237_v14, %v241_v27  ;;  %v247_v39 = vadd.s32 %v241_v27, %v237_v14  ;;  %v639_v34 = vshrl.u32 %v5219_v30, %v3729_v56  ;;  %v3756_v51 = vor.u32 %v636_v13, %v635_v12 }
  0x3a   : > { %v246_v43 = vsel %vm245_vm6, 1, %v5214_v0  ;;  %vm267_vm7 = vc.u32 %v259_v21, %v263_v36  ;;  %v269_v44 = vadd.s32 %v263_v36, %v259_v21  ;;  %v642_v55 = vshrl.u32 %v5217_v32, %v3729_v56 }
  0x3b   : > { %v248_v45 = vadd.s32 %v246_v43, %v240_v20  ;;  %vm249_vm8 = vc.u32 %v247_v39, %v243_v31  ;;  %v268_v46 = vsel %vm267_vm7, 1, %v5214_v0  ;;  %v640_v54 = vor.u32 %v639_v34, %v638_v19 }
  0x3c   : > { %v250_v49 = vsel %vm249_vm8, 1, %v5214_v0  ;;  %v270_v50 = vadd.s32 %v268_v46, %v262_v33  ;;  %vm271_vm9 = vc.u32 %v269_v44, %v265_v38  ;;  %v644_v58 = vshll.u32 %v5217_v32, %v629_v48 }
  0x3d   : > { %v252_v52 = vadd.s32 %v250_v49, %v248_v45  ;;  %v272_v53 = vsel %vm271_vm9, 1, %v5214_v0  ;;  %v645_v59 = vshrl.u32 %v5216_v41, %v3729_v56  ;;  %vm647_vm10 = vcmp.lt.s32.totalorder %v3739_v3, 1 }
  0x3e   : > { %v274_v57 = vadd.s32 %v272_v53, %v270_v50  ;;  %v3765_v63 = vadd.s32 %v269_v44, %v265_v38  ;;  %v643_v5 = vor.u32 %v642_v55, %v641_v47  ;;  %vm649_vm11 = vcmp.lt.s32.totalorder %v3739_v3, 3 }
  0x3f   : > { %v253_v62 = vadd.s32 %v252_v52, %v242_v29  ;;  %v646_v7 = vor.u32 %v645_v59, %v644_v58  ;;  %vm648_vm12 = vcmp.lt.s32.totalorder %v3739_v3, 2  ;;  %vm650_vm13 = vcmp.lt.s32.totalorder %v3739_v3, 4 }
  0x40   : > { %v275_v6 = vadd.s32 %v274_v57, %v264_v37  ;;  %v655_v48 = vsel %vm647_vm10, %v3748_v42, %v3756_v51  ;;  %v656_v10 = vsel %vm650_vm13, %v643_v5, 920167782  ;;  %v1051_v11 = vshrl.u32 %v1050_v22, 23 }
  0x41   : > { %v3770_v9 = vadd.s32 %v253_v62, %v244_v35  ;;  %v657_v13 = vsel %vm649_vm11, %v640_v54, %v656_v10  ;;  %v664_v14 = vand.u32 65535, %v3732_v60  ;;  %v665_v16 = vshrl.u32 %v3732_v60, 16 }
  0x42   : > { %v276_v12 = vadd.s32 %v275_v6, %v266_v40  ;;  %v277_v17 = vmul.u32 %v3713_v18, %v3735_v61  ;;  %v658_v19 = vsel %vm648_vm12, %v655_v48, %v657_v13  ;;  %v659_v22 = vsel %vm647_vm10, %v3756_v51, %v640_v54 }
  0x43   : > { %vm279_vm14 = vc.u32 %v3770_v9, %v3765_v63  ;;  %v660_v21 = vsel %vm650_vm13, %v646_v7, 1326507024  ;;  %v688_v23 = vand.u32 65535, %v658_v19  ;;  %v689_v25 = vshrl.u32 %v658_v19, 16 }
  0x44   : > { %v280_v20 = vadd.s32 1, %v276_v12  ;;  %v661_v27 = vsel %vm649_vm11, %v643_v5, %v660_v21  ;;  %v3099_v18 = vadd.s32 4294967169, %v1051_v11  ;;  %v631_v45 = vshrl.u32 %v5213_v24, %v3729_v56 }
  0x45   : > { %v662_v29 = vsel %vm648_vm12, %v659_v22, %v661_v27  ;;  %v691_v31 = vmul.u32 %v689_v25, %v664_v14  ;;  %v692_v37 = vmul.u32 %v688_v23, %v665_v16  ;;  %v690_v38 = vmul.u32 %v688_v23, %v664_v14 }
  0x46   : > { %v281_v61 = vsel %vm279_vm14, %v280_v20, %v276_v12  ;;  %v666_v35 = vand.u32 65535, %v662_v29  ;;  %v667_v36 = vshrl.u32 %v662_v29, 16  ;;  %v1057_v34 = vadd.s32 1, %v3099_v18 }
  0x47   : > { %v282_v33 = vadd.s32 %v281_v61, %v277_v17  ;;  %v694_v39 = vshll.u32 %v691_v31, 16  ;;  %v696_v47 = vshll.u32 %v692_v37, 16  ;;  %v5221_v49 = vand.u32 2147483647, %v3711_v15 }
  0x48   : > { %v668_v43 = vmul.u32 %v666_v35, %v664_v14  ;;  %v669_v44 = vmul.u32 %v667_v36, %v664_v14  ;;  %v670_v46 = vmul.u32 %v666_v35, %v665_v16  ;;  %v652_v52 = vsel %vm650_vm13, %v640_v54, 2102212464 }
  0x49   : > { %v283_v40 = vadd.s32 536870912, %v282_v33  ;;  %v671_v53 = vmul.u32 %v667_v36, %v665_v16  ;;  %v693_v58 = vmul.u32 %v689_v25, %v665_v16  ;;  %vm698_vm15 = vc.u32 %v690_v38, %v694_v39 }
  0x4a   : > { %v672_v55 = vshll.u32 %v669_v44, 16  ;;  %v674_v57 = vshll.u32 %v670_v46, 16  ;;  %v700_v59 = vadd.s32 %v694_v39, %v690_v38  ;;  %vm1058_vm1 = vcmp.gt.s32.totalorder %v1057_v34, 0 }
  0x4b   : > { %v284_v50 = vshrl.u32 %v283_v40, 30  ;;  %v695_v6 = vshrl.u32 %v691_v31, 16  ;;  %v699_v7 = vsel %vm698_vm15, 1, %v5214_v0  ;;  %v673_v10 = vshrl.u32 %v669_v44, 16 }
  0x4c   : > { %vm676_vm0 = vc.u32 %v668_v43, %v672_v55  ;;  %v678_v5 = vadd.s32 %v672_v55, %v668_v43  ;;  %vm702_vm2 = vc.u32 %v700_v59, %v696_v47  ;;  %v701_v12 = vadd.s32 %v699_v7, %v693_v58 }
  0x4d   : > { %v285_v62 = vshll.u32 %v284_v50, 30  ;;  %v677_v56 = vsel %vm676_vm0, 1, %v5214_v0  ;;  %v703_v13 = vsel %vm702_vm2, 1, %v5214_v0  ;;  %v1059_v14 = vsel %vm1058_vm1, %v1057_v34, 0 }
  0x4e   : > { %v679_v11 = vadd.s32 %v677_v56, %v671_v53  ;;  %vm680_vm3 = vc.u32 %v678_v5, %v674_v57  ;;  %v675_v17 = vshrl.u32 %v670_v46, 16  ;;  %v651_v22 = vsel %vm647_vm10, %v631_v45, %v3748_v42 }
  0x4f   : > { %v286_v48 = vsub.s32 %v282_v33, %v285_v62  ;;  %v681_v54 = vsel %vm680_vm3, 1, %v5214_v0  ;;  %v697_v20 = vshrl.u32 %v692_v37, 16  ;;  %v705_v21 = vadd.s32 %v703_v13, %v701_v12 }
  0x50   : > { %v683_v19 = vadd.s32 %v681_v54, %v679_v11  ;;  %v653_v25 = vsel %vm649_vm11, %v3756_v51, %v652_v52  ;;  %v1061_v18 = vand.u32 31, %v1059_v14  ;;  %v3816_v33 = vadd.s32 %v700_v59, %v696_v47 }
  0x51   : > { %vm287_vm4 = vcmp.lt.s32.totalorder %v286_v48, 0  ;;  %v288_v16 = vsub.s32 0, %v286_v48  ;;  %v706_v29 = vadd.s32 %v705_v21, %v695_v6  ;;  %v1054_v35 = vand.u32 8388607, %v5221_v49 }
  0x52   : > { %v684_v27 = vadd.s32 %v683_v19, %v673_v10  ;;  %v654_v42 = vsel %vm648_vm12, %v651_v22, %v653_v25  ;;  %v308_v38 = vsub.s32 4, %v284_v50  ;;  %v3822_v39 = vsub.s32 32, %v1061_v18 }
  0x53   : > { %v289_v23 = vsel %vm287_vm4, %v288_v16, %v286_v48  ;;  %v707_v37 = vadd.s32 %v706_v29, %v697_v20  ;;  %vm186_vm5 = vcmp.lt.s32.totalorder %v3697_v1, 0  ;;  %v278_v51 = vadd.s32 %v3765_v63, %v3770_v9 }
  0x54   : > { %v290_v61 = vclz %v289_v23  ;;  %v3814_v31 = vadd.s32 %v684_v27, %v675_v17  ;;  %v708_v44 = vmul.u32 %v3732_v60, %v654_v42  ;;  %v1055_v34 = vor.u32 8388608, %v1054_v35 }
  0x55   : > { %v711_v40 = vadd.s32 1, %v707_v37  ;;  %v3830_v47 = vshrl.u32 %v1059_v14, 5  ;;  %v309_v52 = vsel %vm186_vm5, %v308_v38, %v284_v50  ;;  %v1067_v53 = vshll.u32 %v3603_v26, %v1061_v18 }
  0x56   : > { %v3088_v36 = vadd.s32 4294967294, %v290_v61  ;;  %vm710_vm7 = vc.u32 %v3814_v31, %v3816_v33  ;;  %v1068_v63 = vshrl.u32 %v3604_v28, %v3822_v39  ;;  %v1070_v9 = vshll.u32 %v3604_v28, %v1061_v18 }
  0x57   : > { %v712_v57 = vsel %vm710_vm7, %v711_v40, %v707_v37  ;;  %v1073_v58 = vshll.u32 %v5219_v30, %v1061_v18  ;;  %v1071_v62 = vshrl.u32 %v5219_v30, %v3822_v39  ;;  %v1074_v5 = vshrl.u32 %v5217_v32, %v3822_v39 }
  0x58   : > { %vm3089_vm6 = vcmp.lt.s32.totalorder %v3088_v36, 0  ;;  %v713_v59 = vadd.s32 %v712_v57, %v708_v44  ;;  %v1076_v50 = vshll.u32 %v5217_v32, %v1061_v18  ;;  %v1077_v7 = vshrl.u32 %v5216_v41, %v3822_v39 }
  0x59   : > { %v293_v43 = vsel %vm3089_vm6, 0, %v3088_v36  ;;  %vm1079_vm8 = vcmp.lt.s32.totalorder %v3830_v47, 1  ;;  %v1064_v10 = vshll.u32 %v5213_v24, %v1061_v18  ;;  %v3848_v11 = vor.u32 %v1068_v63, %v1067_v53 }
  0x5a   : > { %v294_v3 = vsub.s32 32, %v293_v43  ;;  %v295_v45 = vshll.u32 %v286_v48, %v293_v43  ;;  %v298_v46 = vsub.s32 4294967266, %v293_v43  ;;  %v714_v48 = vadd.s32 536870912, %v713_v59 }
  0x5b   : > { %v1072_v54 = vor.u32 %v1071_v62, %v1070_v9  ;;  %v1065_v14 = vshrl.u32 %v3603_v26, %v3822_v39  ;;  %v1078_v16 = vor.u32 %v1077_v7, %v1076_v50  ;;  %v1075_v19 = vor.u32 %v1074_v5, %v1073_v58 }
  0x5c   : > { %v296_v60 = vshrl.u32 %v278_v51, %v294_v3  ;;  %v299_v55 = vadd.s32 127, %v298_v46  ;;  %v3852_v17 = vshrl.u32 %v714_v48, 30  ;;  %vm1082_vm9 = vcmp.lt.s32.totalorder %v3830_v47, 4 }
  0x5d   : > { %v3855_v22 = vshll.u32 %v1055_v34, 8  ;;  %vm3859_vm10 = vcmp.le.f32.partialorder %v184_v2, 0.7853982  ;;  %vm1081_vm11 = vcmp.lt.s32.totalorder %v3830_v47, 3  ;;  %vm1080_vm12 = vcmp.lt.s32.totalorder %v3830_v47, 2 }
  0x5e   : > { %v297_v56 = vor.u32 %v296_v60, %v295_v45  ;;  %v300_v6 = vshll.u32 %v299_v55, 23  ;;  %v311_v23 = vsel %vm3859_vm10, 0, %v309_v52  ;;  %v716_v25 = vshll.u32 %v3852_v17, 30 }
  0x5f   : > { %v1091_v27 = vsel %vm1079_vm8, %v3848_v11, %v1072_v54  ;;  %v1066_v61 = vor.u32 %v1065_v14, %v1064_v10  ;;  %v1092_v2 = vsel %vm1082_vm9, %v1078_v16, 1326507024  ;;  %v1088_v35 = vsel %vm1082_vm9, %v1075_v19, 920167782 }
  0x60   : > { %v301_v12 = vor.u32 4788187, %v300_v6  ;;  %v304_v13 = vcvt.s32.f32 %v297_v56  ;;  %v3873_v29 = vsub.s32 %v713_v59, %v716_v25  ;;  %v1093_v36 = vsel %vm1081_vm11, %v1075_v19, %v1092_v2 }
  0x61   : > { %v3880_v42 = vand.u32 65535, %v3855_v22  ;;  %v482_v38 = vadd.s32 3, %v311_v23  ;;  %v1094_v51 = vsel %vm1080_vm12, %v1091_v27, %v1093_v36  ;;  %v3885_v40 = vshrl.u32 %v3855_v22, 16 }
  0x62   : > { %v302_v21 = vand.u32 2147483647, %v301_v12  ;;  %vm718_vm13 = vcmp.lt.s32.totalorder %v3873_v29, 0  ;;  %v719_v43 = vsub.s32 0, %v3873_v29  ;;  %v1098_v44 = vand.u32 65535, %v1094_v51 }
  0x63   : > { %v1099_v34 = vshrl.u32 %v1094_v51, 16  ;;  %v1087_v45 = vsel %vm1079_vm8, %v1066_v61, %v3848_v11  ;;  %v1089_v46 = vsel %vm1081_vm11, %v1072_v54, %v1088_v35  ;;  %v1063_v57 = vshrl.u32 %v5213_v24, %v3822_v39 }
  0x64   : > { %v305_v18 = vmul.f32 %v304_v13, %v302_v21  ;;  %v720_v53 = vsel %vm718_vm13, %v719_v43, %v3873_v29  ;;  %v1100_v63 = vmul.u32 %v1098_v44, %v3880_v42  ;;  %v3911_v58 = vmul.u32 %v1098_v44, %v3885_v40 }
  0x65   : > { %v3904_v9 = vmul.u32 %v1099_v34, %v3880_v42  ;;  %v721_v55 = vclz %v720_v53  ;;  %v3913_v59 = vand.u32 3, %v311_v23  ;;  %v3915_v62 = vand.u32 3, %v482_v38 }
  0x66   : > { %v306_v37 = vxor.u32 2147483648, %v305_v18  ;;  %v709_v5 = vadd.s32 %v3816_v33, %v3814_v31  ;;  %v1090_v48 = vsel %vm1080_vm12, %v1087_v45, %v1089_v46  ;;  %v1084_v39 = vsel %vm1082_vm9, %v1072_v54, 2102212464 }
  0x67   : > { %v1104_v50 = vshll.u32 %v3904_v9, 16  ;;  %v3094_v7 = vadd.s32 4294967294, %v721_v55  ;;  %v1106_v10 = vshll.u32 %v3911_v58, 16  ;;  %v1120_v12 = vand.u32 65535, %v1090_v48 }
  0x68   : > { %v307_v3 = vsel %vm186_vm5, %v306_v37, %v305_v18  ;;  %v1103_v31 = vmul.u32 %v1099_v34, %v3885_v40  ;;  %vm333_vm0 = vcmp.eq.s32.totalorder %v3913_v59, 2  ;;  %vm488_vm1 = vcmp.eq.s32.totalorder %v3915_v62, 2 }
  0x69   : > { %v3899_v52 = vsel %vm3859_vm10, %v3697_v1, %v307_v3  ;;  %vm1108_vm14 = vc.u32 %v1100_v63, %v1104_v50  ;;  %vm3095_vm15 = vcmp.lt.s32.totalorder %v3094_v7, 0  ;;  %vm617_vm2 = vcmp.lt.s32.totalorder %v3702_v4, 0 }
  0x6a   : > { %v312_v60 = vmul.f32 %v3899_v52, %v3899_v52  ;;  %v724_v33 = vsel %vm3095_vm15, 0, %v3094_v7  ;;  %v1109_v16 = vsel %vm1108_vm14, 1, %v5214_v0  ;;  %v1110_v19 = vadd.s32 %v1104_v50, %v1100_v63 }
  0x6b   : > { %v1121_v54 = vshrl.u32 %v1090_v48, 16  ;;  %v725_v23 = vsub.s32 32, %v724_v33  ;;  %v726_v25 = vshll.u32 %v3873_v29, %v724_v33  ;;  %vm330_vm3 = vcmp.eq.s32.totalorder %v3913_v59, 0 }
  0x6c   : > { %v313_v56 = vmul.f32 -0.001358992, %v312_v60  ;;  %v320_v6 = vmul.f32 -0.00019511016, %v312_v60  ;;  %vm485_vm4 = vcmp.eq.s32.totalorder %v3915_v62, 0  ;;  %v729_v27 = vsub.s32 4294967266, %v724_v33 }
  0x6d   : > { %v1083_v18 = vsel %vm1079_vm8, %v1063_v57, %v1066_v61  ;;  %v1085_v2 = vsel %vm1081_vm11, %v3848_v11, %v1084_v39  ;;  %vm1112_vm5 = vc.u32 %v1110_v19, %v1106_v10  ;;  %vm329_vm6 = vcmp.lt.s32.totalorder %v3913_v59, 2 }
  0x6e   : > { %v314_v13 = vadd.f32 0.041655596, %v313_v56  ;;  %v321_v14 = vadd.f32 0.008332121, %v320_v6  ;;  %vm484_vm7 = vcmp.lt.s32.totalorder %v3915_v62, 2  ;;  %v727_v29 = vshrl.u32 %v709_v5, %v725_v23 }
  0x6f   : > { %v1111_v37 = vadd.s32 %v1109_v16, %v1103_v31  ;;  %vm327_vm9 = vweird.f32 %v3697_v1  ;;  %v730_v38 = vadd.s32 127, %v729_v27  ;;  %v1113_v51 = vsel %vm1112_vm5, 1, %v5214_v0 }
  0x70   : > { %v315_v20 = vmul.f32 %v314_v13, %v312_v60  ;;  %v322_v21 = vmul.f32 %v321_v14, %v312_v60  ;;  %v1123_v61 = vmul.u32 %v1121_v54, %v3880_v42  ;;  %v1124_v43 = vmul.u32 %v1120_v12, %v3885_v40 }
  0x71   : > { %v728_v34 = vor.u32 %v727_v29, %v726_v25  ;;  %v739_v3 = vsub.s32 4, %v3852_v17  ;;  %vm3947_vm8 = vcmp.le.f32.partialorder %v615_v8, 0.7853982  ;;  %v731_v46 = vshll.u32 %v730_v38, 23 }
  0x72   : > { %v316_v35 = vadd.f32 -0.4999988, %v315_v20  ;;  %v323_v36 = vadd.f32 -0.16666654, %v322_v21  ;;  %v3953_v53 = vsel %vm1080_vm12, %v1083_v18, %v1085_v2  ;;  %v1105_v63 = vshrl.u32 %v3904_v9, 16 }
  0x73   : > { %v1122_v55 = vmul.u32 %v1120_v12, %v3880_v42  ;;  %v1115_v5 = vadd.s32 %v1113_v51, %v1111_v37  ;;  %v1125_v50 = vmul.u32 %v1121_v54, %v3885_v40  ;;  %v732_v56 = vor.u32 4788187, %v731_v46 }
  0x74   : > { %v317_v44 = vmul.f32 %v316_v35, %v312_v60  ;;  %v324_v11 = vmul.f32 %v323_v36, %v312_v60  ;;  %v735_v6 = vcvt.s32.f32 %v728_v34  ;;  %v1126_v8 = vshll.u32 %v1123_v61, 16 }
  0x75   : > { %v1128_v7 = vshll.u32 %v1124_v43, 16  ;;  %v740_v47 = vsel %vm617_vm2, %v739_v3, %v3852_v17  ;;  %v1107_v9 = vshrl.u32 %v3911_v58, 16  ;;  %v733_v10 = vand.u32 2147483647, %v732_v56 }
  0x76   : > { %v318_v57 = vadd.f32 1.0, %v317_v44  ;;  %v325_v60 = vadd.f32 1.0, %v324_v11  ;;  %v1116_v42 = vadd.s32 %v1115_v5, %v1105_v63  ;;  %vm1130_vm10 = vc.u32 %v1122_v55, %v1126_v8 }
  0x77   : > { %v1132_v12 = vadd.s32 %v1126_v8, %v1122_v55  ;;  %v1127_v31 = vshrl.u32 %v1123_v61, 16  ;;  %v1129_v33 = vshrl.u32 %v1124_v43, 16  ;;  %v1131_v16 = vsel %vm1130_vm10, 1, %v5214_v0 }
  0x78   : > { %v326_v48 = vmul.f32 %v325_v60, %v3899_v52  ;;  %v334_v39 = vxor.u32 2147483648, %v318_v57  ;;  %v736_v52 = vmul.f32 %v735_v6, %v733_v10  ;;  %v1133_v19 = vadd.s32 %v1131_v16, %v1125_v50 }
  0x79   : > { %vm1134_vm11 = vc.u32 %v1132_v12, %v1128_v7  ;;  %v3977_v25 = vadd.s32 %v1116_v42, %v1107_v9  ;;  %v3987_v2 = vadd.s32 %v1132_v12, %v1128_v7  ;;  %v4001_v51 = vmul.f32 49.0, %v3697_v1 }
  0x7a   : > { %v331_v13 = vxor.u32 2147483648, %v326_v48  ;;  %v335_v40 = vsel %vm333_vm0, %v334_v39, %v326_v48  ;;  %v490_v14 = vsel %vm488_vm1, %v334_v39, %v326_v48  ;;  %v1135_v54 = vsel %vm1134_vm11, 1, %v5214_v0 }
  0x7b   : > { %v737_v23 = vxor.u32 2147483648, %v736_v52  ;;  %v1137_v35 = vadd.s32 %v1135_v54, %v1133_v19  ;;  %v742_v44 = vsel %vm3947_vm8, 0, %v740_v47  ;;  %v1140_v3 = vmul.u32 %v3855_v22, %v3953_v53 }
  0x7c   : > { %v332_v17 = vsel %vm330_vm3, %v318_v57, %v331_v13  ;;  %v487_v58 = vsel %vm485_vm4, %v318_v57, %v331_v13  ;;  %vm1142_vm12 = vc.u32 %v3977_v25, %v3987_v2  ;;  %v913_v60 = vadd.s32 3, %v742_v44 }
  0x7d   : > { %v336_v20 = vsel %vm329_vm6, %v332_v17, %v335_v40  ;;  %v491_v21 = vsel %vm484_vm7, %v487_v58, %v490_v14  ;;  %v738_v29 = vsel %vm617_vm2, %v737_v23, %v736_v52  ;;  %v1138_v38 = vadd.s32 %v1137_v35, %v1127_v31 }
  0x7e   : > { %v3981_v27 = vsel %vm327_vm9, nan, %v336_v20  ;;  %v3985_v18 = vsel %vm327_vm9, nan, %v491_v21  ;;  %v741_v37 = vsel %vm3947_vm8, %v3702_v4, %v738_v29  ;;  %v4025_v50 = vand.u32 3, %v742_v44 }
  0x7f   : > { %v495_v59 = vmul.f32 %v3981_v27, %v3981_v27  ;;  %v496_v62 = vmul.f32 %v3985_v18, %v3985_v18  ;;  %v498_v36 = vmul.f32 %v3985_v18, %v3981_v27  ;;  %v743_v11 = vmul.f32 %v741_v37, %v741_v37 }
  0x80   : > { %v1139_v34 = vadd.s32 %v1138_v38, %v1129_v33  ;;  %v1482_v56 = vand.u32 2139095040, %v4001_v51  ;;  %v914_v12 = vand.u32 3, %v913_v60  ;;  %vm761_vm13 = vcmp.eq.s32.totalorder %v4025_v50, 0 }
  0x81   : > { %v4003_v61 = vsub.f32 %v495_v59, %v496_v62  ;;  %v4005_v43 = vadd.f32 %v498_v36, %v498_v36  ;;  %v744_v55 = vmul.f32 -0.001358992, %v743_v11  ;;  %v751_v57 = vmul.f32 -0.00019511016, %v743_v11 }
  0x82   : > { %v1143_v5 = vadd.s32 1, %v1139_v34  ;;  %v1483_v31 = vshrl.u32 %v1482_v56, 23  ;;  %vm764_vm14 = vcmp.eq.s32.totalorder %v4025_v50, 2  ;;  %vm916_vm15 = vcmp.eq.s32.totalorder %v914_v12, 0 }
  0x83   : > { %5284 = vst [vmem:[#allocation9_spill] sm:$0xff] %v4003_v61  ;;  %v502_v46 = vmul.f32 %v4003_v61, %v3981_v27  ;;  %v503_v1 = vmul.f32 %v4005_v43, %v3985_v18  ;;  %v505_v63 = vmul.f32 %v4005_v43, %v3981_v27  ;;  %v506_v45 = vmul.f32 %v4003_v61, %v3985_v18 }
  0x84   : > { %5285 = vst [vmem:[#allocation10_spill] sm:$0xff] %v4005_v43  ;;  %v745_v6 = vadd.f32 0.041655596, %v744_v55  ;;  %v752_v8 = vadd.f32 0.008332121, %v751_v57  ;;  %v1144_v7 = vsel %vm1142_vm12, %v1143_v5, %v1139_v34  ;;  %vm760_vm0 = vcmp.lt.s32.totalorder %v4025_v50, 2 }
  0x85   : > { %v4021_v22 = vsub.f32 %v502_v46, %v503_v1  ;;  %v4023_v53 = vadd.f32 %v506_v45, %v505_v63  ;;  %v1145_v13 = vadd.s32 %v1144_v7, %v1140_v3  ;;  %v3105_v62 = vadd.s32 4294967169, %v1483_v31 }
  0x86   : > { %v746_v10 = vmul.f32 %v745_v6, %v743_v11  ;;  %v753_v42 = vmul.f32 %v752_v8, %v743_v11  ;;  %vm919_vm1 = vcmp.eq.s32.totalorder %v914_v12, 2  ;;  %vm758_vm2 = vweird.f32 %v3702_v4 }
  0x87   : > { %5286 = vst [vmem:[#allocation11_spill] sm:$0xff] %v4023_v53  ;;  %v510_v48 = vmul.f32 %v4021_v22, %v3981_v27  ;;  %v511_v39 = vmul.f32 %v4023_v53, %v3985_v18  ;;  %v513_v47 = vmul.f32 %v4023_v53, %v3981_v27  ;;  %v514_v9 = vmul.f32 %v4021_v22, %v3985_v18 }
  0x88   : > { %v747_v52 = vadd.f32 -0.4999988, %v746_v10  ;;  %v754_v33 = vadd.f32 -0.16666654, %v753_v42  ;;  %v1146_v16 = vadd.s32 536870912, %v1145_v13  ;;  %vm915_vm3 = vcmp.lt.s32.totalorder %v914_v12, 2 }
  0x89   : > { %v4036_v40 = vsub.f32 %v510_v48, %v511_v39  ;;  %v4038_v14 = vadd.f32 %v514_v9, %v513_v47  ;;  %v1489_v57 = vadd.s32 1, %v3105_v62  ;;  %v5212_v9 = vand.u32 2147483647, %v4001_v51 }
  0x8a   : > { %v748_v20 = vmul.f32 %v747_v52, %v743_v11  ;;  %v755_v21 = vmul.f32 %v754_v33, %v743_v11  ;;  %v4050_v23 = vshrl.u32 %v1146_v16, 30  ;;  %vm1049_vm7 = vcmp.lt.s32.totalorder %v3711_v15, 0 }
  0x8b   : > { %5287 = vst [vmem:[#allocation12_spill] sm:$0xff] %v4038_v14  ;;  %v518_v17 = vmul.f32 %v4036_v40, %v3981_v27  ;;  %v519_v58 = vmul.f32 %v4038_v14, %v3985_v18  ;;  %v521_v19 = vmul.f32 %v4038_v14, %v3981_v27  ;;  %v522_v54 = vmul.f32 %v4036_v40, %v3985_v18 }
  0x8c   : > { %v749_v36 = vadd.f32 1.0, %v748_v20  ;;  %v756_v29 = vadd.f32 1.0, %v755_v21  ;;  %v1148_v38 = vshll.u32 %v4050_v23, 30  ;;  %vm1490_vm5 = vcmp.gt.s32.totalorder %v1489_v57, 0 }
  0x8d   : > { %v4052_v35 = vsub.f32 %v518_v17, %v519_v58  ;;  %v4054_v59 = vadd.f32 %v522_v54, %v521_v19 }
  0x8e   : > { %v757_v46 = vmul.f32 %v756_v29, %v741_v37  ;;  %v765_v1 = vxor.u32 2147483648, %v749_v36  ;;  %v4067_v63 = vsub.s32 %v1145_v13, %v1148_v38 }
  0x8f   : > { %5288 = vst [vmem:[#allocation13_spill] sm:$0xff] %v4054_v59  ;;  %v526_v44 = vmul.f32 %v4052_v35, %v3981_v27  ;;  %v527_v11 = vmul.f32 %v4054_v59, %v3985_v18  ;;  %v529_v34 = vmul.f32 %v4054_v59, %v3981_v27  ;;  %v530_v3 = vmul.f32 %v4052_v35, %v3985_v18 }
  0x90   : > { %v762_v60 = vxor.u32 2147483648, %v757_v46  ;;  %v766_v5 = vsel %vm764_vm14, %v765_v1, %v757_v46  ;;  %v921_v56 = vsel %vm919_vm1, %v765_v1, %v757_v46  ;;  %vm1150_vm4 = vcmp.lt.s32.totalorder %v4067_v63, 0 }
  0x91   : > { %v4069_v45 = vsub.f32 %v526_v44, %v527_v11  ;;  %v4071_v55 = vadd.f32 %v530_v3, %v529_v34  ;;  %v1151_v47 = vsub.s32 0, %v4067_v63  ;;  %v4136_v11 = vand.u32 8388607, %v5212_v9 }
  0x92   : > { %v763_v48 = vsel %vm761_vm13, %v749_v36, %v762_v60  ;;  %v918_v39 = vsel %vm916_vm15, %v749_v36, %v762_v60  ;;  %v4128_v36 = vadd.s32 %v3987_v2, %v3977_v25  ;;  %v1491_v34 = vsel %vm1490_vm5, %v1489_v57, 0 }
  0x93   : > { %5289 = vst [vmem:[#allocation14_spill] sm:$0xff] %v4071_v55  ;;  %v534_v37 = vmul.f32 %v4069_v45, %v3981_v27  ;;  %v535_v6 = vmul.f32 %v4071_v55, %v3985_v18  ;;  %v537_v8 = vmul.f32 %v4071_v55, %v3981_v27  ;;  %v538_v7 = vmul.f32 %v4069_v45, %v3985_v18 }
  0x94   : > { %v767_v13 = vsel %vm760_vm0, %v763_v48, %v766_v5  ;;  %v922_v31 = vsel %vm915_vm3, %v918_v39, %v921_v56  ;;  %v1152_v16 = vsel %vm1150_vm4, %v1151_v47, %v4067_v63  ;;  %v4166_v47 = vshrl.u32 %v1491_v34, 5 }
  0x95   : > { %v4090_v10 = vsub.f32 %v534_v37, %v535_v6  ;;  %v4092_v42 = vadd.f32 %v538_v7, %v537_v8  ;;  %v4099_v52 = vsel %vm758_vm2, nan, %v767_v13  ;;  %v4103_v33 = vsel %vm758_vm2, nan, %v922_v31 }
  0x96   : > { %5291 = vst [vmem:[#allocation16_spill] sm:$0xff] %v4099_v52  ;;  %v926_v4 = vmul.f32 %v4099_v52, %v3981_v27  ;;  %v927_v19 = vmul.f32 %v4103_v33, %v3985_v18  ;;  %v929_v54 = vmul.f32 %v4103_v33, %v3981_v27  ;;  %v930_v20 = vmul.f32 %v4099_v52, %v3985_v18 }
  0x97   : > { %5290 = vst [vmem:[#allocation15_spill] sm:$0xff] %v4092_v42  ;;  %v542_v17 = vmul.f32 %v4090_v10, %v3981_v27  ;;  %v543_v50 = vmul.f32 %v4092_v42, %v3985_v18  ;;  %v545_v12 = vmul.f32 %v4092_v42, %v3981_v27  ;;  %v546_v58 = vmul.f32 %v4090_v10, %v3985_v18 }
  0x98   : > { %5292 = vst [vmem:[#allocation17_spill] sm:$0xff] %v4103_v33  ;;  %v1153_v29 = vclz %v1152_v16  ;;  %v4130_v38 = vsub.f32 %v926_v4, %v927_v19  ;;  %v4132_v44 = vadd.f32 %v930_v20, %v929_v54  ;;  %v4159_v8 = vand.u32 31, %v1491_v34 }
  0x99   : > { %v4122_v21 = vsub.f32 %v542_v17, %v543_v50  ;;  %v4124_v62 = vadd.f32 %v546_v58, %v545_v12  ;;  %v5306_v33 = vand.u32 2147483647, %v3711_v15  ;;  %v5315_v59 = vmov 920167782  }
  0x9a   : > { %5294 = vst [vmem:[#allocation19_spill] sm:$0xff] %v4130_v38  ;;  %v934_v1 = vmul.f32 %v4130_v38, %v3981_v27  ;;  %v935_v60 = vmul.f32 %v4132_v44, %v3985_v18  ;;  %v937_v57 = vmul.f32 %v4132_v44, %v3981_v27  ;;  %v938_v5 = vmul.f32 %v4130_v38, %v3985_v18 }
  0x9b   : > { %5293 = vst [vmem:[#allocation18_spill] sm:$0xff] %v4124_v62  ;;  %v550_v3 = vmul.f32 %v4122_v21, %v3981_v27  ;;  %v551_v46 = vmul.f32 %v4124_v62, %v3985_v18  ;;  %v553_v25 = vmul.f32 %v4124_v62, %v3981_v27  ;;  %v554_v2 = vmul.f32 %v4122_v21, %v3985_v18 }
  0x9c   : > { %5295 = vst [vmem:[#allocation20_spill] sm:$0xff] %v4132_v44  ;;  %v3100_v6 = vadd.s32 4294967294, %v1153_v29  ;;  %v4161_v7 = vsub.f32 %v934_v1, %v935_v60  ;;  %v4163_v48 = vadd.f32 %v938_v5, %v937_v57  ;;  %v4189_v20 = vsub.s32 32, %v4159_v8 }
  0x9d   : > { %v4155_v56 = vsub.f32 %v550_v3, %v551_v46  ;;  %v4157_v37 = vadd.f32 %v554_v2, %v553_v25  ;;  %v1496_v46 = vshll.u32 %v5213_v24, %v4159_v8  ;;  %vm4286_vm9 = vcmp.le.f32.partialorder %v5306_v33, 0.7853982 }
  0x9e   : > { %5297 = vst [vmem:[#allocation22_spill] sm:$0xff] %v4163_v48  ;;  %v942_v50 = vmul.f32 %v4161_v7, %v3981_v27  ;;  %v943_v12 = vmul.f32 %v4163_v48, %v3985_v18  ;;  %v945_v58 = vmul.f32 %v4163_v48, %v3981_v27  ;;  %v946_v4 = vmul.f32 %v4161_v7, %v3985_v18 }
  0x9f   : > { %5296 = vst [vmem:[#allocation21_spill] sm:$0xff] %v4157_v37  ;;  %v558_v13 = vmul.f32 %v4155_v56, %v3981_v27  ;;  %v559_v31 = vmul.f32 %v4157_v37, %v3985_v18  ;;  %v561_v16 = vmul.f32 %v4157_v37, %v3981_v27  ;;  %v562_v17 = vmul.f32 %v4155_v56, %v3985_v18 }
  0xa0   : > { %vm3101_vm6 = vcmp.lt.s32.totalorder %v3100_v6, 0  ;;  %v4191_v29 = vsub.f32 %v942_v50, %v943_v12  ;;  %v4193_v34 = vadd.f32 %v946_v4, %v945_v58  ;;  %v4221_v50 = vshll.u32 %v3603_v26, %v4159_v8 }
  0xa1   : > { %v4184_v19 = vsub.f32 %v558_v13, %v559_v31  ;;  %v4186_v54 = vadd.f32 %v562_v17, %v561_v16  ;;  %v1156_v3 = vsel %vm3101_vm6, 0, %v3100_v6  ;;  %v1497_v17 = vshrl.u32 %v3603_v26, %v4189_v20 }
  0xa2   : > { %5299 = vst [vmem:[#allocation24_spill] sm:$0xff] %v4193_v34  ;;  %v950_v57 = vmul.f32 %v4191_v29, %v3981_v27  ;;  %v951_v5 = vmul.f32 %v4193_v34, %v3985_v18  ;;  %v953_v6 = vmul.f32 %v4193_v34, %v3981_v27  ;;  %v954_v13 = vmul.f32 %v4191_v29, %v3985_v18 }
  0xa3   : > { %5298 = vst [vmem:[#allocation23_spill] sm:$0xff] %v4186_v54  ;;  %v566_v25 = vmul.f32 %v4184_v19, %v3981_v27  ;;  %v567_v2 = vmul.f32 %v4186_v54, %v3985_v18  ;;  %v569_v1 = vmul.f32 %v4186_v54, %v3981_v27  ;;  %v570_v60 = vmul.f32 %v4184_v19, %v3985_v18 }
  0xa4   : > { %v4223_v12 = vsub.f32 %v950_v57, %v951_v5  ;;  %v4225_v58 = vadd.f32 %v954_v13, %v953_v6  ;;  %v1157_v4 = vsub.s32 32, %v1156_v3  ;;  %v1161_v9 = vsub.s32 4294967266, %v1156_v3 }
  0xa5   : > { %v4213_v31 = vsub.f32 %v566_v25, %v567_v2  ;;  %v4215_v16 = vadd.f32 %v570_v60, %v569_v1  ;;  %v4250_v39 = vshrl.u32 %v3604_v28, %v4189_v20  ;;  %v1158_v30 = vshll.u32 %v4067_v63, %v1156_v3 }
  0xa6   : > { %5301 = vst [vmem:[#allocation26_spill] sm:$0xff] %v4225_v58  ;;  %v958_v26 = vmul.f32 %v4223_v12, %v3981_v27  ;;  %v959_v60 = vmul.f32 %v4225_v58, %v3985_v18  ;;  %v961_v57 = vmul.f32 %v4225_v58, %v3981_v27  ;;  %v962_v5 = vmul.f32 %v4223_v12, %v3985_v18 }
  0xa7   : > { %5300 = vst [vmem:[#allocation25_spill] sm:$0xff] %v4215_v16  ;;  %v574_v24 = vmul.f32 %v4213_v31, %v3981_v27  ;;  %v575_v25 = vmul.f32 %v4215_v16, %v3985_v18  ;;  %v577_v2 = vmul.f32 %v4215_v16, %v3981_v27  ;;  %v578_v1 = vmul.f32 %v4213_v31, %v3985_v18 }
  0xa8   : > { %v1162_v0 = vadd.s32 127, %v1161_v9  ;;  %v4252_v41 = vsub.f32 %v958_v26, %v959_v60  ;;  %v4254_v32 = vadd.f32 %v962_v5, %v961_v57  ;;  %v1159_v49 = vshrl.u32 %v4128_v36, %v1157_v4 }
  0xa9   : > { %v4243_v6 = vsub.f32 %v574_v24, %v575_v25  ;;  %v4245_v13 = vadd.f32 %v578_v1, %v577_v2  ;;  %v1502_v57 = vshll.u32 %v3604_v28, %v4159_v8  ;;  %v4374_v42 = vor.u32 %v4250_v39, %v4221_v50 }
  0xaa   : > { %5303 = vst [vmem:[#allocation28_spill] sm:$0xff] %v4254_v32  ;;  %v966_v1 = vmul.f32 %v4252_v41, %v3981_v27  ;;  %v967_v63 = vmul.f32 %v4254_v32, %v3985_v18  ;;  %v969_v36 = vmul.f32 %v4254_v32, %v3981_v27  ;;  %v970_v3 = vmul.f32 %v4252_v41, %v3985_v18 }
  0xab   : > { %5302 = vst [vmem:[#allocation27_spill] sm:$0xff] %v4245_v13  ;;  %v582_v24 = vmul.f32 %v4243_v6, %v3981_v27  ;;  %v583_v25 = vmul.f32 %v4245_v13, %v3985_v18  ;;  %v585_v9 = vmul.f32 %v4245_v13, %v3981_v27  ;;  %v586_v2 = vmul.f32 %v4243_v6, %v3985_v18 }
  0xac   : > { %v1163_v60 = vshll.u32 %v1162_v0, 23  ;;  %v4280_v5 = vsub.f32 %v966_v1, %v967_v63  ;;  %v4282_v44 = vadd.f32 %v970_v3, %v969_v36  ;;  %v1160_v34 = vor.u32 %v1159_v49, %v1158_v30 }
  0xad   : > { %v4274_v4 = vsub.f32 %v582_v24, %v583_v25  ;;  %v4276_v26 = vadd.f32 %v586_v2, %v585_v9  ;;  %v1171_v24 = vsub.s32 4, %v4050_v23  ;;  %v4311_v3 = vor.u32 %v1497_v17, %v1496_v46 }
  0xae   : > { %5305 = vst [vmem:[#allocation30_spill] sm:$0xff] %v4282_v44  ;;  %v974_v33 = vmul.f32 %v4280_v5, %v3981_v27  ;;  %v975_v30 = vmul.f32 %v4282_v44, %v3985_v18  ;;  %v977_v49 = vmul.f32 %v4282_v44, %v3981_v27  ;;  %v978_v2 = vmul.f32 %v4280_v5, %v3985_v18 }
  0xaf   : > { %5304 = vst [vmem:[#allocation29_spill] sm:$0xff] %v4276_v26  ;;  %v590_v25 = vmul.f32 %v4274_v4, %v3981_v27  ;;  %v591_v0 = vmul.f32 %v4276_v26, %v3985_v18  ;;  %v593_v28 = vmul.f32 %v4276_v26, %v3981_v27  ;;  %v594_v9 = vmul.f32 %v4274_v4, %v3985_v18 }
  0xb0   : > { %v1164_v36 = vor.u32 4788187, %v1163_v60  ;;  %v4313_v48 = vsub.f32 %v974_v33, %v975_v30  ;;  %v4315_v14 = vadd.f32 %v978_v2, %v977_v49  ;;  %v1167_v53 = vcvt.s32.f32 %v1160_v34 }
  0xb1   : > { %v4307_v1 = vsub.f32 %v590_v25, %v591_v0  ;;  %v4309_v63 = vadd.f32 %v594_v9, %v593_v28  ;;  %v1172_v32 = vsel %vm1049_vm7, %v1171_v24, %v4050_v23  ;;  %v5313_v33 = vmov 2102212464  }
  0xb2   : > { %5310 = vst [vmem:[#allocation32_spill] sm:$0xff] %v4315_v14  ;;  %v982_v17 = vmul.f32 %v4313_v48, %v3981_v27  ;;  %v983_v34 = vmul.f32 %v4315_v14, %v3985_v18  ;;  %v985_v23 = vmul.f32 %v4315_v14, %v3981_v27  ;;  %v986_v24 = vmul.f32 %v4313_v48, %v3985_v18 }
  0xb3   : > { %5309 = vst [vmem:[#allocation31_spill] sm:$0xff] %v4309_v63  ;;  %v598_v58 = vmul.f32 %v4307_v1, %v3981_v27  ;;  %v599_v25 = vmul.f32 %v4309_v63, %v3985_v18  ;;  %v601_v60 = vmul.f32 %v4309_v63, %v3981_v27  ;;  %v602_v46 = vmul.f32 %v4307_v1, %v3985_v18 }
  0xb4   : > { %v1165_v9 = vand.u32 2147483647, %v1164_v36  ;;  %v1503_v30 = vshrl.u32 %v5313_v33, %v4189_v20  ;;  %v4342_v49 = vsub.f32 %v982_v17, %v983_v34  ;;  %v4344_v2 = vadd.f32 %v986_v24, %v985_v23 }
  0xb5   : > { %v4336_v0 = vsub.f32 %v598_v58, %v599_v25  ;;  %v4338_v28 = vadd.f32 %v602_v46, %v601_v60  ;;  %v1505_v55 = vshll.u32 %v5313_v33, %v4159_v8  ;;  %v1506_v14 = vshrl.u32 %v5315_v59, %v4189_v20 }
  0xb6   : > { %5314 = vst [vmem:[#allocation35_spill] sm:$0xff] %v4344_v2  ;;  %v1168_v36 = vmul.f32 %v1167_v53, %v1165_v9  ;;  %v1174_v60 = vsel %vm4286_vm9, 0, %v1172_v32  ;;  %v990_v46 = vmul.f32 %v4342_v49, %v3981_v27  ;;  %v991_v17 = vmul.f32 %v4344_v2, %v3985_v18 }
  0xb7   : > { %5311 = vst [vmem:[#allocation33_spill] sm:$0xff] %v4336_v0  ;;  %v606_v58 = vmul.f32 %v4336_v0, %v3981_v27  ;;  %v607_v25 = vmul.f32 %v4338_v28, %v3985_v18  ;;  %v993_v34 = vmul.f32 %v4344_v2, %v3981_v27  ;;  %v994_v23 = vmul.f32 %v4342_v49, %v3985_v18 }
  0xb8   : > { %5312 = vst [vmem:[#allocation34_spill] sm:$0xff] %v4338_v28  ;;  %v1169_v33 = vxor.u32 2147483648, %v1168_v36  ;;  %v1508_v53 = vshll.u32 %v5315_v59, %v4159_v8  ;;  %v5316_v9 = vmov 1326507024   ;;  %v4368_v44 = vsub.f32 %v990_v46, %v991_v17 }
  0xb9   : > { %v608_v24 = vsub.f32 %v606_v58, %v607_v25  ;;  %v1509_v32 = vshrl.u32 %v5316_v9, %v4189_v20  ;;  %v4370_v62 = vadd.f32 %v994_v23, %v993_v34  ;;  %v4376_v2 = vor.u32 %v1503_v30, %v1502_v57 }
  0xba   : > { %v1170_v58 = vsel %vm1049_vm7, %v1169_v33, %v1168_v36  ;;  %v1345_v25 = vadd.s32 3, %v1174_v60  ;;  %v1507_v59 = vor.u32 %v1506_v14, %v1505_v55  ;;  %v998_v8 = vmul.f32 %v4368_v44, %v3981_v27 }
  0xbb   : > { %5317 = vst [vmem:[#allocation36_spill] sm:$0xff] %v4370_v62  ;;  %v2045_v54 = vpack.c.bf16 %v608_v24, %v4336_v0  ;;  %v999_v46 = vmul.f32 %v4370_v62, %v3985_v18  ;;  %v1001_v17 = vmul.f32 %v4370_v62, %v3981_v27  ;;  %v1002_v39 = vmul.f32 %v4368_v44, %v3985_v18 }
  0xbc   : > { %v4392_v50 = vsel %vm4286_vm9, %v3711_v15, %v1170_v58  ;;  %v4394_v57 = vand.u32 3, %v1174_v60  ;;  %v1510_v14 = vor.u32 %v1509_v32, %v1508_v53  ;;  %vm1514_vm8 = vcmp.lt.s32.totalorder %v4166_v47, 4 }
  0xbd   : > { %2582 = vmatpush.bf16.msra.mxu0 %v2045_v54  ;;  %v4397_v55 = vsub.f32 %v998_v8, %v999_v46  ;;  %v4399_v30 = vadd.f32 %v1002_v39, %v1001_v17  ;;  %v1175_v36 = vmul.f32 %v4392_v50, %v4392_v50  ;;  %vm1511_vm10 = vcmp.lt.s32.totalorder %v4166_v47, 1 }
  0xbe   : > { %v4404_v54 = vand.u32 3, %v1345_v25  ;;  %vm1512_vm11 = vcmp.lt.s32.totalorder %v4166_v47, 2  ;;  %vm1513_vm12 = vcmp.lt.s32.totalorder %v4166_v47, 3  ;;  %v1520_v43 = vsel %vm1514_vm8, %v1507_v59, 920167782 }
  0xbf   : > { %5318 = vst [vmem:[#allocation37_spill] sm:$0xff] %v4399_v30  ;;  %v1006_v60 = vmul.f32 %v4397_v55, %v3981_v27  ;;  %v1007_v34 = vmul.f32 %v4399_v30, %v3985_v18  ;;  %v1009_v23 = vmul.f32 %v4399_v30, %v3981_v27  ;;  %v1010_v24 = vmul.f32 %v4397_v55, %v3985_v18 }
  0xc0   : > { %v1176_v33 = vmul.f32 -0.001358992, %v1175_v36  ;;  %v1183_v53 = vmul.f32 -0.00019511016, %v1175_v36  ;;  %v1519_v9 = vsel %vm1511_vm10, %v4311_v3, %v4374_v42  ;;  %v1523_v32 = vsel %vm1511_vm10, %v4374_v42, %v4376_v2 }
  0xc1   : > { %v4426_v58 = vsub.f32 %v1006_v60, %v1007_v34  ;;  %v4428_v25 = vadd.f32 %v1010_v24, %v1009_v23  ;;  %v1521_v8 = vsel %vm1513_vm12, %v4376_v2, %v1520_v43  ;;  %v1524_v46 = vsel %vm1514_vm8, %v1510_v14, 1326507024 }
  0xc2   : > { %v1177_v17 = vadd.f32 0.041655596, %v1176_v33  ;;  %v1184_v39 = vadd.f32 0.008332121, %v1183_v53  ;;  %v1525_v62 = vsel %vm1513_vm12, %v1507_v59, %v1524_v46  ;;  %v5320_v37 = vor.u32 8388608, %v4136_v11 }
  0xc3   : > { %5319 = vst [vmem:[#allocation38_spill] sm:$0xff] %v4428_v25  ;;  %v1014_v60 = vmul.f32 %v4426_v58, %v3981_v27  ;;  %v1015_v34 = vmul.f32 %v4428_v25, %v3985_v18  ;;  %v1017_v43 = vmul.f32 %v4428_v25, %v3981_v27  ;;  %v1018_v14 = vmul.f32 %v4426_v58, %v3985_v18 }
  0xc4   : > { %v4439_v30 = vshll.u32 %v5320_v37, 8  ;;  %vm1196_vm13 = vcmp.eq.s32.totalorder %v4394_v57, 2  ;;  %vm1351_vm14 = vcmp.eq.s32.totalorder %v4404_v54, 2  ;;  %v1178_v59 = vmul.f32 %v1177_v17, %v1175_v36 }
  0xc5   : > { %v1185_v11 = vmul.f32 %v1184_v39, %v1175_v36  ;;  %v1526_v37 = vsel %vm1512_vm11, %v1523_v32, %v1525_v62  ;;  %v4454_v24 = vsub.f32 %v1014_v60, %v1015_v34  ;;  %v4456_v33 = vadd.f32 %v1018_v14, %v1017_v43 }
  0xc6   : > { %v1528_v23 = vand.u32 65535, %v4439_v30  ;;  %vm1193_vm15 = vcmp.eq.s32.totalorder %v4394_v57, 0  ;;  %vm1348_vm0 = vcmp.eq.s32.totalorder %v4404_v54, 0  ;;  %v4461_v53 = vshrl.u32 %v4439_v30, 16 }
  0xc7   : > { %5321 = vst [vmem:[#allocation39_spill] sm:$0xff] %v4456_v33  ;;  %v1530_v46 = vand.u32 65535, %v1526_v37  ;;  %v1179_v25 = vadd.f32 -0.4999988, %v1178_v59  ;;  %v1186_v17 = vadd.f32 -0.16666654, %v1185_v11  ;;  %v1522_v62 = vsel %vm1512_vm11, %v1519_v9, %v1521_v8 }
  0xc8   : > { %vm1192_vm1 = vcmp.lt.s32.totalorder %v4394_v57, 2  ;;  %vm1347_vm2 = vcmp.lt.s32.totalorder %v4404_v54, 2  ;;  %v1531_v32 = vshrl.u32 %v1526_v37, 16  ;;  %v1022_v39 = vmul.f32 %v4454_v24, %v3981_v27 }
  0xc9   : > { %v1023_v60 = vmul.f32 %v4456_v33, %v3985_v18  ;;  %v1025_v34 = vmul.f32 %v4456_v33, %v3981_v27  ;;  %v1026_v43 = vmul.f32 %v4454_v24, %v3985_v18  ;;  %vm1190_vm3 = vweird.f32 %v3711_v15 }
  0xca   : > { %v1180_v14 = vmul.f32 %v1179_v25, %v1175_v36  ;;  %v1187_v59 = vmul.f32 %v1186_v17, %v1175_v36  ;;  %v1533_v11 = vmul.u32 %v1531_v32, %v1528_v23  ;;  %v1552_v13 = vand.u32 65535, %v1522_v62 }
  0xcb   : > { %v4476_v9 = vsub.f32 %v1022_v39, %v1023_v60  ;;  %v4478_v8 = vadd.f32 %v1026_v43, %v1025_v34  ;;  %v1532_v37 = vmul.u32 %v1530_v46, %v1528_v23  ;;  %v4481_v16 = vmul.u32 %v1530_v46, %v4461_v53 }
  0xcc   : > { %v1181_v63 = vadd.f32 1.0, %v1180_v14  ;;  %v1188_v26 = vadd.f32 1.0, %v1187_v59  ;;  %v1535_v33 = vmul.u32 %v1531_v32, %v4461_v53  ;;  %v1536_v0 = vshll.u32 %v1533_v11, 16 }
  0xcd   : > { %5322 = vst [vmem:[#allocation40_spill] sm:$0xff] %v4478_v8  ;;  %v1030_v28 = vmul.f32 %v4476_v9, %v3981_v27  ;;  %v1031_v36 = vmul.f32 %v4478_v8, %v3985_v18  ;;  %v1033_v25 = vmul.f32 %v4478_v8, %v3981_v27  ;;  %v1034_v17 = vmul.f32 %v4476_v9, %v3985_v18 }
  0xce   : > { %v1189_v46 = vmul.f32 %v1188_v26, %v4392_v50  ;;  %v1197_v39 = vxor.u32 2147483648, %v1181_v63  ;;  %v1537_v60 = vshrl.u32 %v1533_v11, 16  ;;  %v1538_v34 = vshll.u32 %v4481_v16, 16 }
  0xcf   : > { %v4494_v32 = vsub.f32 %v1030_v28, %v1031_v36  ;;  %v4496_v43 = vadd.f32 %v1034_v17, %v1033_v25  ;;  %vm1540_vm4 = vc.u32 %v1532_v37, %v1536_v0  ;;  %v1542_v14 = vadd.s32 %v1536_v0, %v1532_v37 }
  0xd0   : > { %v1194_v59 = vxor.u32 2147483648, %v1189_v46  ;;  %v1198_v38 = vsel %vm1196_vm13, %v1197_v39, %v1189_v46  ;;  %v1353_v8 = vsel %vm1351_vm14, %v1197_v39, %v1189_v46  ;;  %v5325_v52 = vmov 0  }
  0xd1   : > { %5323 = vst [vmem:[#allocation41_spill] sm:$0xff] %v4494_v32  ;;  %v1541_v61 = vsel %vm1540_vm4, 1, %v5325_v52  ;;  %v1038_v26 = vmul.f32 %v4494_v32, %v3981_v27  ;;  %v1039_v28 = vmul.f32 %v4496_v43, %v3985_v18  ;;  %vm1544_vm5 = vc.u32 %v1542_v14, %v1538_v34 }
  0xd2   : > { %5324 = vst [vmem:[#allocation42_spill] sm:$0xff] %v4496_v43  ;;  %v1543_v50 = vadd.s32 %v1541_v61, %v1535_v33  ;;  %v1195_v0 = vsel %vm1193_vm15, %v1181_v63, %v1194_v59  ;;  %v1350_v11 = vsel %vm1348_vm0, %v1181_v63, %v1194_v59  ;;  %v1545_v37 = vsel %vm1544_vm5, 1, %v5325_v52 }
  0xd3   : > { %v1553_v36 = vshrl.u32 %v1522_v62, 16  ;;  %v1040_v25 = vsub.f32 %v1038_v26, %v1039_v28  ;;  %v1199_v17 = vsel %vm1192_vm1, %v1195_v0, %v1198_v38  ;;  %v1354_v46 = vsel %vm1347_vm2, %v1350_v11, %v1353_v8 }
  0xd4   : > { %v1547_v39 = vadd.s32 %v1545_v37, %v1543_v50  ;;  %v4518_v61 = vsel %vm1190_vm3, nan, %v1199_v17  ;;  %v4522_v33 = vsel %vm1190_vm3, nan, %v1354_v46  ;;  %v1554_v63 = vmul.u32 %v1552_v13, %v1528_v23 }
  0xd5   : > { %5326 = vst [vmem:[#allocation43_spill] sm:$0xff] %v4522_v33  ;;  %v1555_v34 = vmul.u32 %v1553_v36, %v1528_v23  ;;  %v2053_v62 = vpack.c.bf16 %v1040_v25, %v4494_v32  ;;  %v1358_v57 = vmul.f32 %v4518_v61, %v3981_v27  ;;  %v1359_v38 = vmul.f32 %v4522_v33, %v3985_v18 }
  0xd6   : > { %v1361_v54 = vmul.f32 %v4522_v33, %v3981_v27  ;;  %v1362_v8 = vmul.f32 %v4518_v61, %v3985_v18  ;;  %v5327_v15 = vmov 683565275   ;;  %v1556_v59 = vmul.u32 %v1552_v13, %v4461_v53 }
  0xd7   : > { %v1495_v14 = vshrl.u32 %v5327_v15, %v4189_v20  ;;  %2631 = vmatpush.bf16.msra.mxu1 %v2053_v62  ;;  %v4536_v23 = vsub.f32 %v1358_v57, %v1359_v38  ;;  %v1516_v26 = vsel %vm1514_vm8, %v4376_v2, 2102212464  ;;  %v1557_v28 = vmul.u32 %v1553_v36, %v4461_v53 }
  0xd8   : > { %v1558_v50 = vshll.u32 %v1555_v34, 16  ;;  %v4542_v0 = vadd.f32 %v1362_v8, %v1361_v54  ;;  %v1539_v11 = vshrl.u32 %v4481_v16, 16  ;;  %v1548_v37 = vadd.s32 %v1547_v39, %v1537_v60 }
  0xd9   : > { %5328 = vst [vmem:[#allocation44_spill] sm:$0xff] %v4536_v23  ;;  %v1560_v25 = vshll.u32 %v1556_v59, 16  ;;  %v1366_v20 = vmul.f32 %v4536_v23, %v3981_v27  ;;  %v1370_v13 = vmul.f32 %v4536_v23, %v3985_v18  ;;  %v1515_v16 = vsel %vm1511_vm10, %v1495_v14, %v4311_v3 }
  0xda   : > { %5329 = vst [vmem:[#allocation45_spill] sm:$0xff] %v4542_v0  ;;  %vm1562_vm6 = vc.u32 %v1554_v63, %v1558_v50  ;;  %v1564_v17 = vadd.s32 %v1558_v50, %v1554_v63  ;;  %v1367_v2 = vmul.f32 %v4542_v0, %v3985_v18  ;;  %v1369_v53 = vmul.f32 %v4542_v0, %v3981_v27 }
  0xdb   : > { %v1563_v36 = vsel %vm1562_vm6, 1, %v5325_v52  ;;  %v1559_v60 = vshrl.u32 %v1555_v34, 16  ;;  %v1517_v63 = vsel %vm1513_vm12, %v4374_v42, %v1516_v26  ;;  %v4565_v38 = vadd.s32 %v1548_v37, %v1539_v11 }
  0xdc   : > { %v1565_v46 = vadd.s32 %v1563_v36, %v1557_v28  ;;  %vm1566_vm7 = vc.u32 %v1564_v17, %v1560_v25  ;;  %v4557_v39 = vsub.f32 %v1366_v20, %v1367_v2  ;;  %v4559_v62 = vadd.f32 %v1370_v13, %v1369_v53 }
  0xdd   : > { %v1567_v57 = vsel %vm1566_vm7, 1, %v5325_v52  ;;  %v1561_v54 = vshrl.u32 %v1556_v59, 16  ;;  %v4567_v8 = vadd.s32 %v1564_v17, %v1560_v25  ;;  %v1518_v59 = vsel %vm1512_vm11, %v1515_v16, %v1517_v63 }
  0xde   : > { %5330 = vst [vmem:[#allocation46_spill] sm:$0xff] %v4559_v62  ;;  %v1569_v15 = vadd.s32 %v1567_v57, %v1565_v46  ;;  %v1374_v3 = vmul.f32 %v4557_v39, %v3981_v27  ;;  %v1375_v34 = vmul.f32 %v4559_v62, %v3985_v18  ;;  %v1377_v14 = vmul.f32 %v4559_v62, %v3981_v27 }
  0xdf   : > { %v1378_v42 = vmul.f32 %v4557_v39, %v3985_v18  ;;  %vm1574_vm9 = vc.u32 %v4565_v38, %v4567_v8  ;;  %v1572_v13 = vmul.u32 %v4439_v30, %v1518_v59  ;;  %vm1481_vm11 = vcmp.lt.s32.totalorder %v4001_v51, 0 }
  0xe0   : > { %v1570_v26 = vadd.s32 %v1569_v15, %v1559_v60  ;;  %v4577_v52 = vsub.f32 %v1374_v3, %v1375_v34  ;;  %vm1622_vm3 = vweird.f32 %v4001_v51 }
  0xe1   : > { %v4579_v28 = vadd.f32 %v1378_v42, %v1377_v14 }
  0xe2   : > { %v1571_v50 = vadd.s32 %v1570_v26, %v1561_v54  ;;  %v1382_v11 = vmul.f32 %v4577_v52, %v3981_v27  ;;  %v1386_v20 = vmul.f32 %v4577_v52, %v3985_v18 }
  0xe3   : > { %5331 = vst [vmem:[#allocation47_spill] sm:$0xff] %v4579_v28  ;;  %v1383_v37 = vmul.f32 %v4579_v28, %v3985_v18  ;;  %v1385_v25 = vmul.f32 %v4579_v28, %v3981_v27 }
  0xe4   : > { %v1575_v47 = vadd.s32 1, %v1571_v50 }
  0xe5   : > { %v4594_v17 = vsub.f32 %v1382_v11, %v1383_v37  ;;  %v4596_v2 = vadd.f32 %v1386_v20, %v1385_v25 }
  0xe6   : > { %v1576_v53 = vsel %vm1574_vm9, %v1575_v47, %v1571_v50 }
  0xe7   : > { %5332 = vst [vmem:[#allocation48_spill] sm:$0xff] %v4596_v2  ;;  %v1390_v36 = vmul.f32 %v4594_v17, %v3981_v27  ;;  %v1391_v16 = vmul.f32 %v4596_v2, %v3985_v18  ;;  %v1393_v60 = vmul.f32 %v4596_v2, %v3981_v27  ;;  %v1394_v46 = vmul.f32 %v4594_v17, %v3985_v18 }
  0xe8   : > { %v1577_v63 = vadd.s32 %v1576_v53, %v1572_v13 }
  0xe9   : > { %v4606_v30 = vsub.f32 %v1390_v36, %v1391_v16  ;;  %v4608_v57 = vadd.f32 %v1394_v46, %v1393_v60 }
  0xea   : > { %v1578_v54 = vadd.s32 536870912, %v1577_v63 }
  0xeb   : > { %5333 = vst [vmem:[#allocation49_spill] sm:$0xff] %v4608_v57  ;;  %v1398_v15 = vmul.f32 %v4606_v30, %v3981_v27  ;;  %v1399_v3 = vmul.f32 %v4608_v57, %v3985_v18  ;;  %v1401_v34 = vmul.f32 %v4608_v57, %v3981_v27  ;;  %v1402_v14 = vmul.f32 %v4606_v30, %v3985_v18 }
  0xec   : > { %v4618_v42 = vshrl.u32 %v1578_v54, 30 }
  0xed   : > { %v4620_v26 = vsub.f32 %v1398_v15, %v1399_v3  ;;  %v4622_v59 = vadd.f32 %v1402_v14, %v1401_v34 }
  0xee   : > { %v1580_v50 = vshll.u32 %v4618_v42, 30 }
  0xef   : > { %5334 = vst [vmem:[#allocation50_spill] sm:$0xff] %v4622_v59  ;;  %v1406_v11 = vmul.f32 %v4620_v26, %v3981_v27  ;;  %v1407_v37 = vmul.f32 %v4622_v59, %v3985_v18  ;;  %v1409_v25 = vmul.f32 %v4622_v59, %v3981_v27  ;;  %v1410_v20 = vmul.f32 %v4620_v26, %v3985_v18 }
  0xf0   : > { %v1581_v13 = vsub.s32 %v1577_v63, %v1580_v50 }
  0xf1   : > { %v4633_v47 = vsub.f32 %v1406_v11, %v1407_v37  ;;  %v4635_v53 = vadd.f32 %v1410_v20, %v1409_v25 }
  0xf2   : > { %vm1582_vm8 = vcmp.lt.s32.totalorder %v1581_v13, 0  ;;  %v1583_v36 = vsub.s32 0, %v1581_v13 }
  0xf3   : > { %5335 = vst [vmem:[#allocation51_spill] sm:$0xff] %v4635_v53  ;;  %v1414_v16 = vmul.f32 %v4633_v47, %v3981_v27  ;;  %v1415_v60 = vmul.f32 %v4635_v53, %v3985_v18  ;;  %v1417_v46 = vmul.f32 %v4635_v53, %v3981_v27  ;;  %v1418_v54 = vmul.f32 %v4633_v47, %v3985_v18 }
  0xf4   : > { %v1584_v15 = vsel %vm1582_vm8, %v1583_v36, %v1581_v13 }
  0xf5   : > { %v4645_v63 = vsub.f32 %v1414_v16, %v1415_v60  ;;  %v4647_v3 = vadd.f32 %v1418_v54, %v1417_v46  ;;  %v1585_v34 = vclz %v1584_v15  ;;  %v1573_v15 = vadd.s32 %v4567_v8, %v4565_v38 }
  0xf7   : > { %5336 = vst [vmem:[#allocation52_spill] sm:$0xff] %v4647_v3  ;;  %v1422_v14 = vmul.f32 %v4645_v63, %v3981_v27  ;;  %v1423_v50 = vmul.f32 %v4647_v3, %v3985_v18  ;;  %v1425_v11 = vmul.f32 %v4647_v3, %v3981_v27  ;;  %v1426_v37 = vmul.f32 %v4645_v63, %v3985_v18 }
  0xf8   : > { %v3106_v25 = vadd.s32 4294967294, %v1585_v34 }
  0xf9   : > { %v4657_v20 = vsub.f32 %v1422_v14, %v1423_v50  ;;  %v4659_v36 = vadd.f32 %v1426_v37, %v1425_v11 }
  0xfa   : > { %vm3107_vm10 = vcmp.lt.s32.totalorder %v3106_v25, 0 }
  0xfb   : > { %5337 = vst [vmem:[#allocation53_spill] sm:$0xff] %v4659_v36  ;;  %v1430_v16 = vmul.f32 %v4657_v20, %v3981_v27  ;;  %v1431_v60 = vmul.f32 %v4659_v36, %v3985_v18  ;;  %v1433_v46 = vmul.f32 %v4659_v36, %v3981_v27  ;;  %v1434_v54 = vmul.f32 %v4657_v20, %v3985_v18 }
  0xfc   : > { %v1588_v34 = vsel %vm3107_vm10, 0, %v3106_v25 }
  0xfd   : > { %v4671_v14 = vsub.f32 %v1430_v16, %v1431_v60  ;;  %v4673_v50 = vadd.f32 %v1434_v54, %v1433_v46  ;;  %v1589_v11 = vsub.s32 32, %v1588_v34  ;;  %v1590_v37 = vshll.u32 %v1581_v13, %v1588_v34 }
  0xfe   : > { %v1593_v0 = vsub.s32 4294967266, %v1588_v34 }
  0xff   : > { %5338 = vst [vmem:[#allocation54_spill] sm:$0xff] %v4673_v50  ;;  %v1438_v33 = vmul.f32 %v4671_v14, %v3981_v27  ;;  %v1439_v28 = vmul.f32 %v4673_v50, %v3985_v18  ;;  %v1441_v62 = vmul.f32 %v4673_v50, %v3981_v27  ;;  %v1442_v38 = vmul.f32 %v4671_v14, %v3985_v18 }
 0x100   : > { %v1591_v8 = vshrl.u32 %v1573_v15, %v1589_v11  ;;  %v1594_v25 = vadd.s32 127, %v1593_v0 }
 0x101   : > { %v4683_v16 = vsub.f32 %v1438_v33, %v1439_v28  ;;  %v4685_v60 = vadd.f32 %v1442_v38, %v1441_v62 }
 0x102   : > { %v1592_v13 = vor.u32 %v1591_v8, %v1590_v37  ;;  %v1595_v46 = vshll.u32 %v1594_v25, 23 }
 0x103   : > { %5339 = vst [vmem:[#allocation55_spill] sm:$0xff] %v4685_v60  ;;  %v1446_v54 = vmul.f32 %v4683_v16, %v3981_v27  ;;  %v1447_v34 = vmul.f32 %v4685_v60, %v3985_v18  ;;  %v1449_v57 = vmul.f32 %v4685_v60, %v3981_v27  ;;  %v1450_v2 = vmul.f32 %v4683_v16, %v3985_v18 }
 0x104   : > { %v1596_v15 = vor.u32 4788187, %v1595_v46  ;;  %v1599_v0 = vcvt.s32.f32 %v1592_v13 }
 0x105   : > { %v4695_v33 = vsub.f32 %v1446_v54, %v1447_v34  ;;  %v4697_v62 = vadd.f32 %v1450_v2, %v1449_v57  ;;  %v1603_v2 = vsub.s32 4, %v4618_v42  ;;  %v5342_v57 = vand.u32 2147483647, %v4001_v51 }
 0x106   : > { %v1597_v28 = vand.u32 2147483647, %v1596_v15 }
 0x107   : > { %5340 = vst [vmem:[#allocation56_spill] sm:$0xff] %v4697_v62  ;;  %v1454_v11 = vmul.f32 %v4695_v33, %v3981_v27  ;;  %v1455_v37 = vmul.f32 %v4697_v62, %v3985_v18  ;;  %v1457_v38 = vmul.f32 %v4697_v62, %v3981_v27  ;;  %v1458_v8 = vmul.f32 %v4695_v33, %v3985_v18 }
 0x108   : > { %v1600_v25 = vmul.f32 %v1599_v0, %v1597_v28  ;;  %vm1480_vm12 = vcmp.le.f32.partialorder %v5342_v57, 0.7853982 }
 0x109   : > { %v4707_v46 = vsub.f32 %v1454_v11, %v1455_v37  ;;  %v4709_v13 = vadd.f32 %v1458_v8, %v1457_v38  ;;  %v1604_v8 = vsel %vm1481_vm11, %v1603_v2, %v4618_v42 }
 0x10a   : > { %v1601_v54 = vxor.u32 2147483648, %v1600_v25  ;;  %v1606_v3 = vsel %vm1480_vm12, 0, %v1604_v8 }
 0x10b   : > { %5341 = vst [vmem:[#allocation57_spill] sm:$0xff] %v4709_v13  ;;  %v1462_v34 = vmul.f32 %v4707_v46, %v3981_v27  ;;  %v1463_v15 = vmul.f32 %v4709_v13, %v3985_v18  ;;  %v1465_v0 = vmul.f32 %v4709_v13, %v3981_v27  ;;  %v1466_v28 = vmul.f32 %v4707_v46, %v3985_v18 }
 0x10c   : > { %v1602_v11 = vsel %vm1481_vm11, %v1601_v54, %v1600_v25 }
 0x10d   : > { %v4723_v37 = vsub.f32 %v1462_v34, %v1463_v15  ;;  %v4725_v38 = vadd.f32 %v1466_v28, %v1465_v0  ;;  %v1605_v57 = vsel %vm1480_vm12, %v4001_v51, %v1602_v11  ;;  %v1777_v15 = vadd.s32 3, %v1606_v3 }
 0x10e   : > { %v1607_v53 = vmul.f32 %v1605_v57, %v1605_v57  ;;  %v1623_v11 = vand.u32 3, %v1606_v3 }
 0x10f   : > { %5343 = vst [vmem:[#allocation58_spill] sm:$0xff] %v4725_v38  ;;  %v1470_v59 = vmul.f32 %v4723_v37, %v3981_v27  ;;  %v1471_v36 = vmul.f32 %v4725_v38, %v3985_v18  ;;  %v1778_v62 = vand.u32 3, %v1777_v15 }
 0x110   : > { %v1608_v60 = vmul.f32 -0.001358992, %v1607_v53  ;;  %v1615_v50 = vmul.f32 -0.00019511016, %v1607_v53  ;;  %vm1628_vm13 = vcmp.eq.s32.totalorder %v1623_v11, 2  ;;  %vm1624_vm15 = vcmp.lt.s32.totalorder %v1623_v11, 2 }
 0x111   : > { %v1472_v13 = vsub.f32 %v1470_v59, %v1471_v36  ;;  %vm1783_vm14 = vcmp.eq.s32.totalorder %v1778_v62, 2  ;;  %vm1625_vm0 = vcmp.eq.s32.totalorder %v1623_v11, 0  ;;  %vm1780_vm1 = vcmp.eq.s32.totalorder %v1778_v62, 0 }
 0x112   : > { %v1609_v25 = vadd.f32 0.041655596, %v1608_v60  ;;  %v1616_v54 = vadd.f32 0.008332121, %v1615_v50  ;;  %vm1779_vm2 = vcmp.lt.s32.totalorder %v1778_v62, 2 }
 0x113   : > { %v2061_v34 = vpack.c.bf16 %v1472_v13, %v4723_v37 }
 0x114   : > { %v1610_v0 = vmul.f32 %v1609_v25, %v1607_v53  ;;  %v1617_v42 = vmul.f32 %v1616_v54, %v1607_v53 }
 0x115   : > { %2680 = vmatpush.bf16.msra.mxu2 %v2061_v34 }
 0x116   : > { %v1611_v2 = vadd.f32 -0.4999988, %v1610_v0  ;;  %v1618_v28 = vadd.f32 -0.16666654, %v1617_v42 }
 0x118   : > { %v1612_v32 = vmul.f32 %v1611_v2, %v1607_v53  ;;  %v1619_v43 = vmul.f32 %v1618_v28, %v1607_v53 }
 0x11a   : > { %v1613_v23 = vadd.f32 1.0, %v1612_v32  ;;  %v1620_v38 = vadd.f32 1.0, %v1619_v43 }
 0x11c   : > { %v1621_v8 = vmul.f32 %v1620_v38, %v1605_v57  ;;  %v1629_v59 = vxor.u32 2147483648, %v1613_v23 }
 0x11e   : > { %v1626_v36 = vxor.u32 2147483648, %v1621_v8  ;;  %v1630_v50 = vsel %vm1628_vm13, %v1629_v59, %v1621_v8  ;;  %v1785_v60 = vsel %vm1783_vm14, %v1629_v59, %v1621_v8 }
 0x120   : > { %v1627_v13 = vsel %vm1625_vm0, %v1613_v23, %v1626_v36  ;;  %v1782_v3 = vsel %vm1780_vm1, %v1613_v23, %v1626_v36 }
 0x121   : > { %v1631_v25 = vsel %vm1624_vm15, %v1627_v13, %v1630_v50  ;;  %v1786_v54 = vsel %vm1779_vm2, %v1782_v3, %v1785_v60 }
 0x122   : > { %v4735_v53 = vsel %vm1622_vm3, nan, %v1631_v25  ;;  %v4737_v32 = vsel %vm1622_vm3, nan, %v1786_v54 }
 0x123   : > { %5344 = vst [vmem:[#allocation59_spill] sm:$0xff] %v4737_v32  ;;  %v1790_v43 = vmul.f32 %v4735_v53, %v3981_v27  ;;  %v1791_v38 = vmul.f32 %v4737_v32, %v3985_v18  ;;  %v1793_v62 = vmul.f32 %v4737_v32, %v3981_v27  ;;  %v1794_v51 = vmul.f32 %v4735_v53, %v3985_v18 }
 0x125   : > { %v4747_v57 = vsub.f32 %v1790_v43, %v1791_v38  ;;  %v4749_v23 = vadd.f32 %v1794_v51, %v1793_v62 }
 0x127   : > { %5345 = vst [vmem:[#allocation60_spill] sm:$0xff] %v4749_v23  ;;  %v1798_v34 = vmul.f32 %v4747_v57, %v3981_v27  ;;  %v1799_v15 = vmul.f32 %v4749_v23, %v3985_v18  ;;  %v1801_v0 = vmul.f32 %v4749_v23, %v3981_v27  ;;  %v1802_v42 = vmul.f32 %v4747_v57, %v3985_v18 }
 0x129   : > { %v4759_v2 = vsub.f32 %v1798_v34, %v1799_v15  ;;  %v4761_v28 = vadd.f32 %v1802_v42, %v1801_v0 }
 0x12b   : > { %v1806_v11 = vmul.f32 %v4759_v2, %v3981_v27  ;;  %v1807_v8 = vmul.f32 %v4761_v28, %v3985_v18  ;;  %v1809_v59 = vmul.f32 %v4761_v28, %v3981_v27  ;;  %v1810_v36 = vmul.f32 %v4759_v2, %v3985_v18 }
 0x12d   : > { %v4771_v50 = vsub.f32 %v1806_v11, %v1807_v8  ;;  %v4773_v60 = vadd.f32 %v1810_v36, %v1809_v59 }
 0x12f   : > { %5346 = vst [vmem:[#allocation61_spill] sm:$0xff] %v4773_v60  ;;  %v1814_v13 = vmul.f32 %v4771_v50, %v3981_v27  ;;  %v1815_v3 = vmul.f32 %v4773_v60, %v3985_v18  ;;  %v1817_v25 = vmul.f32 %v4773_v60, %v3981_v27  ;;  %v1818_v54 = vmul.f32 %v4771_v50, %v3985_v18 }
 0x131   : > { %v4783_v43 = vsub.f32 %v1814_v13, %v1815_v3  ;;  %v4785_v38 = vadd.f32 %v1818_v54, %v1817_v25 }
 0x133   : > { %v1822_v62 = vmul.f32 %v4783_v43, %v3981_v27  ;;  %v1823_v51 = vmul.f32 %v4785_v38, %v3985_v18  ;;  %v1825_v34 = vmul.f32 %v4785_v38, %v3981_v27  ;;  %v1826_v15 = vmul.f32 %v4783_v43, %v3985_v18 }
 0x135   : > { %v4795_v0 = vsub.f32 %v1822_v62, %v1823_v51  ;;  %v4797_v42 = vadd.f32 %v1826_v15, %v1825_v34 }
 0x137   : > { %v1830_v11 = vmul.f32 %v4795_v0, %v3981_v27  ;;  %v1831_v8 = vmul.f32 %v4797_v42, %v3985_v18  ;;  %v1833_v59 = vmul.f32 %v4797_v42, %v3981_v27  ;;  %v1834_v36 = vmul.f32 %v4795_v0, %v3985_v18 }
 0x139   : > { %v4807_v13 = vsub.f32 %v1830_v11, %v1831_v8  ;;  %v4809_v3 = vadd.f32 %v1834_v36, %v1833_v59 }
 0x13b   : > { %v1838_v25 = vmul.f32 %v4807_v13, %v3981_v27  ;;  %v1839_v54 = vmul.f32 %v4809_v3, %v3985_v18  ;;  %v1841_v62 = vmul.f32 %v4809_v3, %v3981_v27  ;;  %v1842_v51 = vmul.f32 %v4807_v13, %v3985_v18 }
 0x13d   : > { %v4819_v34 = vsub.f32 %v1838_v25, %v1839_v54  ;;  %v4821_v15 = vadd.f32 %v1842_v51, %v1841_v62  ;;  %v2044_v25 = vpack.c.bf16 %v4307_v1, %v4274_v4  ;;  %v2052_v54 = vpack.c.bf16 %v4476_v9, %v4454_v24 }
 0x13e   : > { %v2060_v62 = vpack.c.bf16 %v4707_v46, %v4695_v33  ;;  %v2043_v24 = vpack.c.bf16 %v4243_v6, %v4213_v31  ;;  %v2051_v9 = vpack.c.bf16 %v4426_v58, %v4397_v55  ;;  %v2059_v33 = vpack.c.bf16 %v4683_v16, %v4671_v14 }
 0x13f   : > { %v1846_v11 = vmul.f32 %v4819_v34, %v3981_v27  ;;  %v1847_v8 = vmul.f32 %v4821_v15, %v3985_v18  ;;  %v1849_v59 = vmul.f32 %v4821_v15, %v3981_v27  ;;  %v1850_v36 = vmul.f32 %v4819_v34, %v3985_v18  ;;  %2583 = vmatpush.bf16.msra.mxu0 %v2044_v25 }
 0x140   : > { %2632 = vmatpush.bf16.msra.mxu1 %v2052_v54  ;;  %2681 = vmatpush.bf16.msra.mxu2 %v2060_v62  ;;  %v2042_v55 = vpack.c.bf16 %v4184_v19, %v4155_v56  ;;  %v2050_v58 = vpack.c.bf16 %v4368_v44, %v4342_v49  ;;  %v2058_v14 = vpack.c.bf16 %v4657_v20, %v4645_v63 }
 0x141   : > { %v4831_v23 = vsub.f32 %v1846_v11, %v1847_v8  ;;  %v4833_v32 = vadd.f32 %v1850_v36, %v1849_v59  ;;  %v2041_v19 = vpack.c.bf16 %v4122_v21, %v4090_v10  ;;  %v2049_v49 = vpack.c.bf16 %v4313_v48, %v4280_v5 }
 0x142   : > { %v2057_v63 = vpack.c.bf16 %v4633_v47, %v4620_v26  ;;  %v2040_v48 = vpack.c.bf16 %v4069_v45, %v4052_v35  ;;  %v2048_v5 = vpack.c.bf16 %v4252_v41, %v4223_v12  ;;  %v2056_v26 = vpack.c.bf16 %v4606_v30, %v4594_v17 }
 0x143   : > { %v1854_v51 = vmul.f32 %v4831_v23, %v3981_v27  ;;  %v1855_v60 = vmul.f32 %v4833_v32, %v3985_v18  ;;  %v1857_v11 = vmul.f32 %v4833_v32, %v3981_v27  ;;  %v1858_v8 = vmul.f32 %v4831_v23, %v3985_v18  ;;  %2584 = vmatpush.bf16.msra.mxu0 %v2043_v24 }
 0x144   : > { %2633 = vmatpush.bf16.msra.mxu1 %v2051_v9  ;;  %2682 = vmatpush.bf16.msra.mxu2 %v2059_v33  ;;  %v2039_v45 = vpack.c.bf16 %v4036_v40, %v4021_v22  ;;  %v2047_v12 = vpack.c.bf16 %v4191_v29, %v4161_v7  ;;  %v2055_v17 = vpack.c.bf16 %v4577_v52, %v4557_v39  ;;  %v5347_v7 = vld [vmem:[#allocation9_spill] sm:$0xff]  ;;  %v5348_v39 = vld [vmem:[#allocation16_spill] sm:$0xff]  ;;  %v5349_v52 = vld [vmem:[#allocation19_spill] sm:$0xff] }
 0x145   : > { %v4849_v4 = vsub.f32 %v1854_v51, %v1855_v60  ;;  %v4851_v1 = vadd.f32 %v1858_v8, %v1857_v11  ;;  %v2063_v30 = vpack.c.bf16 %v4771_v50, %v4759_v2  ;;  %v2038_v29 = vpack.c.bf16 %v5347_v7, %v3981_v27  ;;  %v5362_v50 = vld [vmem:[#allocation54_spill] sm:$0xff] }
 0x147   : > { %v1862_v46 = vmul.f32 %v4849_v4, %v3981_v27  ;;  %v1863_v59 = vmul.f32 %v4851_v1, %v3985_v18  ;;  %v1865_v60 = vmul.f32 %v4851_v1, %v3981_v27  ;;  %v1866_v36 = vmul.f32 %v4849_v4, %v3985_v18  ;;  %2585 = vmatpush.bf16.msra.mxu0 %v2042_v55 }
 0x148   : > { %2634 = vmatpush.bf16.msra.mxu1 %v2050_v58  ;;  %2683 = vmatpush.bf16.msra.mxu2 %v2058_v14  ;;  %v2046_v55 = vpack.c.bf16 %v5349_v52, %v5348_v39  ;;  %v5350_v58 = vld [vmem:[#allocation44_spill] sm:$0xff] }
 0x149   : > { %v4867_v31 = vsub.f32 %v1862_v46, %v1863_v59  ;;  %v4869_v6 = vadd.f32 %v1866_v36, %v1865_v60  ;;  %v2054_v14 = vpack.c.bf16 %v5350_v58, %v4518_v61 }
 0x14b   : > { %v1870_v16 = vmul.f32 %v4867_v31, %v3981_v27  ;;  %v1871_v25 = vmul.f32 %v4869_v6, %v3985_v18  ;;  %v1873_v54 = vmul.f32 %v4869_v6, %v3981_v27  ;;  %v1874_v62 = vmul.f32 %v4867_v31, %v3985_v18  ;;  %2586 = vmatpush.bf16.msra.mxu0 %v2041_v19  ;;  %v3375_v19 = vld [vmem:[#allocation3 + $0x1c] sm:$0xf0] }
 0x14c   : > { %2635 = vmatpush.bf16.msra.mxu1 %v2049_v49  ;;  %2684 = vmatpush.bf16.msra.mxu2 %v2057_v63 }
 0x14d   : > { %v4885_v56 = vsub.f32 %v1870_v16, %v1871_v25  ;;  %v4887_v44 = vadd.f32 %v1874_v62, %v1873_v54  ;;  %v2062_v16 = vpack.c.bf16 %v4747_v57, %v4735_v53  ;;  %v3113_v62 = vld [vmem:[#allocation3] sm:$0xf]  ;;  %v5367_v57 = vld [vmem:[#allocation38_spill] sm:$0xff] }
 0x14e   : > { %v3114_v49 = vor.u32 %v3375_v19, %v3113_v62  ;;  %v3147_v62 = vld [vmem:[#allocation3 + $0x60] sm:$0xf0] }
 0x14f   : > { %v1878_v20 = vmul.f32 %v4885_v56, %v3981_v27  ;;  %v1879_v51 = vmul.f32 %v4887_v44, %v3985_v18  ;;  %v1881_v11 = vmul.f32 %v4887_v44, %v3981_v27  ;;  %v1882_v8 = vmul.f32 %v4885_v56, %v3985_v18  ;;  %2587 = vmatpush.bf16.msra.mxu0 %v2040_v48  ;;  %v5366_v53 = vld [vmem:[#allocation37_spill] sm:$0xff] }
 0x150   : > { %2636 = vmatpush.bf16.msra.mxu1 %v2048_v5  ;;  %2685 = vmatpush.bf16.msra.mxu2 %v2056_v26  ;;  %v5351_v26 = vld [vmem:[#allocation58_spill] sm:$0xff]  ;;  %v2067_v58 = vpack.c.bf16 %v4885_v56, %v4867_v31  ;;  %v2065_v31 = vpack.c.bf16 %v4819_v34, %v4807_v13  ;;  %v2064_v13 = vpack.c.bf16 %v4795_v0, %v4783_v43  ;;  %v2168_v34 = vld [vmem:[%s5210_s2 + $0x10] sm:$0xff]  ;;  %v3391_v43 = vld [vmem:[#allocation3 + $0x9c] sm:$0xf0] }
 0x151   : > { %v4903_v10 = vsub.f32 %v1878_v20, %v1879_v51  ;;  %v4905_v21 = vadd.f32 %v1882_v8, %v1881_v11  ;;  %v3371_v20 = vld [vmem:[#allocation3 + $0x4] sm:$0xf]  ;;  %v3121_v11 = vld [vmem:[#allocation3 + $0x8] sm:$0xf]  ;;  %2194 = vperm.xlu1 %3498, %v2168_v34   ;;  %v3372_v0 = vld [vmem:[#allocation3 + $0xc] sm:$0xf] }
 0x152   : > { %v3115_v51 = vld [vmem:[#allocation3 + $0x20] sm:$0xf0]  ;;  %v3376_v8 = vld [vmem:[#allocation3 + $0x24] sm:$0xf0] }
 0x153   : > { %v1886_v47 = vmul.f32 %v4903_v10, %v3981_v27  ;;  %v1887_v24 = vmul.f32 %v4905_v21, %v3985_v18  ;;  %v1889_v9 = vmul.f32 %v4905_v21, %v3981_v27  ;;  %v1890_v33 = vmul.f32 %v4903_v10, %v3985_v18  ;;  %2588 = vmatpush.bf16.msra.mxu0 %v2039_v45  ;;  %v5353_v45 = vld [vmem:[#allocation33_spill] sm:$0xff] }
 0x154   : > { %2637 = vmatpush.bf16.msra.mxu1 %v2047_v12  ;;  %2686 = vmatpush.bf16.msra.mxu2 %v2055_v17  ;;  %v3118_v61 = vor.u32 %v3371_v20, %v3115_v51  ;;  %v3122_v5 = vor.u32 %v3376_v8, %v3121_v11  ;;  %v610_v12 = vmul.f32 %v5353_v45, %v3985_v18  ;;  %v2166_v17 = vld [vmem:[%s5210_s2] sm:$0xff]  ;;  %v5356_v51 = vld [vmem:[#allocation56_spill] sm:$0xff]  ;;  %v5359_v8 = vld [vmem:[#allocation31_spill] sm:$0xff] }
 0x155   : > { %v1888_v35 = vsub.f32 %v1886_v47, %v1887_v24  ;;  %v4921_v41 = vadd.f32 %v1890_v33, %v1889_v9  ;;  %v1473_v47 = vmul.f32 %v5351_v26, %v3981_v27  ;;  %v1474_v24 = vmul.f32 %v4723_v37, %v3985_v18  ;;  %v5352_v9 = vld [vmem:[#allocation34_spill] sm:$0xff]  ;;  %v5355_v37 = vld [vmem:[#allocation41_spill] sm:$0xff]  ;;  %2184 = vperm.xlu0 %3497, %v2166_v17  }
 0x156   : > { %v609_v33 = vmul.f32 %v5352_v9, %v3981_v27  ;;  %v5357_v11 = vld [vmem:[#allocation57_spill] sm:$0xff] }
 0x157   : > { %v1894_v46 = vmul.f32 %v1888_v35, %v3981_v27  ;;  %v1895_v59 = vmul.f32 %v4921_v41, %v3985_v18  ;;  %v1897_v60 = vmul.f32 %v4921_v41, %v3981_v27  ;;  %v1898_v36 = vmul.f32 %v1888_v35, %v3985_v18  ;;  %2589 = vmatpush.bf16.msra.mxu0 %v2038_v29  ;;  %v3177_v45 = vld [vmem:[#allocation3 + $0x80] sm:$0xf]  ;;  %v3387_v17 = vld [vmem:[#allocation3 + $0x84] sm:$0xf] }
 0x158   : > { %2638 = vmatpush.bf16.msra.mxu1 %v2046_v55  ;;  %2687 = vmatpush.bf16.msra.mxu2 %v2054_v14  ;;  %v611_v7 = vadd.f32 %v610_v12, %v609_v33  ;;  %v1042_v29 = vmul.f32 %v5355_v37, %v3985_v18  ;;  %v3383_v14 = vld [vmem:[#allocation3 + $0x5c] sm:$0xf0]  ;;  %v3123_v12 = vld [vmem:[#allocation3 + $0x28] sm:$0xf0]  ;;  %v2100_v2 = vpack.c.bf16 %v4921_v41, %v4905_v21  ;;  %v3403_v34 = vld [vmem:[#allocation3 + $0x104] sm:$0xf] }
 0x159   : > { %v4937_v22 = vsub.f32 %v1894_v46, %v1895_v59  ;;  %v4939_v40 = vadd.f32 %v1898_v36, %v1897_v60  ;;  %v2068_v46 = vpack.c.bf16 %v1888_v35, %v4903_v10  ;;  %v5354_v59 = vld [vmem:[#allocation42_spill] sm:$0xff]  ;;  %v1475_v36 = vadd.f32 %v1474_v24, %v1473_v47  ;;  %v3145_v35 = vld [vmem:[#allocation3 + $0x40] sm:$0xf] }
 0x15a   : > { %2590 = vmatmul.bf16.vlgmr.msra.gmra.mxu0 %v3114_v49  ;;  %v1041_v60 = vmul.f32 %v5354_v59, %v3981_v27  ;;  %v2077_v52 = vpack.c.bf16 %v611_v7, %v5352_v9  ;;  %v3146_v19 = vor.u32 %v3383_v14, %v3145_v35  ;;  %v3153_v49 = vld [vmem:[#allocation3 + $0x48] sm:$0xf]  ;;  %v2099_v21 = vpack.c.bf16 %v4887_v44, %v4869_v6  ;;  %v3209_v41 = vld [vmem:[#allocation3 + $0xc0] sm:$0xf]  ;;  %v3155_v35 = vld [vmem:[#allocation3 + $0x68] sm:$0xf0] }
 0x15b   : > { %v1902_v25 = vmul.f32 %v4937_v22, %v3981_v27  ;;  %v1903_v54 = vmul.f32 %v4939_v40, %v3985_v18  ;;  %2639 = vmatmul.bf16.vlgmr.msra.gmra.mxu1 %v3118_v61  ;;  %2688 = vmatmul.bf16.vlgmr.msra.gmra.mxu2 %v3122_v5  ;;  %v2093_v39 = vpack.c.bf16 %v1475_v36, %v5351_v26  ;;  %v5360_v5 = vld [vmem:[#allocation39_spill] sm:$0xff]  ;;  %v5361_v26 = vld [vmem:[#allocation40_spill] sm:$0xff]  ;;  %v3395_v14 = vld [vmem:[#allocation3 + $0xc4] sm:$0xf] }
 0x15c   : > { %v1043_v55 = vadd.f32 %v1042_v29, %v1041_v60  ;;  %2778 = vmatpush.bf16.msrb.mxu0 %v2077_v52  ;;  %v2092_v61 = vpack.c.bf16 %v5357_v11, %v5356_v51  ;;  %v2084_v47 = vpack.c.bf16 %v5361_v26, %v5360_v5  ;;  %v1905_v24 = vmul.f32 %v4939_v40, %v3981_v27  ;;  %v3179_v27 = vld [vmem:[#allocation3 + $0xa0] sm:$0xf0]  ;;  %v3392_v60 = vld [vmem:[#allocation3 + $0xa4] sm:$0xf0]  ;;  %v2169_v29 = vld [vmem:[%s5210_s2 + $0x18] sm:$0xff] }
 0x15d   : > { %v1904_v63 = vsub.f32 %v1902_v25, %v1903_v54  ;;  %2876 = vmatpush.bf16.msrb.mxu2 %v2093_v39  ;;  %v2066_v25 = vpack.c.bf16 %v4849_v4, %v4831_v23  ;;  %v3379_v54 = vld [vmem:[#allocation3 + $0x44] sm:$0xf]  ;;  %v2167_v23 = vld [vmem:[%s5210_s2 + $0x8] sm:$0xff]  ;;  %v1906_v9 = vmul.f32 %v4937_v22, %v3985_v18  ;;  %v3126_v36 = vor.u32 %v3372_v0, %v3123_v12  ;;  %v5365_v52 = vld [vmem:[#allocation27_spill] sm:$0xff] }
 0x15e   : > { %v2085_v10 = vpack.c.bf16 %v1043_v55, %v5354_v59  ;;  %v3150_v20 = vor.u32 %v3379_v54, %v3147_v62  ;;  %v5358_v4 = vld [vmem:[#allocation29_spill] sm:$0xff]  ;;  %2189 = vperm.xlu0 %3497, %v2167_v23   ;;  %v3185_v59 = vld [vmem:[#allocation3 + $0x88] sm:$0xf]  ;;  %v3182_v7 = vor.u32 %v3387_v17, %v3179_v27  ;;  %2199 = vperm.xlu1 %3498, %v2169_v29   ;;  %v5371_v51 = vld [vmem:[#allocation23_spill] sm:$0xff] }
 0x15f   : > { %v2069_v48 = vpack.c.bf16 %v1904_v63, %v4937_v22  ;;  %v3384_v63 = vld [vmem:[#allocation3 + $0x64] sm:$0xf0]  ;;  %v1907_v33 = vadd.f32 %v1906_v9, %v1905_v24  ;;  %v3178_v22 = vor.u32 %v3391_v43, %v3177_v45  ;;  %v3186_v37 = vor.u32 %v3392_v60, %v3185_v59  ;;  %v5364_v39 = vld [vmem:[#allocation25_spill] sm:$0xff]  ;;  %v2172_v23 = vld [vmem:[%s5210_s2 + $0x30] sm:$0xff] }
 0x160   : > { %2827 = vmatpush.bf16.msrb.mxu1 %v2085_v10  ;;  %v3154_v56 = vor.u32 %v3384_v63, %v3153_v49  ;;  %v2075_v55 = vpack.c.bf16 %v5365_v52, %v5364_v39  ;;  %v3380_v10 = vld [vmem:[#allocation3 + $0x4c] sm:$0xf]  ;;  %v3217_v62 = vld [vmem:[#allocation3 + $0xc8] sm:$0xf]  ;;  %v5369_v6 = vld [vmem:[#allocation53_spill] sm:$0xff] }
 0x161   : > { %2729 = vmatpush.bf16.msra.mxu3 %v2069_v48  ;;  %v2076_v48 = vpack.c.bf16 %v5359_v8, %v5358_v4  ;;  %2877 = vmatpush.bf16.msrb.mxu2 %v2092_v61  ;;  %v3158_v49 = vor.u32 %v3380_v10, %v3155_v35  ;;  %v2098_v61 = vpack.c.bf16 %v4851_v1, %v4833_v32  ;;  %v5372_v4 = vld [vmem:[#allocation35_spill] sm:$0xff]  ;;  %v5373_v8 = vld [vmem:[#allocation36_spill] sm:$0xff]  ;;  %v3241_v5 = vld [vmem:[#allocation3 + $0x100] sm:$0xf] }
 0x162   : > { %v3407_v26 = vld [vmem:[#allocation3 + $0x11c] sm:$0xf0]  ;;  %v3243_v24 = vld [vmem:[#allocation3 + $0x120] sm:$0xf0]  ;;  %v3249_v1 = vld [vmem:[#allocation3 + $0x108] sm:$0xf] }
 0x163   : > { %2779 = vmatpush.bf16.msrb.mxu0 %v2076_v48  ;;  %v2082_v48 = vpack.c.bf16 %v5373_v8, %v5372_v4  ;;  %v3242_v32 = vor.u32 %v3407_v26, %v3241_v5  ;;  %v3408_v9 = vld [vmem:[#allocation3 + $0x124] sm:$0xf0]  ;;  %v3246_v45 = vor.u32 %v3403_v34, %v3243_v24  ;;  %v5375_v12 = vld [vmem:[#allocation51_spill] sm:$0xff]  ;;  %v2170_v27 = vld [vmem:[%s5210_s2 + $0x20] sm:$0xff] }
 0x164   : > { %2828 = vmatpush.bf16.msrb.mxu1 %v2084_v47  ;;  %v3388_v47 = vld [vmem:[#allocation3 + $0x8c] sm:$0xf]  ;;  %v3250_v43 = vor.u32 %v3408_v9, %v3249_v1  ;;  %2204 = vperm.xlu2 %3499, %v2170_v27   ;;  %v5387_v5 = vld [vmem:[#allocation47_spill] sm:$0xff]  ;;  %v5390_v24 = vld [vmem:[#allocation61_spill] sm:$0xff] }
 0x165   : > { %2730 = vmatpush.bf16.msra.mxu3 %v2068_v46  ;;  %v2101_v46 = vpack.c.bf16 %v1907_v33, %v4939_v40  ;;  %v5374_v0 = vld [vmem:[#allocation50_spill] sm:$0xff]  ;;  %v2174_v1 = vld [vmem:[%s5210_s2 + $0x40] sm:$0xff] }
 0x166   : > { %2214 = vperm.xlu0 %3497, %v2172_v23   ;;  %v2089_v17 = vpack.c.bf16 %v5375_v12, %v5374_v0  ;;  %v5377_v59 = vld [vmem:[#allocation18_spill] sm:$0xff]  ;;  %v3337_v0 = vld [vmem:[#allocation3 + $0x1c0] sm:$0xf]  ;;  %v3427_v27 = vld [vmem:[#allocation3 + $0x1c4] sm:$0xf] }
 0x167   : > { %2780 = vmatpush.bf16.msrb.mxu0 %v2075_v55  ;;  %v3396_v29 = vld [vmem:[#allocation3 + $0xcc] sm:$0xf]  ;;  %v3281_v55 = vld [vmem:[#allocation3 + $0x148] sm:$0xf] }
 0x168   : > { %v3219_v39 = vld [vmem:[#allocation3 + $0xe8] sm:$0xf0] }
 0x169   : > { %2731 = vmatpush.bf16.msra.mxu3 %v2067_v58  ;;  %v3399_v58 = vld [vmem:[#allocation3 + $0xdc] sm:$0xf0]  ;;  %v2175_v35 = vld [vmem:[%s5210_s2 + $0x48] sm:$0xff] }
 0x16a   : > { %2595 = vmatmul.bf16.gmra.mxu0 %v3146_v19  ;;  %v3210_v54 = vor.u32 %v3399_v58, %v3209_v41  ;;  %v3400_v19 = vld [vmem:[#allocation3 + $0xe4] sm:$0xf0]  ;;  %v5380_v41 = vld [vmem:[#allocation48_spill] sm:$0xff]  ;;  %v5381_v58 = vld [vmem:[#allocation49_spill] sm:$0xff] }
 0x16b   : > { %2644 = vmatmul.bf16.gmra.mxu1 %v3150_v20  ;;  %2693 = vmatmul.bf16.gmra.mxu2 %v3154_v56  ;;  %v3218_v20 = vor.u32 %v3400_v19, %v3217_v62  ;;  %v5370_v56 = vld [vmem:[#allocation21_spill] sm:$0xff]  ;;  %v2088_v10 = vpack.c.bf16 %v5381_v58, %v5380_v41  ;;  %v2096_v62 = vpack.c.bf16 %v4797_v42, %v4785_v38  ;;  %v5384_v19 = vld [vmem:[#allocation26_spill] sm:$0xff]  ;;  %v3377_v41 = vld [vmem:[#allocation3 + $0x2c] sm:$0xf0] }
 0x16c   : > { %v2074_v11 = vpack.c.bf16 %v5371_v51, %v5370_v56  ;;  %v3251_v56 = vld [vmem:[#allocation3 + $0x128] sm:$0xf0]  ;;  %v3419_v51 = vld [vmem:[#allocation3 + $0x184] sm:$0xf] }
 0x16d   : > { %2732 = vmatpush.bf16.msra.mxu3 %v2066_v25  ;;  %v3211_v25 = vld [vmem:[#allocation3 + $0xe0] sm:$0xf0]  ;;  %v5391_v9 = vld [vmem:[#allocation22_spill] sm:$0xff] }
 0x16e   : > { %v3214_v63 = vor.u32 %v3395_v14, %v3211_v25  ;;  %2781 = vmatpush.bf16.msrb.mxu0 %v2074_v11  ;;  %v5382_v14 = vld [vmem:[#allocation13_spill] sm:$0xff]  ;;  %v5383_v25 = vld [vmem:[#allocation14_spill] sm:$0xff]  ;;  %2229 = vperm.xlu0 %3497, %v2175_v35   ;;  %v3131_v35 = vld [vmem:[#allocation3 + $0x30] sm:$0xf0] }
 0x16f   : > { %v3307_v38 = vld [vmem:[#allocation3 + $0x1a0] sm:$0xf0]  ;;  %v3313_v11 = vld [vmem:[#allocation3 + $0x188] sm:$0xf]  ;;  %v3412_v12 = vld [vmem:[#allocation3 + $0x14c] sm:$0xf] }
 0x170   : > { %v3310_v4 = vor.u32 %v3419_v51, %v3307_v38  ;;  %v3315_v58 = vld [vmem:[#allocation3 + $0x1a8] sm:$0xf0] }
 0x171   : > { %2733 = vmatpush.bf16.msra.mxu3 %v2065_v31  ;;  %v5368_v31 = vld [vmem:[#allocation52_spill] sm:$0xff] }
 0x172   : > { %v2090_v44 = vpack.c.bf16 %v5369_v6, %v5368_v31  ;;  %v3305_v31 = vld [vmem:[#allocation3 + $0x180] sm:$0xf] }
 0x173   : > { %v3423_v6 = vld [vmem:[#allocation3 + $0x19c] sm:$0xf0] }
 0x174   : > { %v3306_v42 = vor.u32 %v3423_v6, %v3305_v31 }
 0x175   : > { %2734 = vmatpush.bf16.msra.mxu3 %v2064_v13  ;;  %v3187_v13 = vld [vmem:[#allocation3 + $0xa8] sm:$0xf0] }
 0x176   : > { %v3190_v33 = vor.u32 %v3388_v47, %v3187_v13  ;;  %v5388_v47 = vld [vmem:[#allocation11_spill] sm:$0xff]  ;;  %v5389_v13 = vld [vmem:[#allocation12_spill] sm:$0xff] }
 0x177   : > { %v2071_v34 = vpack.c.bf16 %v5389_v13, %v5388_v47  ;;  %v3161_v47 = vld [vmem:[#allocation3 + $0x50] sm:$0xf] }
 0x178   : > { %v3385_v13 = vld [vmem:[#allocation3 + $0x6c] sm:$0xf0] }
 0x179   : > { %2735 = vmatpush.bf16.msra.mxu3 %v2063_v30  ;;  %v5363_v30 = vld [vmem:[#allocation55_spill] sm:$0xff] }
 0x17a   : > { %2600 = vmatmul.bf16.gmra.mxu0 %v3178_v22  ;;  %v2091_v40 = vpack.c.bf16 %v5363_v30, %v5362_v50  ;;  %v5376_v22 = vld [vmem:[#allocation15_spill] sm:$0xff]  ;;  %v2171_v50 = vld [vmem:[%s5210_s2 + $0x28] sm:$0xff]  ;;  %v3273_v30 = vld [vmem:[#allocation3 + $0x140] sm:$0xf] }
 0x17b   : > { %2649 = vmatmul.bf16.gmra.mxu1 %v3182_v7  ;;  %2698 = vmatmul.bf16.gmra.mxu2 %v3186_v37  ;;  %v2073_v60 = vpack.c.bf16 %v5377_v59, %v5376_v22  ;;  %v5378_v7 = vld [vmem:[#allocation30_spill] sm:$0xff]  ;;  %v5379_v37 = vld [vmem:[#allocation32_spill] sm:$0xff] }
 0x17c   : > { %2878 = vmatpush.bf16.msrb.mxu2 %v2091_v40  ;;  %v3415_v40 = vld [vmem:[#allocation3 + $0x15c] sm:$0xf0]  ;;  %2209 = vperm.xlu2 %3499, %v2171_v50   ;;  %v3345_v59 = vld [vmem:[#allocation3 + $0x1c8] sm:$0xf] }
 0x17d   : > { %2736 = vmatpush.bf16.msra.mxu3 %v2062_v16  ;;  %v2083_v16 = vpack.c.bf16 %v5367_v57, %v5366_v53  ;;  %2782 = vmatpush.bf16.msrb.mxu0 %v2073_v60  ;;  %v3274_v52 = vor.u32 %v3415_v40, %v3273_v30  ;;  %v3416_v53 = vld [vmem:[#allocation3 + $0x164] sm:$0xf0]  ;;  %v3222_v57 = vor.u32 %v3396_v29, %v3219_v39  ;;  %v5394_v50 = vld [vmem:[#allocation45_spill] sm:$0xff] }
 0x17e   : > { %v3432_v60 = vld [vmem:[#allocation3 + $0x1e4] sm:$0xf0] }
 0x17f   : > { %2829 = vmatpush.bf16.msrb.mxu1 %v2083_v16  ;;  %v2179_v40 = vld [vmem:[%s5210_s2 + $0x68] sm:$0xff] }
 0x180   : > { %2737 = vmatmul.bf16.vlgmr.msra.gmra.mxu3 %v3126_v36  ;;  %2879 = vmatpush.bf16.msrb.mxu2 %v2090_v44  ;;  %v2097_v36 = vpack.c.bf16 %v4821_v15, %v4809_v3  ;;  %v3411_v3 = vld [vmem:[#allocation3 + $0x144] sm:$0xf]  ;;  %v3404_v44 = vld [vmem:[#allocation3 + $0x10c] sm:$0xf] }
 0x181   : > { %2925 = vmatpush.bf16.msrb.mxu3 %v2101_v46  ;;  %v2173_v46 = vld [vmem:[%s5210_s2 + $0x38] sm:$0xff]  ;;  %v3275_v15 = vld [vmem:[#allocation3 + $0x160] sm:$0xf0]  ;;  %v3254_v23 = vor.u32 %v3404_v44, %v3251_v56  ;;  %v5395_v29 = vld [vmem:[#allocation10_spill] sm:$0xff] }
 0x182   : > { %2219 = vperm.xlu1 %3498, %v2173_v46   ;;  %v3278_v16 = vor.u32 %v3411_v3, %v3275_v15  ;;  %v3339_v46 = vld [vmem:[#allocation3 + $0x1e0] sm:$0xf0]  ;;  %v2070_v39 = vpack.c.bf16 %v5395_v29, %v3985_v18  ;;  %v5396_v3 = vld [vmem:[#allocation59_spill] sm:$0xff]  ;;  %v5397_v15 = vld [vmem:[#allocation60_spill] sm:$0xff] }
 0x183   : > { %2830 = vmatpush.bf16.msrb.mxu1 %v2082_v48  ;;  %v5386_v48 = vld [vmem:[#allocation46_spill] sm:$0xff]  ;;  %v2181_v56 = vld [vmem:[%s5210_s2 + $0x78] sm:$0xff] }
 0x184   : > { %2880 = vmatpush.bf16.msrb.mxu2 %v2089_v17  ;;  %v2087_v26 = vpack.c.bf16 %v5387_v5, %v5386_v48  ;;  %2224 = vperm.xlu2 %3499, %v2174_v1   ;;  %v3283_v17 = vld [vmem:[#allocation3 + $0x168] sm:$0xf0]  ;;  %v3162_v1 = vor.u32 %v3385_v13, %v3161_v47 }
 0x185   : > { %2926 = vmatpush.bf16.msrb.mxu3 %v2100_v2  ;;  %v2081_v2 = vpack.c.bf16 %v5379_v37, %v5378_v7  ;;  %v3342_v7 = vor.u32 %v3427_v27, %v3339_v46  ;;  %v3346_v37 = vor.u32 %v3432_v60, %v3345_v59  ;;  %v3420_v18 = vld [vmem:[#allocation3 + $0x18c] sm:$0xf] }
 0x186   : > { %v3347_v48 = vld [vmem:[#allocation3 + $0x1e8] sm:$0xf0] }
 0x187   : > { %2831 = vmatpush.bf16.msrb.mxu1 %v2081_v2  ;;  %v5393_v2 = vld [vmem:[#allocation43_spill] sm:$0xff] }
 0x188   : > { %2881 = vmatpush.bf16.msrb.mxu2 %v2088_v10  ;;  %v2086_v30 = vpack.c.bf16 %v5394_v50, %v5393_v2  ;;  %v3373_v10 = vld [vmem:[#allocation3 + $0x14] sm:$0xf]  ;;  %v3374_v50 = vld [vmem:[#allocation3 + $0x1c] sm:$0xf] }
 0x189   : > { %2927 = vmatpush.bf16.msrb.mxu3 %v2099_v21  ;;  %v3282_v21 = vor.u32 %v3416_v53, %v3281_v55  ;;  %v5398_v55 = vld [vmem:[#allocation17_spill] sm:$0xff]  ;;  %v5399_v53 = vld [vmem:[#allocation20_spill] sm:$0xff] }
 0x18a   : > { %2605 = vmatmul.bf16.gmra.mxu0 %v3210_v54  ;;  %v2072_v54 = vpack.c.bf16 %v5383_v25, %v5382_v14 }
 0x18b   : > { %2654 = vmatmul.bf16.gmra.mxu1 %v3214_v63  ;;  %2703 = vmatmul.bf16.gmra.mxu2 %v3218_v20  ;;  %v2176_v20 = vld [vmem:[%s5210_s2 + $0x50] sm:$0xff] }
 0x18c   : > { %2783 = vmatpush.bf16.msrb.mxu0 %v2072_v54  ;;  %2234 = vperm.xlu1 %3498, %v2176_v20   ;;  %v3137_v54 = vld [vmem:[#allocation3 + $0x18] sm:$0xf]  ;;  %v3134_v20 = vor.u32 %v3373_v10, %v3131_v35 }
 0x18d   : > { %2928 = vmatpush.bf16.msrb.mxu3 %v2098_v61  ;;  %v3424_v61 = vld [vmem:[#allocation3 + $0x1a4] sm:$0xf0]  ;;  %2882 = vmatpush.bf16.msrb.mxu2 %v2087_v26  ;;  %v3394_v10 = vld [vmem:[#allocation3 + $0xb4] sm:$0xf0] }
 0x18e   : > { %v3314_v8 = vor.u32 %v3424_v61, %v3313_v11 }
 0x190   : > { %2742 = vmatmul.bf16.gmra.mxu3 %v3158_v49  ;;  %v5385_v49 = vld [vmem:[#allocation28_spill] sm:$0xff]  ;;  %2784 = vmatpush.bf16.msrb.mxu0 %v2071_v34 }
 0x191   : > { %2929 = vmatpush.bf16.msrb.mxu3 %v2097_v36  ;;  %v2080_v63 = vpack.c.bf16 %v5385_v49, %v5384_v19  ;;  %v3286_v36 = vor.u32 %v3412_v12, %v3283_v17  ;;  %2883 = vmatpush.bf16.msrb.mxu2 %v2086_v30  ;;  %v3318_v49 = vor.u32 %v3420_v18, %v3315_v58  ;;  %v3386_v12 = vld [vmem:[#allocation3 + $0x74] sm:$0xf0]  ;;  %v3139_v30 = vld [vmem:[#allocation3 + $0x38] sm:$0xf0] }
 0x193   : > { %2832 = vmatpush.bf16.msrb.mxu1 %v2080_v63 }
 0x194   : > { %2249 = vperm.xlu1 %3498, %v2179_v40   ;;  %2785 = vmatpush.bf16.msrb.mxu0 %v2070_v39  ;;  %v3193_v39 = vld [vmem:[#allocation3 + $0x90] sm:$0xf] }
 0x195   : > { %2930 = vmatpush.bf16.msrb.mxu3 %v2096_v62  ;;  %v3378_v62 = vld [vmem:[#allocation3 + $0x34] sm:$0xf0] }
 0x196   : > { %v3138_v6 = vor.u32 %v3378_v62, %v3137_v54 }
 0x19a   : > { %2610 = vmatmul.bf16.gmra.mxu0 %v3242_v32  ;;  %v2095_v32 = vpack.c.bf16 %v5390_v24, %v4761_v28  ;;  %v3431_v28 = vld [vmem:[#allocation3 + $0x1dc] sm:$0xf0] }
 0x19b   : > { %2659 = vmatmul.bf16.gmra.mxu1 %v3246_v45  ;;  %2708 = vmatmul.bf16.gmra.mxu2 %v3250_v43  ;;  %v2178_v43 = vld [vmem:[%s5210_s2 + $0x60] sm:$0xff]  ;;  %v3338_v22 = vor.u32 %v3431_v28, %v3337_v0 }
 0x19c   : > { %2931 = vmatpush.bf16.msrb.mxu3 %v2095_v32  ;;  %2244 = vperm.xlu0 %3497, %v2178_v43  }
 0x1a0   : > { %2747 = vmatmul.bf16.gmra.mxu3 %v3190_v33  ;;  %v5392_v33 = vld [vmem:[#allocation24_spill] sm:$0xff] }
 0x1a1   : > { %v2079_v45 = vpack.c.bf16 %v5392_v33, %v5391_v9  ;;  %v3381_v9 = vld [vmem:[#allocation3 + $0x54] sm:$0xf] }
 0x1a2   : > { %v3163_v33 = vld [vmem:[#allocation3 + $0x70] sm:$0xf0] }
 0x1a3   : > { %2833 = vmatpush.bf16.msrb.mxu1 %v2079_v45  ;;  %v3169_v45 = vld [vmem:[#allocation3 + $0x58] sm:$0xf]  ;;  %v3166_v28 = vor.u32 %v3381_v9, %v3163_v33 }
 0x1a4   : > { %2259 = vperm.xlu0 %3497, %v2181_v56   ;;  %v3170_v27 = vor.u32 %v3386_v12, %v3169_v45  ;;  %v3171_v56 = vld [vmem:[#allocation3 + $0x78] sm:$0xf0] }
 0x1aa   : > { %2615 = vmatmul.bf16.gmra.mxu0 %v3274_v52  ;;  %v2094_v52 = vpack.c.bf16 %v5397_v15, %v5396_v3  ;;  %v3393_v3 = vld [vmem:[#allocation3 + $0xac] sm:$0xf0]  ;;  %v3142_v15 = vor.u32 %v3374_v50, %v3139_v30 }
 0x1ab   : > { %2664 = vmatmul.bf16.gmra.mxu1 %v3278_v16  ;;  %2713 = vmatmul.bf16.gmra.mxu2 %v3282_v21  ;;  %v2177_v16 = vld [vmem:[%s5210_s2 + $0x58] sm:$0xff]  ;;  %v3129_v21 = vld [vmem:[#allocation3 + $0x10] sm:$0xf] }
 0x1ac   : > { %2932 = vmatpush.bf16.msrb.mxu3 %v2094_v52  ;;  %2239 = vperm.xlu2 %3499, %v2177_v16   ;;  %v3130_v25 = vor.u32 %v3377_v41, %v3129_v21  ;;  %v3195_v16 = vld [vmem:[#allocation3 + $0xb0] sm:$0xf0]  ;;  %v3201_v21 = vld [vmem:[#allocation3 + $0x98] sm:$0xf] }
 0x1b0   : > { %2752 = vmatmul.bf16.gmra.mxu3 %v3222_v57  ;;  %v2078_v57 = vpack.c.bf16 %v5399_v53, %v5398_v55  ;;  %v3194_v53 = vor.u32 %v3393_v3, %v3193_v39  ;;  %v3405_v39 = vld [vmem:[#allocation3 + $0x114] sm:$0xf] }
 0x1b1   : > { %v3259_v3 = vld [vmem:[#allocation3 + $0x130] sm:$0xf0] }
 0x1b2   : > { %2834 = vmatpush.bf16.msrb.mxu1 %v2078_v57  ;;  %v3389_v57 = vld [vmem:[#allocation3 + $0x94] sm:$0xf] }
 0x1b3   : > { %v3198_v58 = vor.u32 %v3389_v57, %v3195_v16  ;;  %v3262_v57 = vor.u32 %v3405_v39, %v3259_v3  ;;  %v3410_v16 = vld [vmem:[#allocation3 + $0x134] sm:$0xf0]  ;;  %v3323_v3 = vld [vmem:[#allocation3 + $0x1b0] sm:$0xf0] }
 0x1ba   : > { %2620 = vmatmul.bf16.gmra.mxu0 %v3306_v42 }
 0x1bb   : > { %2669 = vmatmul.bf16.gmra.mxu1 %v3310_v4  ;;  %2718 = vmatmul.bf16.gmra.mxu2 %v3314_v8  ;;  %v3428_v8 = vld [vmem:[#allocation3 + $0x1cc] sm:$0xf] }
 0x1bc   : > { %v3350_v34 = vor.u32 %v3428_v8, %v3347_v48 }
 0x1be   : > { %v2205_v40 = vpop.permute.xlu2 %2204 }
 0x1c0   : > { %2757 = vmatmul.bf16.gmra.mxu3 %v3254_v23 }
 0x1c3   : > { %v2195_v5 = vpop.permute.xlu1 %2194 }
 0x1c7   : > { %v2185_v14 = vpop.permute.xlu0 %2184 }
 0x1ca   : > { %2625 = vmatmul.bf16.gmra.mxu0 %v3338_v22 }
 0x1cb   : > { %2674 = vmatmul.bf16.gmra.mxu1 %v3342_v7  ;;  %2723 = vmatmul.bf16.gmra.mxu2 %v3346_v37 }
 0x1d0   : > { %2762 = vmatmul.bf16.gmra.mxu3 %v3286_v36  ;;  %v2190_v38 = vpop.permute.xlu0 %2189  ;;  %v2200_v46 = vpop.permute.xlu1 %2199  ;;  %v2180_v36 = vld [vmem:[%s5210_s2 + $0x70] sm:$0xff] }
 0x1d1   : > { %2254 = vperm.xlu2 %3499, %v2180_v36  }
 0x1d6   : > { %v2210_v54 = vpop.permute.xlu2 %2209 }
 0x1d7   : > { %v2591_v19 = vpop.f32.mrf.mxu0 }
 0x1d8   : > { %v2592_v63 = vadd.f32 %v2591_v19, %v2185_v14  ;;  %v2640_v31 = vpop.f32.mrf.mxu1  ;;  %v3202_v14 = vor.u32 %v3394_v10, %v3201_v21 }
 0x1da   : > { %v2641_v44 = vadd.f32 %v2640_v31, %v2592_v63  ;;  %2786 = vmatmul.bf16.vlgmr.msrb.gmra.mxu0 %v3130_v25 }
 0x1db   : > { %2835 = vmatmul.bf16.vlgmr.msrb.gmra.mxu1 %v3134_v20  ;;  %2884 = vmatmul.bf16.vlgmr.msrb.gmra.mxu2 %v3138_v6 }
 0x1de   : > { %v2689_v42 = vpop.f32.mrf.mxu2 }
 0x1df   : > { %v2593_v51 = vpop.f32.mrf.mxu0  ;;  %v2690_v61 = vadd.f32 %v2689_v42, %v2641_v44  ;;  %v3382_v44 = vld [vmem:[#allocation3 + $0x5c] sm:$0xf]  ;;  %v3401_v42 = vld [vmem:[#allocation3 + $0xec] sm:$0xf0] }
 0x1e0   : > { %2767 = vmatmul.bf16.gmra.mxu3 %v3318_v49  ;;  %v2594_v11 = vadd.f32 %v2593_v51, %v2190_v38  ;;  %v2642_v23 = vpop.f32.mrf.mxu1  ;;  %v3225_v38 = vld [vmem:[#allocation3 + $0xd0] sm:$0xf] }
 0x1e1   : > { %v3226_v48 = vor.u32 %v3401_v42, %v3225_v38 }
 0x1e2   : > { %v2643_v4 = vadd.f32 %v2642_v23, %v2594_v11  ;;  %v3174_v23 = vor.u32 %v3382_v44, %v3171_v56  ;;  %v3289_v56 = vld [vmem:[#allocation3 + $0x150] sm:$0xf] }
 0x1e6   : > { %v2691_v32 = vpop.f32.mrf.mxu2 }
 0x1e7   : > { %v2596_v26 = vpop.f32.mrf.mxu0  ;;  %v2692_v43 = vadd.f32 %v2691_v32, %v2643_v4  ;;  %v3402_v32 = vld [vmem:[#allocation3 + $0xf4] sm:$0xf0] }
 0x1e8   : > { %v2597_v24 = vadd.f32 %v2596_v26, %v2195_v5  ;;  %v2645_v0 = vpop.f32.mrf.mxu1  ;;  %v3227_v5 = vld [vmem:[#allocation3 + $0xf0] sm:$0xf0]  ;;  %v3233_v26 = vld [vmem:[#allocation3 + $0xd8] sm:$0xf] }
 0x1e9   : > { %v3234_v9 = vor.u32 %v3402_v32, %v3233_v26 }
 0x1ea   : > { %v2646_v17 = vadd.f32 %v2645_v0, %v2597_v24  ;;  %2791 = vmatmul.bf16.gmra.mxu0 %v3162_v1 }
 0x1eb   : > { %2840 = vmatmul.bf16.gmra.mxu1 %v3166_v28  ;;  %2889 = vmatmul.bf16.gmra.mxu2 %v3170_v27 }
 0x1ee   : > { %v2694_v60 = vpop.f32.mrf.mxu2 }
 0x1ef   : > { %v2598_v22 = vpop.f32.mrf.mxu0  ;;  %v2695_v7 = vadd.f32 %v2694_v60, %v2646_v17  ;;  %v3203_v60 = vld [vmem:[#allocation3 + $0xb8] sm:$0xf0] }
 0x1f0   : > { %2772 = vmatmul.bf16.gmra.mxu3 %v3350_v34  ;;  %v2599_v59 = vadd.f32 %v2598_v22, %v2200_v46  ;;  %v2647_v37 = vpop.f32.mrf.mxu1  ;;  %v2215_v34 = vpop.permute.xlu0 %2214 }
 0x1f2   : > { %v2648_v2 = vadd.f32 %v2647_v37, %v2599_v59  ;;  %v3390_v59 = vld [vmem:[#allocation3 + $0x9c] sm:$0xf]  ;;  %v3257_v37 = vld [vmem:[#allocation3 + $0x110] sm:$0xf] }
 0x1f3   : > { %v3206_v30 = vor.u32 %v3390_v59, %v3203_v60  ;;  %v3406_v59 = vld [vmem:[#allocation3 + $0x11c] sm:$0xf] }
 0x1f4   : > { %v2220_v0 = vpop.permute.xlu1 %2219  ;;  %v3267_v60 = vld [vmem:[#allocation3 + $0x138] sm:$0xf0] }
 0x1f6   : > { %v2696_v55 = vpop.f32.mrf.mxu2 }
 0x1f7   : > { %v2601_v29 = vpop.f32.mrf.mxu0  ;;  %v2697_v41 = vadd.f32 %v2696_v55, %v2648_v2  ;;  %v3409_v2 = vld [vmem:[#allocation3 + $0x12c] sm:$0xf0] }
 0x1f8   : > { %v2602_v52 = vadd.f32 %v2601_v29, %v2205_v40  ;;  %v2650_v18 = vpop.f32.mrf.mxu1  ;;  %v3258_v29 = vor.u32 %v3409_v2, %v3257_v37  ;;  %v2230_v10 = vpop.permute.xlu0 %2229  ;;  %v3321_v37 = vld [vmem:[#allocation3 + $0x190] sm:$0xf] }
 0x1f9   : > { %v3425_v2 = vld [vmem:[#allocation3 + $0x1ac] sm:$0xf0] }
 0x1fa   : > { %v2651_v35 = vadd.f32 %v2650_v18, %v2602_v52  ;;  %2796 = vmatmul.bf16.gmra.mxu0 %v3194_v53 }
 0x1fb   : > { %2845 = vmatmul.bf16.gmra.mxu1 %v3198_v58  ;;  %2894 = vmatmul.bf16.gmra.mxu2 %v3202_v14 }
 0x1fe   : > { %v2699_v49 = vpop.f32.mrf.mxu2 }
 0x1ff   : > { %v2603_v19 = vpop.f32.mrf.mxu0  ;;  %v5095_v20 = vadd.f32 %v2699_v49, %v2651_v35 }
 0x200   : > { %2933 = vmatmul.bf16.vlgmr.msrb.gmra.mxu3 %v3142_v15  ;;  %v2604_v63 = vadd.f32 %v2603_v19, %v2210_v54  ;;  %v2652_v31 = vpop.f32.mrf.mxu1  ;;  %v3265_v15 = vld [vmem:[#allocation3 + $0x118] sm:$0xf] }
 0x201   : > { %v3266_v18 = vor.u32 %v3410_v16, %v3265_v15  ;;  %v3329_v15 = vld [vmem:[#allocation3 + $0x198] sm:$0xf] }
 0x202   : > { %v2653_v6 = vadd.f32 %v2652_v31, %v2604_v63  ;;  %v3398_v31 = vld [vmem:[#allocation3 + $0xdc] sm:$0xf]  ;;  %v3426_v16 = vld [vmem:[#allocation3 + $0x1b4] sm:$0xf0] }
 0x203   : > { %v2738_v25 = vpop.f32.mrf.mxu3 }
 0x204   : > { %v5093_v62 = vadd.f32 %v2738_v25, %v2690_v61  ;;  %v3397_v61 = vld [vmem:[#allocation3 + $0xd4] sm:$0xf] }
 0x205   : > { %v3230_v24 = vor.u32 %v3397_v61, %v3227_v5  ;;  %v3297_v61 = vld [vmem:[#allocation3 + $0x158] sm:$0xf] }
 0x206   : > { %v2701_v8 = vpop.f32.mrf.mxu2 }
 0x207   : > { %v2606_v4 = vpop.f32.mrf.mxu0  ;;  %v2702_v47 = vadd.f32 %v2701_v8, %v2653_v6  ;;  %v3235_v6 = vld [vmem:[#allocation3 + $0xf8] sm:$0xf0]  ;;  %v2235_v8 = vpop.permute.xlu1 %2234 }
 0x208   : > { %v2655_v13 = vpop.f32.mrf.mxu1  ;;  %v2607_v1 = vadd.f32 %v2606_v4, %v2215_v34  ;;  %v3238_v42 = vor.u32 %v3398_v31, %v3235_v6 }
 0x20a   : > { %2801 = vmatmul.bf16.gmra.mxu0 %v3226_v48  ;;  %v2656_v33 = vadd.f32 %v2655_v13, %v2607_v1  ;;  %v3291_v48 = vld [vmem:[#allocation3 + $0x170] sm:$0xf0] }
 0x20b   : > { %v2740_v51 = vpop.f32.mrf.mxu3  ;;  %2850 = vmatmul.bf16.gmra.mxu1 %v3230_v24  ;;  %2899 = vmatmul.bf16.gmra.mxu2 %v3234_v9  ;;  %v3418_v24 = vld [vmem:[#allocation3 + $0x174] sm:$0xf0] }
 0x20c   : > { %v5097_v11 = vadd.f32 %v2740_v51, %v2692_v43  ;;  %v3417_v51 = vld [vmem:[#allocation3 + $0x16c] sm:$0xf0]  ;;  %v3298_v1 = vor.u32 %v3418_v24, %v3297_v61  ;;  %v3429_v61 = vld [vmem:[#allocation3 + $0x1d4] sm:$0xf]  ;;  %v3434_v24 = vld [vmem:[#allocation3 + $0x1f4] sm:$0xf0] }
 0x20d   : > { %v3290_v4 = vor.u32 %v3417_v51, %v3289_v56  ;;  %v3299_v56 = vld [vmem:[#allocation3 + $0x178] sm:$0xf0] }
 0x20e   : > { %v2704_v17 = vpop.f32.mrf.mxu2  ;;  %v2245_v39 = vpop.permute.xlu0 %2244 }
 0x20f   : > { %v2608_v28 = vpop.f32.mrf.mxu0  ;;  %v5101_v46 = vadd.f32 %v2704_v17, %v2656_v33 }
 0x210   : > { %2938 = vmatmul.bf16.gmra.mxu3 %v3174_v23  ;;  %v2609_v12 = vadd.f32 %v2608_v28, %v2220_v0  ;;  %v2657_v27 = vpop.f32.mrf.mxu1 }
 0x212   : > { %v2658_v22 = vadd.f32 %v2657_v27, %v2609_v12 }
 0x213   : > { %v2743_v45 = vpop.f32.mrf.mxu3 }
 0x214   : > { %v5099_v43 = vadd.f32 %v2743_v45, %v2695_v7  ;;  %v2225_v7 = vpop.permute.xlu2 %2224 }
 0x216   : > { %v2706_v52 = vpop.f32.mrf.mxu2 }
 0x217   : > { %v2611_v40 = vpop.f32.mrf.mxu0  ;;  %v2707_v21 = vadd.f32 %v2706_v52, %v2658_v22 }
 0x218   : > { %v2660_v55 = vpop.f32.mrf.mxu1  ;;  %v2612_v53 = vadd.f32 %v2611_v40, %v2225_v7  ;;  %v3270_v40 = vor.u32 %v3406_v59, %v3267_v60  ;;  %v3322_v7 = vor.u32 %v3425_v2, %v3321_v37  ;;  %v3422_v2 = vld [vmem:[#allocation3 + $0x19c] sm:$0xf] }
 0x21a   : > { %2806 = vmatmul.bf16.gmra.mxu0 %v3258_v29  ;;  %v2661_v58 = vadd.f32 %v2660_v55, %v2612_v53 }
 0x21b   : > { %v2745_v36 = vpop.f32.mrf.mxu3  ;;  %2855 = vmatmul.bf16.gmra.mxu1 %v3262_v57  ;;  %2904 = vmatmul.bf16.gmra.mxu2 %v3266_v18 }
 0x21c   : > { %v5103_v50 = vadd.f32 %v2745_v36, %v2697_v41 }
 0x21e   : > { %v2709_v54 = vpop.f32.mrf.mxu2 }
 0x21f   : > { %v2613_v14 = vpop.f32.mrf.mxu0  ;;  %v5108_v49 = vadd.f32 %v2709_v54, %v2661_v58  ;;  %v3330_v58 = vor.u32 %v3426_v16, %v3329_v15 }
 0x220   : > { %2943 = vmatmul.bf16.gmra.mxu3 %v3206_v30  ;;  %v2614_v25 = vadd.f32 %v2613_v14, %v2230_v10  ;;  %v2662_v19 = vpop.f32.mrf.mxu1  ;;  %v2250_v10 = vpop.permute.xlu1 %2249 }
 0x222   : > { %v2663_v63 = vadd.f32 %v2662_v19, %v2614_v25 }
 0x223   : > { %v2748_v41 = vpop.f32.mrf.mxu3 }
 0x224   : > { %v5106_v35 = vadd.f32 %v2748_v41, %v5095_v20  ;;  %v3413_v20 = vld [vmem:[#allocation3 + $0x154] sm:$0xf] }
 0x225   : > { %v3294_v34 = vor.u32 %v3413_v20, %v3291_v48 }
 0x226   : > { %v2711_v5 = vpop.f32.mrf.mxu2 }
 0x227   : > { %v2616_v23 = vpop.f32.mrf.mxu0  ;;  %v2712_v32 = vadd.f32 %v2711_v5, %v2663_v63  ;;  %v3355_v5 = vld [vmem:[#allocation3 + $0x1f0] sm:$0xf0] }
 0x228   : > { %v2665_v26 = vpop.f32.mrf.mxu1  ;;  %v2617_v13 = vadd.f32 %v2616_v23, %v2235_v8  ;;  %v3433_v23 = vld [vmem:[#allocation3 + $0x1ec] sm:$0xf0] }
 0x22a   : > { %2811 = vmatmul.bf16.gmra.mxu0 %v3290_v4  ;;  %v2666_v9 = vadd.f32 %v2665_v26, %v2617_v13 }
 0x22b   : > { %v2750_v44 = vpop.f32.mrf.mxu3  ;;  %2860 = vmatmul.bf16.gmra.mxu1 %v3294_v34  ;;  %2909 = vmatmul.bf16.gmra.mxu2 %v3298_v1  ;;  %v3358_v34 = vor.u32 %v3429_v61, %v3355_v5 }
 0x22c   : > { %v5110_v38 = vadd.f32 %v2750_v44, %v2702_v47  ;;  %v2240_v47 = vpop.permute.xlu2 %2239  ;;  %v3414_v44 = vld [vmem:[#allocation3 + $0x15c] sm:$0xf] }
 0x22d   : > { %v3302_v8 = vor.u32 %v3414_v44, %v3299_v56 }
 0x22e   : > { %v2714_v12 = vpop.f32.mrf.mxu2 }
 0x22f   : > { %v2618_v0 = vpop.f32.mrf.mxu0  ;;  %v5115_v27 = vadd.f32 %v2714_v12, %v2666_v9 }
 0x230   : > { %2948 = vmatmul.bf16.gmra.mxu3 %v3238_v42  ;;  %v2619_v28 = vadd.f32 %v2618_v0, %v2240_v47  ;;  %v2667_v17 = vpop.f32.mrf.mxu1  ;;  %v3353_v42 = vld [vmem:[#allocation3 + $0x1d0] sm:$0xf] }
 0x231   : > { %v3354_v48 = vor.u32 %v3433_v23, %v3353_v42 }
 0x232   : > { %v2668_v22 = vadd.f32 %v2667_v17, %v2619_v28  ;;  %v2260_v28 = vpop.permute.xlu0 %2259 }
 0x233   : > { %v2753_v33 = vpop.f32.mrf.mxu3 }
 0x234   : > { %v5113_v45 = vadd.f32 %v2753_v33, %v5101_v46  ;;  %v3421_v46 = vld [vmem:[#allocation3 + $0x194] sm:$0xf]  ;;  %v2255_v47 = vpop.permute.xlu2 %2254 }
 0x235   : > { %v3326_v57 = vor.u32 %v3421_v46, %v3323_v3 }
 0x236   : > { %v2716_v52 = vpop.f32.mrf.mxu2 }
 0x237   : > { %v2621_v29 = vpop.f32.mrf.mxu0  ;;  %v2717_v18 = vadd.f32 %v2716_v52, %v2668_v22 }
 0x238   : > { %v2670_v55 = vpop.f32.mrf.mxu1  ;;  %v2622_v53 = vadd.f32 %v2621_v29, %v2245_v39 }
 0x23a   : > { %2816 = vmatmul.bf16.gmra.mxu0 %v3322_v7  ;;  %v2671_v41 = vadd.f32 %v2670_v55, %v2622_v53 }
 0x23b   : > { %v2755_v36 = vpop.f32.mrf.mxu3  ;;  %2865 = vmatmul.bf16.gmra.mxu1 %v3326_v57  ;;  %2914 = vmatmul.bf16.gmra.mxu2 %v3330_v58  ;;  %v3430_v58 = vld [vmem:[#allocation3 + $0x1dc] sm:$0xf] }
 0x23c   : > { %v5117_v30 = vadd.f32 %v2755_v36, %v2707_v21 }
 0x23e   : > { %v2719_v19 = vpop.f32.mrf.mxu2 }
 0x23f   : > { %v2623_v25 = vpop.f32.mrf.mxu0  ;;  %v2720_v31 = vadd.f32 %v2719_v19, %v2671_v41  ;;  %v3363_v41 = vld [vmem:[#allocation3 + $0x1f8] sm:$0xf0] }
 0x240   : > { %2953 = vmatmul.bf16.gmra.mxu3 %v3270_v40  ;;  %v2624_v54 = vadd.f32 %v2623_v25, %v2250_v10  ;;  %v2672_v63 = vpop.f32.mrf.mxu1  ;;  %v3331_v40 = vld [vmem:[#allocation3 + $0x1b8] sm:$0xf0] }
 0x241   : > { %v3334_v39 = vor.u32 %v3422_v2, %v3331_v40 }
 0x242   : > { %v2673_v6 = vadd.f32 %v2672_v63, %v2624_v54 }
 0x243   : > { %v2758_v21 = vpop.f32.mrf.mxu3 }
 0x244   : > { %v5120_v14 = vadd.f32 %v2758_v21, %v5108_v49  ;;  %v3361_v49 = vld [vmem:[#allocation3 + $0x1d8] sm:$0xf] }
 0x245   : > { %v3362_v9 = vor.u32 %v3434_v24, %v3361_v49 }
 0x246   : > { %v2721_v26 = vpop.f32.mrf.mxu2 }
 0x247   : > { %v2626_v20 = vpop.f32.mrf.mxu0  ;;  %v2722_v1 = vadd.f32 %v2721_v26, %v2673_v6 }
 0x248   : > { %v2675_v13 = vpop.f32.mrf.mxu1  ;;  %v2627_v33 = vadd.f32 %v2626_v20, %v2255_v47 }
 0x24a   : > { %2821 = vmatmul.bf16.gmra.mxu0 %v3354_v48 }
 0x24b   : > { %v2760_v51 = vpop.f32.mrf.mxu3  ;;  %2870 = vmatmul.bf16.gmra.mxu1 %v3358_v34  ;;  %2919 = vmatmul.bf16.gmra.mxu2 %v3362_v9 }
 0x24c   : > { %v5122_v4 = vadd.f32 %v2760_v51, %v2712_v32  ;;  %v2676_v32 = vadd.f32 %v2675_v13, %v2627_v33 }
 0x24e   : > { %v2724_v59 = vpop.f32.mrf.mxu2 }
 0x24f   : > { %v2628_v17 = vpop.f32.mrf.mxu0  ;;  %v2725_v36 = vadd.f32 %v2724_v59, %v2676_v32 }
 0x250   : > { %2958 = vmatmul.bf16.gmra.mxu3 %v3302_v8  ;;  %v2629_v22 = vadd.f32 %v2628_v17, %v2260_v28  ;;  %v2677_v60 = vpop.f32.mrf.mxu1 }
 0x252   : > { %v2678_v37 = vadd.f32 %v2677_v60, %v2629_v22 }
 0x253   : > { %v2763_v0 = vpop.f32.mrf.mxu3 }
 0x254   : > { %v5125_v12 = vadd.f32 %v2763_v0, %v5115_v27 }
 0x256   : > { %v2726_v3 = vpop.f32.mrf.mxu2 }
 0x257   : > { %v2787_v46 = vpop.f32.mrf.mxu0  ;;  %v2727_v52 = vadd.f32 %v2726_v3, %v2678_v37 }
 0x258   : > { %v2836_v15 = vpop.f32.mrf.mxu1  ;;  %v2788_v56 = vadd.f32 %v2787_v46, %v5093_v62 }
 0x25a   : > { %v2837_v20 = vadd.f32 %v2836_v15, %v2788_v56 }
 0x25b   : > { %v2765_v29 = vpop.f32.mrf.mxu3 }
 0x25c   : > { %v5127_v7 = vadd.f32 %v2765_v29, %v2717_v18  ;;  %v3366_v18 = vor.u32 %v3430_v58, %v3363_v41 }
 0x25e   : > { %v2885_v57 = vpop.f32.mrf.mxu2 }
 0x25f   : > { %v2789_v53 = vpop.f32.mrf.mxu0  ;;  %v2886_v48 = vadd.f32 %v2885_v57, %v2837_v20 }
 0x260   : > { %2963 = vmatmul.bf16.gmra.mxu3 %v3334_v39  ;;  %v2838_v16 = vpop.f32.mrf.mxu1  ;;  %v2790_v5 = vadd.f32 %v2789_v53, %v5097_v11 }
 0x262   : > { %v2839_v62 = vadd.f32 %v2838_v16, %v2790_v5 }
 0x263   : > { %v2768_v55 = vpop.f32.mrf.mxu3 }
 0x264   : > { %v5129_v27 = vadd.f32 %v2768_v55, %v2720_v31 }
 0x266   : > { %v2887_v54 = vpop.f32.mrf.mxu2 }
 0x267   : > { %v2792_v25 = vpop.f32.mrf.mxu0  ;;  %v2888_v24 = vadd.f32 %v2887_v54, %v2839_v62 }
 0x268   : > { %v2841_v19 = vpop.f32.mrf.mxu1 }
 0x26b   : > { %v2770_v21 = vpop.f32.mrf.mxu3 }
 0x26c   : > { %v5131_v10 = vadd.f32 %v2770_v21, %v2722_v1  ;;  %v2793_v1 = vadd.f32 %v2792_v25, %v5099_v43 }
 0x26e   : > { %v2890_v31 = vpop.f32.mrf.mxu2  ;;  %v2842_v32 = vadd.f32 %v2841_v19, %v2793_v1 }
 0x26f   : > { %v2794_v44 = vpop.f32.mrf.mxu0 }
 0x270   : > { %2968 = vmatmul.bf16.gmra.mxu3 %v3366_v18  ;;  %v2843_v42 = vpop.f32.mrf.mxu1  ;;  %v2891_v0 = vadd.f32 %v2890_v31, %v2842_v32  ;;  %v2795_v17 = vadd.f32 %v2794_v44, %v5103_v50 }
 0x273   : > { %v2773_v63 = vpop.f32.mrf.mxu3 }
 0x274   : > { %v5133_v6 = vadd.f32 %v2773_v63, %v2725_v36  ;;  %v2844_v36 = vadd.f32 %v2843_v42, %v2795_v17 }
 0x276   : > { %v2892_v8 = vpop.f32.mrf.mxu2 }
 0x277   : > { %v2797_v61 = vpop.f32.mrf.mxu0  ;;  %v2893_v37 = vadd.f32 %v2892_v8, %v2844_v36 }
 0x278   : > { %v2846_v13 = vpop.f32.mrf.mxu1  ;;  %v2798_v43 = vadd.f32 %v2797_v61, %v5106_v35 }
 0x27a   : > { %v2847_v46 = vadd.f32 %v2846_v13, %v2798_v43 }
 0x27b   : > { %v2775_v51 = vpop.f32.mrf.mxu3 }
 0x27c   : > { %v5136_v23 = vadd.f32 %v2775_v51, %v2727_v52 }
 0x27e   : > { %v2895_v34 = vpop.f32.mrf.mxu2 }
 0x27f   : > { %v2799_v47 = vpop.f32.mrf.mxu0  ;;  %v2896_v15 = vadd.f32 %v2895_v34, %v2847_v46 }
 0x280   : > { %v2848_v11 = vpop.f32.mrf.mxu1  ;;  %v2800_v50 = vadd.f32 %v2799_v47, %v5110_v38 }
 0x282   : > { %v2849_v16 = vadd.f32 %v2848_v11, %v2800_v50 }
 0x283   : > { %v2934_v49 = vpop.f32.mrf.mxu3 }
 0x284   : > { %v2935_v26 = vadd.f32 %v2934_v49, %v2886_v48 }
 0x286   : > { %2974 = vst [vmem:[%s5142_s7] sm:$0xff] %v2935_v26  ;;  %v2897_v28 = vpop.f32.mrf.mxu2 }
 0x287   : > { %v2802_v60 = vpop.f32.mrf.mxu0  ;;  %v2898_v58 = vadd.f32 %v2897_v28, %v2849_v16 }
 0x288   : > { %v2851_v2 = vpop.f32.mrf.mxu1  ;;  %v2803_v35 = vadd.f32 %v2802_v60, %v5113_v45 }
 0x28a   : > { %v2852_v54 = vadd.f32 %v2851_v2, %v2803_v35 }
 0x28b   : > { %v2936_v9 = vpop.f32.mrf.mxu3 }
 0x28c   : > { %v2937_v33 = vadd.f32 %v2936_v9, %v2888_v24 }
 0x28e   : > { %2975 = vst [vmem:[%s5142_s7 + $0x8] sm:$0xff] %v2937_v33  ;;  %v2900_v29 = vpop.f32.mrf.mxu2 }
 0x28f   : > { %v2804_v3 = vpop.f32.mrf.mxu0  ;;  %v2901_v63 = vadd.f32 %v2900_v29, %v2852_v54 }
 0x290   : > { %v2853_v55 = vpop.f32.mrf.mxu1  ;;  %v2805_v38 = vadd.f32 %v2804_v3, %v5117_v30 }
 0x292   : > { %v2854_v51 = vadd.f32 %v2853_v55, %v2805_v38 }
 0x293   : > { %v2939_v22 = vpop.f32.mrf.mxu3 }
 0x294   : > { %v2940_v59 = vadd.f32 %v2939_v22, %v2891_v0 }
 0x296   : > { %2976 = vst [vmem:[%s5142_s7 + $0x10] sm:$0xff] %v2940_v59  ;;  %v2902_v57 = vpop.f32.mrf.mxu2 }
 0x297   : > { %v2807_v41 = vpop.f32.mrf.mxu0  ;;  %v2903_v8 = vadd.f32 %v2902_v57, %v2854_v51 }
 0x298   : > { %v2856_v25 = vpop.f32.mrf.mxu1  ;;  %v2808_v45 = vadd.f32 %v2807_v41, %v5120_v14 }
 0x29a   : > { %v2857_v49 = vadd.f32 %v2856_v25, %v2808_v45 }
 0x29b   : > { %v2941_v40 = vpop.f32.mrf.mxu3 }
 0x29c   : > { %v2942_v39 = vadd.f32 %v2941_v40, %v2893_v37 }
 0x29e   : > { %2977 = vst [vmem:[%s5142_s7 + $0x18] sm:$0xff] %v2942_v39  ;;  %v2905_v19 = vpop.f32.mrf.mxu2 }
 0x29f   : > { %v2809_v44 = vpop.f32.mrf.mxu0  ;;  %v2906_v26 = vadd.f32 %v2905_v19, %v2857_v49 }
 0x2a0   : > { %v2858_v42 = vpop.f32.mrf.mxu1  ;;  %v2810_v30 = vadd.f32 %v2809_v44, %v5122_v4 }
 0x2a2   : > { %v2859_v1 = vadd.f32 %v2858_v42, %v2810_v30 }
 0x2a3   : > { %v2944_v52 = vpop.f32.mrf.mxu3 }
 0x2a4   : > { %v2945_v53 = vadd.f32 %v2944_v52, %v2896_v15 }
 0x2a6   : > { %2978 = vst [vmem:[%s5142_s7 + $0x20] sm:$0xff] %v2945_v53  ;;  %v2907_v20 = vpop.f32.mrf.mxu2 }
 0x2a7   : > { %v2812_v5 = vpop.f32.mrf.mxu0  ;;  %v2908_v47 = vadd.f32 %v2907_v20, %v2859_v1 }
 0x2a8   : > { %v2861_v13 = vpop.f32.mrf.mxu1  ;;  %v2813_v14 = vadd.f32 %v2812_v5, %v5125_v12 }
 0x2aa   : > { %v2862_v28 = vadd.f32 %v2861_v13, %v2813_v14 }
 0x2ab   : > { %v2946_v21 = vpop.f32.mrf.mxu3 }
 0x2ac   : > { %v2947_v18 = vadd.f32 %v2946_v21, %v2898_v58 }
 0x2ae   : > { %2979 = vst [vmem:[%s5142_s7 + $0x28] sm:$0xff] %v2947_v18  ;;  %v2910_v34 = vpop.f32.mrf.mxu2 }
 0x2af   : > { %v2814_v9 = vpop.f32.mrf.mxu0  ;;  %v2911_v17 = vadd.f32 %v2910_v34, %v2862_v28 }
 0x2b0   : > { %v2863_v32 = vpop.f32.mrf.mxu1  ;;  %v2815_v4 = vadd.f32 %v2814_v9, %v5127_v7 }
 0x2b2   : > { %v2864_v37 = vadd.f32 %v2863_v32, %v2815_v4 }
 0x2b3   : > { %v2949_v31 = vpop.f32.mrf.mxu3 }
 0x2b4   : > { %v2950_v56 = vadd.f32 %v2949_v31, %v2901_v63 }
 0x2b6   : > { %2980 = vst [vmem:[%s5142_s7 + $0x30] sm:$0xff] %v2950_v56  ;;  %v2912_v0 = vpop.f32.mrf.mxu2 }
 0x2b7   : > { %v2817_v22 = vpop.f32.mrf.mxu0  ;;  %v2913_v43 = vadd.f32 %v2912_v0, %v2864_v37 }
 0x2b8   : > { %v2866_v36 = vpop.f32.mrf.mxu1  ;;  %v2818_v12 = vadd.f32 %v2817_v22, %v5129_v27 }
 0x2ba   : > { %v2867_v46 = vadd.f32 %v2866_v36, %v2818_v12 }
 0x2bb   : > { %v2951_v48 = vpop.f32.mrf.mxu3 }
 0x2bc   : > { %v2952_v61 = vadd.f32 %v2951_v48, %v2903_v8 }
 0x2be   : > { %2981 = vst [vmem:[%s5142_s7 + $0x38] sm:$0xff] %v2952_v61  ;;  %v2915_v2 = vpop.f32.mrf.mxu2 }
 0x2bf   : > { %v2819_v29 = vpop.f32.mrf.mxu0  ;;  %v2916_v15 = vadd.f32 %v2915_v2, %v2867_v46 }
 0x2c0   : > { %v2868_v3 = vpop.f32.mrf.mxu1  ;;  %v2820_v7 = vadd.f32 %v2819_v29, %v5131_v10 }
 0x2c2   : > { %v2869_v57 = vadd.f32 %v2868_v3, %v2820_v7 }
 0x2c3   : > { %v2954_v62 = vpop.f32.mrf.mxu3 }
 0x2c4   : > { %v2955_v24 = vadd.f32 %v2954_v62, %v2906_v26 }
 0x2c6   : > { %2982 = vst [vmem:[%s5142_s7 + $0x40] sm:$0xff] %v2955_v24  ;;  %v2917_v50 = vpop.f32.mrf.mxu2 }
 0x2c7   : > { %v2822_v53 = vpop.f32.mrf.mxu0  ;;  %v2918_v16 = vadd.f32 %v2917_v50, %v2869_v57 }
 0x2c8   : > { %v2871_v58 = vpop.f32.mrf.mxu1  ;;  %v2823_v27 = vadd.f32 %v2822_v53, %v5133_v6 }
 0x2ca   : > { %v2872_v18 = vadd.f32 %v2871_v58, %v2823_v27 }
 0x2cb   : > { %v2956_v33 = vpop.f32.mrf.mxu3 }
 0x2cc   : > { %v2957_v11 = vadd.f32 %v2956_v33, %v2908_v47 }
 0x2ce   : > { %2983 = vst [vmem:[%s5142_s7 + $0x48] sm:$0xff] %v2957_v11  ;;  %v2920_v35 = vpop.f32.mrf.mxu2 }
 0x2cf   : > { %v2824_v25 = vpop.f32.mrf.mxu0  ;;  %v2921_v54 = vadd.f32 %v2920_v35, %v2872_v18 }
 0x2d0   : > { %v2825_v10 = vadd.f32 %v2824_v25, %v5136_v23  ;;  %v2873_v63 = vpop.f32.mrf.mxu1 }
 0x2d2   : > { %v2874_v6 = vadd.f32 %v2873_v63, %v2825_v10 }
 0x2d3   : > { %v2959_v59 = vpop.f32.mrf.mxu3 }
 0x2d4   : > { %v2960_v60 = vadd.f32 %v2959_v59, %v2911_v17 }
 0x2d6   : > { %2984 = vst [vmem:[%s5142_s7 + $0x50] sm:$0xff] %v2960_v60  ;;  %v2922_v31 = vpop.f32.mrf.mxu2 }
 0x2d7   : > { %v2923_v44 = vadd.f32 %v2922_v31, %v2874_v6 }
 0x2db   : > { %v2961_v40 = vpop.f32.mrf.mxu3 }
 0x2dc   : > { %v2962_v39 = vadd.f32 %v2961_v40, %v2913_v43 }
 0x2de   : > { %2985 = vst [vmem:[%s5142_s7 + $0x58] sm:$0xff] %v2962_v39 }
 0x2e3   : > { %v2964_v52 = vpop.f32.mrf.mxu3 }
 0x2e4   : > { %v2965_v55 = vadd.f32 %v2964_v52, %v2916_v15 }
 0x2e6   : > { %2986 = vst [vmem:[%s5142_s7 + $0x60] sm:$0xff] %v2965_v55 }
 0x2eb   : > { %v2966_v41 = vpop.f32.mrf.mxu3 }
 0x2ec   : > { %v2967_v21 = vadd.f32 %v2966_v41, %v2918_v16 }
 0x2ee   : > { %2987 = vst [vmem:[%s5142_s7 + $0x68] sm:$0xff] %v2967_v21 }
 0x2f3   : > { %v2969_v19 = vpop.f32.mrf.mxu3 }
 0x2f4   : > { %v2970_v38 = vadd.f32 %v2969_v19, %v2921_v54 }
 0x2f6   : > { %2988 = vst [vmem:[%s5142_s7 + $0x70] sm:$0xff] %v2970_v38 }
 0x2fb   : > { %v2971_v56 = vpop.f32.mrf.mxu3 }
 0x2fc   : > { %v2972_v23 = vadd.f32 %v2971_v56, %v2923_v44 }
 0x2fe   : > { %2989 = vst [vmem:[%s5142_s7 + $0x78] sm:$0xff] %v2972_v23 }
 0x2ff   : > { %3557 = shalt.err (!%p3554_p8)
}
 0x300   : > { %s3608_s30 = smov 128   ;;  %s3609_s4 = smov 256  }
 0x301   : > { %s3610_s5 = smov 8  }
 0x302   : > { %3439 = dma.vmem_to_hbm [thread:$0]  (%p3669_p5), %s3003_s17, 2048, %s3005_s19, %s2991_s16, %s3608_s30, %s3609_s4, %s3610_s5  }
 0x303 PF: > { %p3451_p9 = scmp.ge.s32.totalorder %s3596_s15, 2  ;;  %s3019_s6 = sand.u32 1, %s3584_s12  }
 0x304   : > { %s3020_s7 = scalar_lea.sflag [#allocation5], %s3019_s6 }
 0x305   : > { %p3446_p10 = pnand %p3451_p9, %p3673_p6 }
 0x307   : > { %p3447_p11 = pneg %p3446_p10 }
 0x309   : > { %3579 = dma.done.wait (%p3447_p11), %s3020_s7, 2048  }
 0x30a   : > { %3581 = vsyncadd (%p3447_p11), %s3020_s7, 4294965248  ;;  %p14_p12 = scmp.ge.s32.totalorder %s3656_s18, 4   ;;  %s5400_s12 = smov %s3588_s13 }
 0x30b   : > { %s5401_s13 = smov %s3592_s14  ;;  %s5402_s14 = smov %s3667_s21 }
 0x30c   : > { %s5403_s15 = smov %s3656_s18  ;;  %16 = sbr.rel (!%p14_p12) target bundleno = 4 (0x4), region = 72 }
 0x311   :  { %3026 = vsyncpa [#allocation4], 1 }
 0x312   :  { %3028 = vsyncpa [#allocation4 + $0x1], 1 }
 0x313   :  { %3029 = vsyncpa [#allocation5], 1 }
 0x314   :  { %3031 = vsyncpa [#allocation5 + $0x1], 1 }

</bundles_post_ra>
